<compile_context>
chip_gen: v7x
topology: tpu7x:2x2x1
jax: 0.10.0
libtpu: 0.0.40
codegen_flags: <defaults>
</compile_context>

<pallas_src>
import jax
import jax.numpy as jnp
from jax.experimental import pallas as pl
from jax.experimental.pallas import tpu as pltpu

PHI_SIZE = 512
MID_SIZE = 256
ACTIONS = 3
MAX_BATCH_TILE = 512                 # rows per grid step for large batches
VMEM_LIMIT_BYTES = 48 * 1024 * 1024  # explicit scoped-VMEM limit (v5e default 16 MiB is too tight)


def _round_up(x, m):
    return (x + m - 1) // m * m


def _const_spec(block_shape, index_map):
    """Constant-index (weight) BlockSpec, single-buffered when supported."""
    try:
        return pl.BlockSpec(block_shape, index_map, pipeline_mode=pl.Buffered(1))
    except TypeError:  # older jax without pipeline_mode kwarg
        return pl.BlockSpec(block_shape, index_map)


def _alpha_kernel(x_ref, w1_ref, b1_ref, w2_ref, b2_ref, w3_ref, b3_ref, o_ref):
    """One batch tile: fused layer 1 over all heads, per-head layers 2/3."""
    in_size = w3_ref.shape[-1]
    x_bf = x_ref[...].astype(jnp.bfloat16)                          # (tm, in) bf16

    # Layer 1 fused across the 3 heads: one (tm, in) x (in, 3*in) MXU pass.
    h1 = jnp.dot(x_bf, w1_ref[...],
                 preferred_element_type=jnp.float32) + b1_ref[...]   # (tm, 3*in) f32
    h1 = jnp.maximum(h1, 0.0).astype(jnp.bfloat16)

    for h in range(ACTIONS):                                         # static unroll
        # 128-aligned lane slice of the fused layer-1 activations.
        h1_h = h1[:, h * in_size:(h + 1) * in_size]
        h2 = jnp.dot(h1_h, w2_ref[h],
                     preferred_element_type=jnp.float32) + b2_ref[h]
        h2 = jnp.maximum(h2, 0.0).astype(jnp.bfloat16)
        y = jnp.dot(h2, w3_ref[h],
                    preferred_element_type=jnp.float32) + b3_ref[h]
        # Static, 128-aligned slice -> lane-dense unmasked store.
        o_ref[:, h * in_size:(h + 1) * in_size] = y.astype(o_ref.dtype)


def alpha_net_forward(x, params, out_dtype=None):
    """x: (b, in_size) f32 or bf16. Returns (b, ACTIONS, in_size), matching alphaNet.forward."""
    b, in_size = x.shape
    mid_size = params["w2"].shape[-1]
    out_dtype = x.dtype if out_dtype is None else out_dtype

    # Balanced batch tiling: padding bounded to <8 rows per tile; give megacore
    # (v7x) at least two "parallel" grid steps whenever the batch allows it.
    n_tiles = pl.cdiv(b, MAX_BATCH_TILE)
    if n_tiles == 1 and b >= 16:
        n_tiles = 2
    tm = _round_up(pl.cdiv(b, n_tiles), 8)
    bp = n_tiles * tm
    if bp != b:
        x = jnp.pad(x, ((0, bp - b), (0, 0)))

    w1, b1 = params["w1"], params["b1"]   # (in, 3*in) bf16, (1, 3*in) f32  (pre-fused)
    w2, b2 = params["w2"], params["b2"]   # (3, in, mid) bf16, (3, 1, mid) f32
    w3, b3 = params["w3"], params["b3"]   # (3, mid, in) bf16, (3, 1, in) f32

    # Weight/bias index_maps ignore the batch-tile index -> blocks stay
    # VMEM-resident across batch tiles (no repeated weight DMA).
    wmap2 = lambda i: (0, 0)
    wmap3 = lambda i: (0, 0, 0)

    out = pl.pallas_call(
        _alpha_kernel,
        out_shape=jax.ShapeDtypeStruct((bp, ACTIONS * in_size), out_dtype),
        grid_spec=pltpu.PrefetchScalarGridSpec(
            num_scalar_prefetch=0,
            grid=(n_tiles,),
            in_specs=[
                pl.BlockSpec((tm, in_size), lambda i: (i, 0)),                 # x
                _const_spec((in_size, ACTIONS * in_size), wmap2),              # w1 (fused)
                _const_spec((1, ACTIONS * in_size), wmap2),                    # b1 (fused)
                _const_spec((ACTIONS, in_size, mid_size), wmap3),              # w2
                _const_spec((ACTIONS, 1, mid_size), wmap3),                    # b2
                _const_spec((ACTIONS, mid_size, in_size), wmap3),              # w3
                _const_spec((ACTIONS, 1, in_size), wmap3),                     # b3
            ],
            out_specs=pl.BlockSpec((tm, ACTIONS * in_size), lambda i: (i, 0)),
        ),
        compiler_params=pltpu.CompilerParams(
            dimension_semantics=("parallel",),
            vmem_limit_bytes=VMEM_LIMIT_BYTES,
        ),
    )(x, w1, b1, w2, b2, w3, b3)

    # Drop batch padding; free reshape == torch.cat((x1,x2,x3),1).view(b,3,-1)
    return out[:b].reshape(b, ACTIONS, in_size)


def init_params(key, in_size=PHI_SIZE, mid_size=MID_SIZE, actions=ACTIONS):
    """nn.Linear-style U(-1/sqrt(fan_in), 1/sqrt(fan_in)); weights stored bf16.

    Layer-1 weights/biases are stored pre-fused across heads: (in, actions*in).
    """
    ks = jax.random.split(key, 6)

    def unif(k, shape, fan_in, dtype):
        bound = 1.0 / jnp.sqrt(jnp.asarray(fan_in, jnp.float32))
        return jax.random.uniform(k, shape, jnp.float32, -bound, bound).astype(dtype)

    return {
        "w1": unif(ks[0], (in_size, actions * in_size), in_size, jnp.bfloat16),
        "b1": unif(ks[1], (1, actions * in_size), in_size, jnp.float32),
        "w2": unif(ks[2], (actions, in_size, mid_size), in_size, jnp.bfloat16),
        "b2": unif(ks[3], (actions, 1, mid_size), in_size, jnp.float32),
        "w3": unif(ks[4], (actions, mid_size, in_size), mid_size, jnp.bfloat16),
        "b3": unif(ks[5], (actions, 1, in_size), mid_size, jnp.float32),
    }


def alpha_net_reference(x, params):
    """Pure-JAX f32 reference (same bf16-valued weights, f32 math)."""
    in_size = params["w3"].shape[-1]
    outs = []
    for h in range(ACTIONS):
        w1 = params["w1"][:, h * in_size:(h + 1) * in_size].astype(jnp.float32)
        b1 = params["b1"][:, h * in_size:(h + 1) * in_size]
        w2 = params["w2"][h].astype(jnp.float32)
        w3 = params["w3"][h].astype(jnp.float32)
        h1 = jnp.maximum(x @ w1 + b1, 0.0)
        h2 = jnp.maximum(h1 @ w2 + params["b2"][h], 0.0)
        outs.append(h2 @ w3 + params["b3"][h])
    y = jnp.concatenate(outs, axis=1)                   # (b, 3*in)
    return y.reshape(x.shape[0], ACTIONS, -1)


if __name__ == "__main__":
    key = jax.random.PRNGKey(0)
    k_x, k_p = jax.random.split(key)

    batch = 8
    x = jax.random.normal(k_x, (batch, PHI_SIZE), jnp.float32)
    params = init_params(k_p)

    y = jax.jit(alpha_net_forward)(x, params)
    y = jax.block_until_ready(y)

    y_ref = alpha_net_reference(x, params)
    assert y.shape == (batch, ACTIONS, PHI_SIZE), y.shape
    # bf16 activations/weights vs f32 reference: loosened tolerance.
    assert jnp.allclose(y, y_ref, atol=5e-2, rtol=5e-2), "mismatch vs reference"

    print("KERNEL_OK")
</pallas_src>

<mosaic_0001>
module attributes {stable_mosaic.version = 11 : i64} {
  func.func @_alpha_kernel(%arg0: i32, %arg1: memref<8x512xf32, #tpu.memory_space<vmem>>, %arg2: memref<512x1536xbf16, #tpu.memory_space<vmem>>, %arg3: memref<1x1536xf32, #tpu.memory_space<vmem>>, %arg4: memref<3x512x256xbf16, #tpu.memory_space<vmem>>, %arg5: memref<3x1x256xf32, #tpu.memory_space<vmem>>, %arg6: memref<3x256x512xbf16, #tpu.memory_space<vmem>>, %arg7: memref<3x1x512xf32, #tpu.memory_space<vmem>>, %arg8: memref<8x1536xf32, #tpu.memory_space<vmem>>) attributes {dimension_semantics = [#tpu.dimension_semantics<parallel>], iteration_bounds = array<i64: 1>, scalar_prefetch = 0 : i64, scratch_operands = 0 : i64, tpu.core_type = #tpu.core_type<tc>, window_params = [{transform_indices = @transform_0, window_bounds = array<i64: 8, 512>}, {pipeline_mode = #tpu.pipeline_mode<synchronous>, transform_indices = @transform_1, window_bounds = array<i64: 512, 1536>}, {pipeline_mode = #tpu.pipeline_mode<synchronous>, transform_indices = @transform_2, window_bounds = array<i64: 1, 1536>}, {pipeline_mode = #tpu.pipeline_mode<synchronous>, transform_indices = @transform_3, window_bounds = array<i64: 3, 512, 256>}, {pipeline_mode = #tpu.pipeline_mode<synchronous>, transform_indices = @transform_4, window_bounds = array<i64: 3, 1, 256>}, {pipeline_mode = #tpu.pipeline_mode<synchronous>, transform_indices = @transform_5, window_bounds = array<i64: 3, 256, 512>}, {pipeline_mode = #tpu.pipeline_mode<synchronous>, transform_indices = @transform_6, window_bounds = array<i64: 3, 1, 512>}, {transform_indices = @transform_7, window_bounds = array<i64: 8, 1536>}]} {
    %c0 = arith.constant 0 : index
    %c0_0 = arith.constant 0 : index
    %0 = vector.load %arg1[%c0, %c0_0] : memref<8x512xf32, #tpu.memory_space<vmem>>, vector<8x512xf32>
    %1 = arith.truncf %0 : vector<8x512xf32> to vector<8x512xbf16>
    %c0_1 = arith.constant 0 : index
    %c0_2 = arith.constant 0 : index
    %2 = vector.load %arg2[%c0_1, %c0_2] : memref<512x1536xbf16, #tpu.memory_space<vmem>>, vector<512x1536xbf16>
    %cst = arith.constant dense<0.000000e+00> : vector<8x1536xf32>
    %3 = tpu.matmul %1, %2, %cst {dimension_numbers = #tpu.dot_dimension_numbers<[1], [0], [0], [1], [0, 0, 1, 1], [], []>} : vector<8x512xbf16>, vector<512x1536xbf16>, vector<8x1536xf32> -> vector<8x1536xf32>
    %c0_3 = arith.constant 0 : index
    %c0_4 = arith.constant 0 : index
    %4 = vector.load %arg3[%c0_3, %c0_4] : memref<1x1536xf32, #tpu.memory_space<vmem>>, vector<1x1536xf32>
    %5 = vector.broadcast %4 : vector<1x1536xf32> to vector<8x1536xf32>
    %6 = arith.addf %3, %5 : vector<8x1536xf32>
    %cst_5 = arith.constant 0.000000e+00 : f32
    %7 = vector.broadcast %cst_5 : f32 to vector<8x1536xf32>
    %8 = arith.maximumf %6, %7 : vector<8x1536xf32>
    %9 = arith.truncf %8 : vector<8x1536xf32> to vector<8x1536xbf16>
    %10 = vector.extract_strided_slice %9 {offsets = [0, 0], sizes = [8, 512], strides = [1, 1]} : vector<8x1536xbf16> to vector<8x512xbf16>
    %c0_6 = arith.constant 0 : index
    %c0_7 = arith.constant 0 : index
    %c0_8 = arith.constant 0 : index
    %11 = vector.load %arg4[%c0_6, %c0_7, %c0_8] : memref<3x512x256xbf16, #tpu.memory_space<vmem>>, vector<1x512x256xbf16>
    %12 = vector.shape_cast %11 : vector<1x512x256xbf16> to vector<512x256xbf16>
    %cst_9 = arith.constant dense<0.000000e+00> : vector<8x256xf32>
    %13 = tpu.matmul %10, %12, %cst_9 {dimension_numbers = #tpu.dot_dimension_numbers<[1], [0], [0], [1], [0, 0, 1, 1], [], []>} : vector<8x512xbf16>, vector<512x256xbf16>, vector<8x256xf32> -> vector<8x256xf32>
    %c0_10 = arith.constant 0 : index
    %c0_11 = arith.constant 0 : index
    %c0_12 = arith.constant 0 : index
    %14 = vector.load %arg5[%c0_10, %c0_11, %c0_12] : memref<3x1x256xf32, #tpu.memory_space<vmem>>, vector<1x1x256xf32>
    %15 = vector.shape_cast %14 : vector<1x1x256xf32> to vector<1x256xf32>
    %16 = vector.broadcast %15 : vector<1x256xf32> to vector<8x256xf32>
    %17 = arith.addf %13, %16 : vector<8x256xf32>
    %cst_13 = arith.constant 0.000000e+00 : f32
    %18 = vector.broadcast %cst_13 : f32 to vector<8x256xf32>
    %19 = arith.maximumf %17, %18 : vector<8x256xf32>
    %20 = arith.truncf %19 : vector<8x256xf32> to vector<8x256xbf16>
    %c0_14 = arith.constant 0 : index
    %c0_15 = arith.constant 0 : index
    %c0_16 = arith.constant 0 : index
    %21 = vector.load %arg6[%c0_14, %c0_15, %c0_16] : memref<3x256x512xbf16, #tpu.memory_space<vmem>>, vector<1x256x512xbf16>
    %22 = vector.shape_cast %21 : vector<1x256x512xbf16> to vector<256x512xbf16>
    %cst_17 = arith.constant dense<0.000000e+00> : vector<8x512xf32>
    %23 = tpu.matmul %20, %22, %cst_17 {dimension_numbers = #tpu.dot_dimension_numbers<[1], [0], [0], [1], [0, 0, 1, 1], [], []>} : vector<8x256xbf16>, vector<256x512xbf16>, vector<8x512xf32> -> vector<8x512xf32>
    %c0_18 = arith.constant 0 : index
    %c0_19 = arith.constant 0 : index
    %c0_20 = arith.constant 0 : index
    %24 = vector.load %arg7[%c0_18, %c0_19, %c0_20] : memref<3x1x512xf32, #tpu.memory_space<vmem>>, vector<1x1x512xf32>
    %25 = vector.shape_cast %24 : vector<1x1x512xf32> to vector<1x512xf32>
    %26 = vector.broadcast %25 : vector<1x512xf32> to vector<8x512xf32>
    %27 = arith.addf %23, %26 : vector<8x512xf32>
    %c0_21 = arith.constant 0 : index
    %c0_22 = arith.constant 0 : index
    %28 = vector.load %arg8[%c0_21, %c0_22] : memref<8x1536xf32, #tpu.memory_space<vmem>>, vector<8x512xf32>
    tpu.vector_store %arg8[%c0_21, %c0_22], %27 {strides = array<i32>} : memref<8x1536xf32, #tpu.memory_space<vmem>>, vector<8x512xf32>,
    %29 = vector.extract_strided_slice %9 {offsets = [0, 512], sizes = [8, 512], strides = [1, 1]} : vector<8x1536xbf16> to vector<8x512xbf16>
    %c1 = arith.constant 1 : index
    %c0_23 = arith.constant 0 : index
    %c0_24 = arith.constant 0 : index
    %30 = vector.load %arg4[%c1, %c0_23, %c0_24] : memref<3x512x256xbf16, #tpu.memory_space<vmem>>, vector<1x512x256xbf16>
    %31 = vector.shape_cast %30 : vector<1x512x256xbf16> to vector<512x256xbf16>
    %cst_25 = arith.constant dense<0.000000e+00> : vector<8x256xf32>
    %32 = tpu.matmul %29, %31, %cst_25 {dimension_numbers = #tpu.dot_dimension_numbers<[1], [0], [0], [1], [0, 0, 1, 1], [], []>} : vector<8x512xbf16>, vector<512x256xbf16>, vector<8x256xf32> -> vector<8x256xf32>
    %c1_26 = arith.constant 1 : index
    %c0_27 = arith.constant 0 : index
    %c0_28 = arith.constant 0 : index
    %33 = vector.load %arg5[%c1_26, %c0_27, %c0_28] : memref<3x1x256xf32, #tpu.memory_space<vmem>>, vector<1x1x256xf32>
    %34 = vector.shape_cast %33 : vector<1x1x256xf32> to vector<1x256xf32>
    %35 = vector.broadcast %34 : vector<1x256xf32> to vector<8x256xf32>
    %36 = arith.addf %32, %35 : vector<8x256xf32>
    %cst_29 = arith.constant 0.000000e+00 : f32
    %37 = vector.broadcast %cst_29 : f32 to vector<8x256xf32>
    %38 = arith.maximumf %36, %37 : vector<8x256xf32>
    %39 = arith.truncf %38 : vector<8x256xf32> to vector<8x256xbf16>
    %c1_30 = arith.constant 1 : index
    %c0_31 = arith.constant 0 : index
    %c0_32 = arith.constant 0 : index
    %40 = vector.load %arg6[%c1_30, %c0_31, %c0_32] : memref<3x256x512xbf16, #tpu.memory_space<vmem>>, vector<1x256x512xbf16>
    %41 = vector.shape_cast %40 : vector<1x256x512xbf16> to vector<256x512xbf16>
    %cst_33 = arith.constant dense<0.000000e+00> : vector<8x512xf32>
    %42 = tpu.matmul %39, %41, %cst_33 {dimension_numbers = #tpu.dot_dimension_numbers<[1], [0], [0], [1], [0, 0, 1, 1], [], []>} : vector<8x256xbf16>, vector<256x512xbf16>, vector<8x512xf32> -> vector<8x512xf32>
    %c1_34 = arith.constant 1 : index
    %c0_35 = arith.constant 0 : index
    %c0_36 = arith.constant 0 : index
    %43 = vector.load %arg7[%c1_34, %c0_35, %c0_36] : memref<3x1x512xf32, #tpu.memory_space<vmem>>, vector<1x1x512xf32>
    %44 = vector.shape_cast %43 : vector<1x1x512xf32> to vector<1x512xf32>
    %45 = vector.broadcast %44 : vector<1x512xf32> to vector<8x512xf32>
    %46 = arith.addf %42, %45 : vector<8x512xf32>
    %c0_37 = arith.constant 0 : index
    %c512 = arith.constant 512 : index
    %47 = vector.load %arg8[%c0_37, %c512] : memref<8x1536xf32, #tpu.memory_space<vmem>>, vector<8x512xf32>
    tpu.vector_store %arg8[%c0_37, %c512], %46 {strides = array<i32>} : memref<8x1536xf32, #tpu.memory_space<vmem>>, vector<8x512xf32>,
    %48 = vector.extract_strided_slice %9 {offsets = [0, 1024], sizes = [8, 512], strides = [1, 1]} : vector<8x1536xbf16> to vector<8x512xbf16>
    %c2 = arith.constant 2 : index
    %c0_38 = arith.constant 0 : index
    %c0_39 = arith.constant 0 : index
    %49 = vector.load %arg4[%c2, %c0_38, %c0_39] : memref<3x512x256xbf16, #tpu.memory_space<vmem>>, vector<1x512x256xbf16>
    %50 = vector.shape_cast %49 : vector<1x512x256xbf16> to vector<512x256xbf16>
    %cst_40 = arith.constant dense<0.000000e+00> : vector<8x256xf32>
    %51 = tpu.matmul %48, %50, %cst_40 {dimension_numbers = #tpu.dot_dimension_numbers<[1], [0], [0], [1], [0, 0, 1, 1], [], []>} : vector<8x512xbf16>, vector<512x256xbf16>, vector<8x256xf32> -> vector<8x256xf32>
    %c2_41 = arith.constant 2 : index
    %c0_42 = arith.constant 0 : index
    %c0_43 = arith.constant 0 : index
    %52 = vector.load %arg5[%c2_41, %c0_42, %c0_43] : memref<3x1x256xf32, #tpu.memory_space<vmem>>, vector<1x1x256xf32>
    %53 = vector.shape_cast %52 : vector<1x1x256xf32> to vector<1x256xf32>
    %54 = vector.broadcast %53 : vector<1x256xf32> to vector<8x256xf32>
    %55 = arith.addf %51, %54 : vector<8x256xf32>
    %cst_44 = arith.constant 0.000000e+00 : f32
    %56 = vector.broadcast %cst_44 : f32 to vector<8x256xf32>
    %57 = arith.maximumf %55, %56 : vector<8x256xf32>
    %58 = arith.truncf %57 : vector<8x256xf32> to vector<8x256xbf16>
    %c2_45 = arith.constant 2 : index
    %c0_46 = arith.constant 0 : index
    %c0_47 = arith.constant 0 : index
    %59 = vector.load %arg6[%c2_45, %c0_46, %c0_47] : memref<3x256x512xbf16, #tpu.memory_space<vmem>>, vector<1x256x512xbf16>
    %60 = vector.shape_cast %59 : vector<1x256x512xbf16> to vector<256x512xbf16>
    %cst_48 = arith.constant dense<0.000000e+00> : vector<8x512xf32>
    %61 = tpu.matmul %58, %60, %cst_48 {dimension_numbers = #tpu.dot_dimension_numbers<[1], [0], [0], [1], [0, 0, 1, 1], [], []>} : vector<8x256xbf16>, vector<256x512xbf16>, vector<8x512xf32> -> vector<8x512xf32>
    %c2_49 = arith.constant 2 : index
    %c0_50 = arith.constant 0 : index
    %c0_51 = arith.constant 0 : index
    %62 = vector.load %arg7[%c2_49, %c0_50, %c0_51] : memref<3x1x512xf32, #tpu.memory_space<vmem>>, vector<1x1x512xf32>
    %63 = vector.shape_cast %62 : vector<1x1x512xf32> to vector<1x512xf32>
    %64 = vector.broadcast %63 : vector<1x512xf32> to vector<8x512xf32>
    %65 = arith.addf %61, %64 : vector<8x512xf32>
    %c0_52 = arith.constant 0 : index
    %c1024 = arith.constant 1024 : index
    %66 = vector.load %arg8[%c0_52, %c1024] : memref<8x1536xf32, #tpu.memory_space<vmem>>, vector<8x512xf32>
    tpu.vector_store %arg8[%c0_52, %c1024], %65 {strides = array<i32>} : memref<8x1536xf32, #tpu.memory_space<vmem>>, vector<8x512xf32>,
    return
  }
  func.func @transform_0(%arg0: i32) -> (i32, i32) {
    %c0_i32 = arith.constant 0 : i32
    %c0_i32_0 = arith.constant 0 : i32
    return %arg0, %c0_i32 : i32, i32
  }
  func.func @transform_1(%arg0: i32) -> (i32, i32) {
    %c0_i32 = arith.constant 0 : i32
    %c0_i32_0 = arith.constant 0 : i32
    %c0_i32_1 = arith.constant 0 : i32
    return %c0_i32, %c0_i32_0 : i32, i32
  }
  func.func @transform_2(%arg0: i32) -> (i32, i32) {
    %c0_i32 = arith.constant 0 : i32
    %c0_i32_0 = arith.constant 0 : i32
    %c0_i32_1 = arith.constant 0 : i32
    return %c0_i32, %c0_i32_0 : i32, i32
  }
  func.func @transform_3(%arg0: i32) -> (i32, i32, i32) {
    %c0_i32 = arith.constant 0 : i32
    %c0_i32_0 = arith.constant 0 : i32
    %c0_i32_1 = arith.constant 0 : i32
    %c0_i32_2 = arith.constant 0 : i32
    return %c0_i32, %c0_i32_0, %c0_i32_1 : i32, i32, i32
  }
  func.func @transform_4(%arg0: i32) -> (i32, i32, i32) {
    %c0_i32 = arith.constant 0 : i32
    %c0_i32_0 = arith.constant 0 : i32
    %c0_i32_1 = arith.constant 0 : i32
    %c0_i32_2 = arith.constant 0 : i32
    return %c0_i32, %c0_i32_0, %c0_i32_1 : i32, i32, i32
  }
  func.func @transform_5(%arg0: i32) -> (i32, i32, i32) {
    %c0_i32 = arith.constant 0 : i32
    %c0_i32_0 = arith.constant 0 : i32
    %c0_i32_1 = arith.constant 0 : i32
    %c0_i32_2 = arith.constant 0 : i32
    return %c0_i32, %c0_i32_0, %c0_i32_1 : i32, i32, i32
  }
  func.func @transform_6(%arg0: i32) -> (i32, i32, i32) {
    %c0_i32 = arith.constant 0 : i32
    %c0_i32_0 = arith.constant 0 : i32
    %c0_i32_1 = arith.constant 0 : i32
    %c0_i32_2 = arith.constant 0 : i32
    return %c0_i32, %c0_i32_0, %c0_i32_1 : i32, i32, i32
  }
  func.func @transform_7(%arg0: i32) -> (i32, i32) {
    %c0_i32 = arith.constant 0 : i32
    %c0_i32_0 = arith.constant 0 : i32
    return %arg0, %c0_i32 : i32, i32
  }
}

</mosaic_0001>

<bundles_post_ra>
// kernel: alpha_net_forward.1
= control target key start
LH: loop header
LB: loop body
LE: loop exit
PB: predicated region body
PF: predicated region fallthrough
CT: control target
= control target key end

     0   :  { %12 = vsyncpa [#allocation3], 0  ;;  %s8430_s0 = inlined_call_operand.hbm [shape: f32[8,512], index: 0, kind: input, shape index: {}]   ;;  %s8431_s1 = inlined_call_operand.hbm [shape: bf16[512,1536], index: 1, kind: input, shape index: {}]   ;;  %s8432_s2 = inlined_call_operand.hbm [shape: f32[1,1536], index: 2, kind: input, shape index: {}]   ;;  %s8433_s3 = inlined_call_operand.hbm [shape: bf16[3,512,256], index: 3, kind: input, shape index: {}]   ;;  %s8434_s4 = inlined_call_operand.hbm [shape: f32[3,1,256], index: 4, kind: input, shape index: {}]   ;;  %s8435_s5 = inlined_call_operand.hbm [shape: bf16[3,256,512], index: 5, kind: input, shape index: {}]   ;;  %s8436_s6 = inlined_call_operand.hbm [shape: f32[3,1,512], index: 6, kind: input, shape index: {}]   ;;  %s8437_s7 = inlined_call_operand.hbm [shape: f32[8,1536], index: 7, kind: output, shape index: {}]  }
   0x1   :  { %13 = vsyncpa [#allocation6], 0 }
   0x2   :  { %14 = vsyncpa [#allocation9], 0 }
   0x3   :  { %15 = vsyncpa [#allocation12], 0 }
   0x4   :  { %16 = vsyncpa [#allocation4], 0  ;;  %s8137_s24 = smov [#allocation5]   ;;  %s7951_s28 = scalar_lea.hbm %s8431_s1, 49152 }
   0x5   :  { %s32_s25 = sshll.u32 %s8137_s24, 4  ;;  %p7952_p0 = scmp.ne.s32.totalorder %s8431_s1, %s7951_s28  ;;  %s33_s25 = int_to_ptr.vmem [resolvable:$true] %s32_s25 }
   0x6   :  { %p7955_p1 = scmp.lt.u32.totalorder %s7951_s28, %s8431_s1 }
   0x8   :  { %p7957_p2 = pnand %p7955_p1, %p7952_p0 }
   0xa   :  { %7960 = shalt.err (!%p7957_p2)
}
   0xb   :  { %s7961_s10 = scalar_lea.vmem %s33_s25, 49152  ;;  %p7966_p4 = scmp.lt.s32.totalorder %s33_s25, %s33_s25 }
   0xc   :  { %p7962_p3 = scmp.ne.s32.totalorder %s33_s25, %s7961_s10  ;;  %p7967_p5 = scmp.lt.s32.totalorder %s7961_s10, %s7961_s10 }
   0xe   :  { %p7968_p6 = por %p7967_p5, %p7966_p4 }
  0x10   :  { %p7969_p7 = pnand %p7968_p6, %p7962_p3 }
  0x12   :  { %7972 = shalt.err (!%p7969_p7)
}
  0x13   :  { %s8138_s11 = smov 768   ;;  %s8139_s12 = smov 48  }
  0x14   :  { %38 = dma.hbm_to_vmem [thread:$0]  %s8431_s1, 49152, %s33_s25, [#allocation6], %s8138_s11, %s8138_s11, %s8139_s12  }
  0x15   :  { %s8140_s15 = smov [#allocation8]   ;;  %s7973_s19 = scalar_lea.hbm %s8433_s3, 24576 }
  0x16   :  { %s54_s16 = sshll.u32 %s8140_s15, 4  ;;  %p7974_p8 = scmp.ne.s32.totalorder %s8433_s3, %s7973_s19  ;;  %s55_s16 = int_to_ptr.vmem [resolvable:$true] %s54_s16 }
  0x17   :  { %p7977_p9 = scmp.lt.u32.totalorder %s7973_s19, %s8433_s3 }
  0x19   :  { %p7979_p10 = pnand %p7977_p9, %p7974_p8 }
  0x1b   :  { %7982 = shalt.err (!%p7979_p10)
}
  0x1c   :  { %s7983_s24 = scalar_lea.vmem %s55_s16, 24576  ;;  %p7988_p12 = scmp.lt.s32.totalorder %s55_s16, %s55_s16 }
  0x1d   :  { %p7984_p11 = scmp.ne.s32.totalorder %s55_s16, %s7983_s24  ;;  %p7989_p13 = scmp.lt.s32.totalorder %s7983_s24, %s7983_s24 }
  0x1f   :  { %p7990_p0 = por %p7989_p13, %p7988_p12 }
  0x21   :  { %p7991_p1 = pnand %p7990_p0, %p7984_p11 }
  0x23   :  { %7994 = shalt.err (!%p7991_p1)
}
  0x24   :  { %s8141_s1 = smov 128   ;;  %s8142_s25 = smov 8  }
  0x25   :  { %60 = dma.hbm_to_vmem [thread:$0]  %s8433_s3, 24576, %s55_s16, [#allocation9], %s8141_s1, %s8141_s1, %s8142_s25  }
  0x26   :  { %s8143_s28 = smov [#allocation11]   ;;  %s7995_s9 = scalar_lea.hbm %s8435_s5, 24576 }
  0x27   :  { %s78_s29 = sshll.u32 %s8143_s28, 4  ;;  %p7996_p2 = scmp.ne.s32.totalorder %s8435_s5, %s7995_s9  ;;  %s79_s29 = int_to_ptr.vmem [resolvable:$true] %s78_s29 }
  0x28   :  { %p7999_p3 = scmp.lt.u32.totalorder %s7995_s9, %s8435_s5 }
  0x2a   :  { %p8001_p4 = pnand %p7999_p3, %p7996_p2 }
  0x2c   :  { %8004 = shalt.err (!%p8001_p4)
}
  0x2d   :  { %s8005_s14 = scalar_lea.vmem %s79_s29, 24576  ;;  %p8010_p6 = scmp.lt.s32.totalorder %s79_s29, %s79_s29 }
  0x2e   :  { %p8006_p5 = scmp.ne.s32.totalorder %s79_s29, %s8005_s14  ;;  %p8011_p7 = scmp.lt.s32.totalorder %s8005_s14, %s8005_s14 }
  0x30   :  { %p8012_p8 = por %p8011_p7, %p8010_p6 }
  0x32   :  { %p8013_p9 = pnand %p8012_p8, %p8006_p5 }
  0x34   :  { %8016 = shalt.err (!%p8013_p9)
}
  0x35   :  { %s8144_s3 = smov 256   ;;  %s8145_s15 = smov 16  }
  0x36   :  { %84 = dma.hbm_to_vmem [thread:$0]  %s8435_s5, 24576, %s79_s29, [#allocation12], %s8144_s3, %s8144_s3, %s8145_s15  }
  0x37   :  { %s8146_s18 = smov [#allocation2]   ;;  %s8147_s20 = smov [#allocation7]  }
  0x38   :  { %s23_s19 = sshll.u32 %s8146_s18, 4  ;;  %s45_s21 = sshll.u32 %s8147_s20, 4  ;;  %s24_s19 = int_to_ptr.vmem [resolvable:$true] %s23_s19  ;;  %s46_s21 = int_to_ptr.vmem [resolvable:$true] %s45_s21 }
  0x39   :  { %s8017_s24 = scalar_lea.hbm %s8430_s0, 512 }
  0x3a   :  { %p8018_p10 = scmp.ne.s32.totalorder %s8430_s0, %s8017_s24  ;;  %p8021_p11 = scmp.lt.u32.totalorder %s8017_s24, %s8430_s0 }
  0x3c   :  { %p8023_p12 = pnand %p8021_p11, %p8018_p10 }
  0x3e   :  { %8026 = shalt.err (!%p8023_p12)
}
  0x3f   :  { %s8027_s5 = scalar_lea.vmem %s24_s19, 512  ;;  %p8032_p0 = scmp.lt.s32.totalorder %s24_s19, %s24_s19 }
  0x40   :  { %p8028_p13 = scmp.ne.s32.totalorder %s24_s19, %s8027_s5  ;;  %p8033_p1 = scmp.lt.s32.totalorder %s8027_s5, %s8027_s5 }
  0x42   :  { %p8034_p2 = por %p8033_p1, %p8032_p0 }
  0x44   :  { %p8035_p3 = pnand %p8034_p2, %p8028_p13 }
  0x46   :  { %8038 = shalt.err (!%p8035_p3)
}
  0x47   :  { %26 = dma.hbm_to_vmem [thread:$0]  %s8430_s0, 512, %s24_s19, [#allocation3]  }
  0x48   :  { %s8039_s9 = scalar_lea.hbm %s8432_s2, 192 }
  0x49   :  { %p8040_p4 = scmp.ne.s32.totalorder %s8432_s2, %s8039_s9  ;;  %p8043_p5 = scmp.lt.u32.totalorder %s8039_s9, %s8432_s2 }
  0x4b   :  { %p8045_p6 = pnand %p8043_p5, %p8040_p4 }
  0x4d   :  { %8048 = shalt.err (!%p8045_p6)
}
  0x4e   :  { %s8049_s14 = scalar_lea.vmem %s46_s21, 192  ;;  %p8054_p8 = scmp.lt.s32.totalorder %s46_s21, %s46_s21 }
  0x4f   :  { %p8050_p7 = scmp.ne.s32.totalorder %s46_s21, %s8049_s14  ;;  %p8055_p9 = scmp.lt.s32.totalorder %s8049_s14, %s8049_s14 }
  0x51   :  { %p8056_p10 = por %p8055_p9, %p8054_p8 }
  0x53   :  { %p8057_p11 = pnand %p8056_p10, %p8050_p7 }
  0x55   :  { %8060 = shalt.err (!%p8057_p11)
}
  0x56   :  { %48 = dma.hbm_to_vmem [thread:$0]  %s8432_s2, 192, %s46_s21, [#allocation6]  }
  0x57   :  { %s8148_s15 = smov [#allocation10]   ;;  %s8061_s19 = scalar_lea.hbm %s8434_s4, 96 }
  0x58   :  { %s66_s16 = sshll.u32 %s8148_s15, 4  ;;  %p8062_p12 = scmp.ne.s32.totalorder %s8434_s4, %s8061_s19  ;;  %s67_s16 = int_to_ptr.vmem [resolvable:$true] %s66_s16 }
  0x59   :  { %p8065_p13 = scmp.lt.u32.totalorder %s8061_s19, %s8434_s4 }
  0x5b   :  { %p8067_p0 = pnand %p8065_p13, %p8062_p12 }
  0x5d   :  { %8070 = shalt.err (!%p8067_p0)
}
  0x5e   :  { %s8071_s1 = scalar_lea.vmem %s67_s16, 96  ;;  %p8076_p2 = scmp.lt.s32.totalorder %s67_s16, %s67_s16 }
  0x5f   :  { %p8072_p1 = scmp.ne.s32.totalorder %s67_s16, %s8071_s1  ;;  %p8077_p3 = scmp.lt.s32.totalorder %s8071_s1, %s8071_s1 }
  0x61   :  { %p8078_p4 = por %p8077_p3, %p8076_p2 }
  0x63   :  { %p8079_p5 = pnand %p8078_p4, %p8072_p1 }
  0x65   :  { %8082 = shalt.err (!%p8079_p5)
}
  0x66   :  { %s8149_s2 = smov 32   ;;  %s8150_s21 = smov 2  }
  0x67   :  { %72 = dma.hbm_to_vmem [thread:$0]  %s8434_s4, 96, %s67_s16, [#allocation9], %s8149_s2, %s8149_s2, %s8150_s21  }
  0x68   :  { %s8151_s27 = smov [#allocation13]   ;;  %s8083_s30 = scalar_lea.hbm %s8436_s6, 192 }
  0x69   :  { %s90_s5 = sshll.u32 %s8151_s27, 4  ;;  %p8084_p6 = scmp.ne.s32.totalorder %s8436_s6, %s8083_s30  ;;  %s91_s5 = int_to_ptr.vmem [resolvable:$true] %s90_s5 }
  0x6a   :  { %p8087_p7 = scmp.lt.u32.totalorder %s8083_s30, %s8436_s6 }
  0x6c   :  { %p8089_p8 = pnand %p8087_p7, %p8084_p6 }
  0x6e   :  { %8092 = shalt.err (!%p8089_p8)
}
  0x6f   :  { %s8093_s12 = scalar_lea.vmem %s91_s5, 192  ;;  %p8098_p10 = scmp.lt.s32.totalorder %s91_s5, %s91_s5 }
  0x70   :  { %p8094_p9 = scmp.ne.s32.totalorder %s91_s5, %s8093_s12  ;;  %p8099_p11 = scmp.lt.s32.totalorder %s8093_s12, %s8093_s12 }
  0x72   :  { %p8100_p12 = por %p8099_p11, %p8098_p10 }
  0x74   :  { %p8101_p13 = pnand %p8100_p12, %p8094_p9 }
  0x76   :  { %8104 = shalt.err (!%p8101_p13)
}
  0x77   :  { %s8152_s4 = smov 64   ;;  %s8153_s13 = smov 4  }
  0x78   :  { %96 = dma.hbm_to_vmem [thread:$0]  %s8436_s6, 192, %s91_s5, [#allocation12], %s8152_s4, %s8152_s4, %s8153_s13  }
  0x79   :  { %8127 = dma.done.wait [#allocation3], 512  }
  0x7a   :  { %8128 = vsyncadd [#allocation3], 4294966784 }
  0x7b   :  { %8129 = dma.done.wait [#allocation6], 49344  }
  0x7c   :  { %8130 = vsyncadd [#allocation6], 4294917952 }
  0x7d   :  { %8131 = dma.done.wait [#allocation9], 24672  }
  0x7e   :  { %8132 = vsyncadd [#allocation9], 4294942624 }
  0x7f   :  { %8133 = dma.done.wait [#allocation12], 24768  }
  0x80   :  { %8134 = vsyncadd [#allocation12], 4294942528  ;;  %v6798_v0 = vld [vmem:[#allocation5 + $0x4] ss:$48 sps:$4 sm:$0xff]   ;;  %v6800_v1 = vld [vmem:[#allocation5] ss:$48 sps:$4 sm:$0xff]  }
  0x81   :  { %2494 = vmatprep.subr.bf16.mxu0 %v6798_v0  ;;  %v6801_v2 = vld [vmem:[#allocation5 + $0x64] ss:$48 sps:$4 sm:$0xff]   ;;  %v6803_v3 = vld [vmem:[#allocation5 + $0x60] ss:$48 sps:$4 sm:$0xff]   ;;  %v119_v13 = vld [vmem:[#allocation2 + $0x8] sm:$0xff]  ;;  %s8154_s6 = smov [#allocation14]  }
  0x82   :  { %2495 = vmatpush1.bf16.msra.mxu0 %v6800_v1  ;;  %v6804_v4 = vld [vmem:[#allocation5 + $0xc4] ss:$48 sps:$4 sm:$0xff]   ;;  %v6806_v5 = vld [vmem:[#allocation5 + $0xc0] ss:$48 sps:$4 sm:$0xff]   ;;  %v8279_v14 = vpack.c.bf16 %v119_v13, %v119_v13  ;;  %v6873_v22 = vld [vmem:[#allocation5 + $0xc] ss:$48 sps:$4 sm:$0xff]  }
  0x83   :  { %2496 = vmatprep.subr.bf16.mxu0 %v6801_v2  ;;  %v6807_v6 = vld [vmem:[#allocation5 + $0x124] ss:$48 sps:$4 sm:$0xff]   ;;  %v6809_v7 = vld [vmem:[#allocation5 + $0x120] ss:$48 sps:$4 sm:$0xff]   ;;  %v6875_v23 = vld [vmem:[#allocation5 + $0x8] ss:$48 sps:$4 sm:$0xff]   ;;  %2576 = vmatprep.subr.bf16.mxu1 %v6873_v22 }
  0x84   :  { %v6810_v8 = vld [vmem:[#allocation5 + $0x184] ss:$48 sps:$4 sm:$0xff]   ;;  %v6812_v9 = vld [vmem:[#allocation5 + $0x180] ss:$48 sps:$4 sm:$0xff]   ;;  %2526 = vmatprep.mubr.bf16.mxu0 %v8279_v14  ;;  %2608 = vmatprep.mubr.bf16.mxu1 %v8279_v14  ;;  %v6879_v25 = vld [vmem:[#allocation5 + $0x6c] ss:$48 sps:$4 sm:$0xff]  }
  0x85   :  { %v6813_v10 = vld [vmem:[#allocation5 + $0x1e4] ss:$48 sps:$4 sm:$0xff]   ;;  %v6815_v11 = vld [vmem:[#allocation5 + $0x1e0] ss:$48 sps:$4 sm:$0xff]   ;;  %2577 = vmatpush1.bf16.msra.mxu1 %v6875_v23  ;;  %v6881_v26 = vld [vmem:[#allocation5 + $0x68] ss:$48 sps:$4 sm:$0xff]  }
  0x86   :  { %2497 = vmatpush1.bf16.msra.mxu0 %v6803_v3  ;;  %v6816_v12 = vld [vmem:[#allocation5 + $0x244] ss:$48 sps:$4 sm:$0xff]   ;;  %v6818_v15 = vld [vmem:[#allocation5 + $0x240] ss:$48 sps:$4 sm:$0xff]   ;;  %2578 = vmatprep.subr.bf16.mxu1 %v6879_v25  ;;  %v6885_v29 = vld [vmem:[#allocation5 + $0xcc] ss:$48 sps:$4 sm:$0xff]  }
  0x87   :  { %2498 = vmatprep.subr.bf16.mxu0 %v6804_v4  ;;  %v6819_v16 = vld [vmem:[#allocation5 + $0x2a4] ss:$48 sps:$4 sm:$0xff]   ;;  %v6821_v17 = vld [vmem:[#allocation5 + $0x2a0] ss:$48 sps:$4 sm:$0xff]   ;;  %v6887_v30 = vld [vmem:[#allocation5 + $0xc8] ss:$48 sps:$4 sm:$0xff]  }
  0x88   :  { %v6822_v18 = vld [vmem:[#allocation5 + $0x304] ss:$48 sps:$4 sm:$0xff]   ;;  %v6824_v19 = vld [vmem:[#allocation5 + $0x300] ss:$48 sps:$4 sm:$0xff]   ;;  %v6891_v31 = vld [vmem:[#allocation5 + $0x12c] ss:$48 sps:$4 sm:$0xff]  }
  0x89   :  { %v6825_v20 = vld [vmem:[#allocation5 + $0x364] ss:$48 sps:$4 sm:$0xff]   ;;  %v6827_v21 = vld [vmem:[#allocation5 + $0x360] ss:$48 sps:$4 sm:$0xff]   ;;  %2579 = vmatpush1.bf16.msra.mxu1 %v6881_v26  ;;  %v6893_v34 = vld [vmem:[#allocation5 + $0x128] ss:$48 sps:$4 sm:$0xff]  }
  0x8a   :  { %2499 = vmatpush1.bf16.msra.mxu0 %v6806_v5  ;;  %v6828_v24 = vld [vmem:[#allocation5 + $0x3c4] ss:$48 sps:$4 sm:$0xff]   ;;  %v6830_v27 = vld [vmem:[#allocation5 + $0x3c0] ss:$48 sps:$4 sm:$0xff]   ;;  %2580 = vmatprep.subr.bf16.mxu1 %v6885_v29  ;;  %v6897_v35 = vld [vmem:[#allocation5 + $0x18c] ss:$48 sps:$4 sm:$0xff]  }
  0x8b   :  { %2500 = vmatprep.subr.bf16.mxu0 %v6807_v6  ;;  %v6831_v28 = vld [vmem:[#allocation5 + $0x424] ss:$48 sps:$4 sm:$0xff]   ;;  %v6833_v32 = vld [vmem:[#allocation5 + $0x420] ss:$48 sps:$4 sm:$0xff]   ;;  %v6899_v38 = vld [vmem:[#allocation5 + $0x188] ss:$48 sps:$4 sm:$0xff]  }
  0x8c   :  { %v6834_v33 = vld [vmem:[#allocation5 + $0x484] ss:$48 sps:$4 sm:$0xff]   ;;  %v6836_v36 = vld [vmem:[#allocation5 + $0x480] ss:$48 sps:$4 sm:$0xff]   ;;  %v6903_v39 = vld [vmem:[#allocation5 + $0x1ec] ss:$48 sps:$4 sm:$0xff]  }
  0x8d   :  { %2581 = vmatpush1.bf16.msra.mxu1 %v6887_v30  ;;  %v6837_v37 = vld [vmem:[#allocation5 + $0x4e4] ss:$48 sps:$4 sm:$0xff]   ;;  %v6839_v40 = vld [vmem:[#allocation5 + $0x4e0] ss:$48 sps:$4 sm:$0xff]   ;;  %v6905_v42 = vld [vmem:[#allocation5 + $0x1e8] ss:$48 sps:$4 sm:$0xff]  }
  0x8e   :  { %2501 = vmatpush1.bf16.msra.mxu0 %v6809_v7  ;;  %2582 = vmatprep.subr.bf16.mxu1 %v6891_v31  ;;  %v6840_v41 = vld [vmem:[#allocation5 + $0x544] ss:$48 sps:$4 sm:$0xff]   ;;  %v6909_v43 = vld [vmem:[#allocation5 + $0x24c] ss:$48 sps:$4 sm:$0xff]   ;;  %v6842_v44 = vld [vmem:[#allocation5 + $0x540] ss:$48 sps:$4 sm:$0xff]  }
  0x8f   :  { %2502 = vmatprep.subr.bf16.mxu0 %v6810_v8  ;;  %v6843_v45 = vld [vmem:[#allocation5 + $0x5a4] ss:$48 sps:$4 sm:$0xff]   ;;  %v6911_v46 = vld [vmem:[#allocation5 + $0x248] ss:$48 sps:$4 sm:$0xff]   ;;  %v6845_v47 = vld [vmem:[#allocation5 + $0x5a0] ss:$48 sps:$4 sm:$0xff]  }
  0x90   :  { %v6915_v48 = vld [vmem:[#allocation5 + $0x2ac] ss:$48 sps:$4 sm:$0xff]   ;;  %v6848_v49 = vld [vmem:[#allocation5 + $0x604] ss:$48 sps:$4 sm:$0xff]   ;;  %v6917_v52 = vld [vmem:[#allocation5 + $0x2a8] ss:$48 sps:$4 sm:$0xff]  }
  0x91   :  { %2583 = vmatpush1.bf16.msra.mxu1 %v6893_v34  ;;  %v118_v50 = vld [vmem:[#allocation2] sm:$0xff]  ;;  %v121_v51 = vld [vmem:[#allocation2 + $0x18] sm:$0xff]  ;;  %s5946_s3 = sshll.u32 %s8154_s6, 4  ;;  %s5947_s3 = int_to_ptr.vmem [resolvable:$true] %s5946_s3 }
  0x92   :  { %2503 = vmatpush1.bf16.msra.mxu0 %v6812_v9  ;;  %2584 = vmatprep.subr.bf16.mxu1 %v6897_v35  ;;  %v8283_v53 = vpack.c.bf16 %v118_v50, %v118_v50  ;;  %v6921_v54 = vld [vmem:[#allocation5 + $0x30c] ss:$48 sps:$4 sm:$0xff]   ;;  %v6846_v55 = vld [vmem:[#allocation5 + $0x600] ss:$48 sps:$4 sm:$0xff]   ;;  %v8285_v56 = vpack.c.bf16 %v121_v51, %v121_v51  ;;  %v6851_v57 = vld [vmem:[#allocation5 + $0x664] ss:$48 sps:$4 sm:$0xff]   ;;  %p8110_p1 = scmp.lt.s32.totalorder %s5947_s3, %s5947_s3 }
  0x93   :  { %2504 = vmatprep.subr.bf16.mxu0 %v6813_v10  ;;  %v6923_v58 = vld [vmem:[#allocation5 + $0x308] ss:$48 sps:$4 sm:$0xff]   ;;  %v6927_v59 = vld [vmem:[#allocation5 + $0x36c] ss:$48 sps:$4 sm:$0xff]   ;;  %v6849_v60 = vld [vmem:[#allocation5 + $0x660] ss:$48 sps:$4 sm:$0xff]  }
  0x94   :  { %v6854_v61 = vld [vmem:[#allocation5 + $0x6c4] ss:$48 sps:$4 sm:$0xff]   ;;  %v6929_v62 = vld [vmem:[#allocation5 + $0x368] ss:$48 sps:$4 sm:$0xff]   ;;  %v6933_v63 = vld [vmem:[#allocation5 + $0x3cc] ss:$48 sps:$4 sm:$0xff]  }
  0x95   :  { %2585 = vmatpush1.bf16.msra.mxu1 %v6899_v38  ;;  %v6852_v0 = vld [vmem:[#allocation5 + $0x6c0] ss:$48 sps:$4 sm:$0xff]   ;;  %v6857_v1 = vld [vmem:[#allocation5 + $0x724] ss:$48 sps:$4 sm:$0xff]   ;;  %v6935_v2 = vld [vmem:[#allocation5 + $0x3c8] ss:$48 sps:$4 sm:$0xff]  }
  0x96   :  { %2505 = vmatpush1.bf16.msra.mxu0 %v6815_v11  ;;  %2586 = vmatprep.subr.bf16.mxu1 %v6903_v39  ;;  %v6939_v3 = vld [vmem:[#allocation5 + $0x42c] ss:$48 sps:$4 sm:$0xff]   ;;  %v6855_v4 = vld [vmem:[#allocation5 + $0x720] ss:$48 sps:$4 sm:$0xff]   ;;  %v6860_v5 = vld [vmem:[#allocation5 + $0x784] ss:$48 sps:$4 sm:$0xff]  }
  0x97   :  { %2506 = vmatprep.subr.bf16.mxu0 %v6816_v12  ;;  %v6941_v6 = vld [vmem:[#allocation5 + $0x428] ss:$48 sps:$4 sm:$0xff]   ;;  %v6945_v7 = vld [vmem:[#allocation5 + $0x48c] ss:$48 sps:$4 sm:$0xff]   ;;  %v6858_v8 = vld [vmem:[#allocation5 + $0x780] ss:$48 sps:$4 sm:$0xff]  }
  0x98   :  { %v6863_v9 = vld [vmem:[#allocation5 + $0x7e4] ss:$48 sps:$4 sm:$0xff]   ;;  %v6947_v10 = vld [vmem:[#allocation5 + $0x488] ss:$48 sps:$4 sm:$0xff]   ;;  %v6951_v11 = vld [vmem:[#allocation5 + $0x4ec] ss:$48 sps:$4 sm:$0xff]  }
  0x99   :  { %2587 = vmatpush1.bf16.msra.mxu1 %v6905_v42  ;;  %v6861_v12 = vld [vmem:[#allocation5 + $0x7e0] ss:$48 sps:$4 sm:$0xff]   ;;  %v6866_v13 = vld [vmem:[#allocation5 + $0x844] ss:$48 sps:$4 sm:$0xff]   ;;  %v6965_v23 = vld [vmem:[#allocation5 + $0x5a8] ss:$48 sps:$4 sm:$0xff]  }
  0x9a   :  { %2507 = vmatpush1.bf16.msra.mxu0 %v6818_v15  ;;  %2588 = vmatprep.subr.bf16.mxu1 %v6909_v43  ;;  %v6953_v15 = vld [vmem:[#allocation5 + $0x4e8] ss:$48 sps:$4 sm:$0xff]   ;;  %v6872_v22 = vld [vmem:[#allocation5 + $0x904] ss:$48 sps:$4 sm:$0xff]   ;;  %v6870_v25 = vld [vmem:[#allocation5 + $0x900] ss:$48 sps:$4 sm:$0xff]  }
  0x9b   :  { %2508 = vmatprep.subr.bf16.mxu0 %v6819_v16  ;;  %v6957_v16 = vld [vmem:[#allocation5 + $0x54c] ss:$48 sps:$4 sm:$0xff]   ;;  %v6878_v26 = vld [vmem:[#allocation5 + $0x964] ss:$48 sps:$4 sm:$0xff]   ;;  %v6876_v29 = vld [vmem:[#allocation5 + $0x960] ss:$48 sps:$4 sm:$0xff]  }
  0x9c   :  { %v6884_v30 = vld [vmem:[#allocation5 + $0x9c4] ss:$48 sps:$4 sm:$0xff]   ;;  %v6975_v31 = vld [vmem:[#allocation5 + $0x668] ss:$48 sps:$4 sm:$0xff]   ;;  %s8105_s15 = scalar_lea.vmem %s5947_s3, 1536 }
  0x9d   :  { %2589 = vmatpush1.bf16.msra.mxu1 %v6911_v46  ;;  %v6890_v34 = vld [vmem:[#allocation5 + $0xa24] ss:$48 sps:$4 sm:$0xff]   ;;  %v6981_v35 = vld [vmem:[#allocation5 + $0x6c8] ss:$48 sps:$4 sm:$0xff]   ;;  %p8106_p0 = scmp.ne.s32.totalorder %s5947_s3, %s8105_s15  ;;  %p8111_p2 = scmp.lt.s32.totalorder %s8105_s15, %s8105_s15 }
  0x9e   :  { %2509 = vmatpush1.bf16.msra.mxu0 %v6821_v17  ;;  %2590 = vmatprep.subr.bf16.mxu1 %v6915_v48  ;;  %v6864_v17 = vld [vmem:[#allocation5 + $0x840] ss:$48 sps:$4 sm:$0xff]   ;;  %v6896_v38 = vld [vmem:[#allocation5 + $0xa84] ss:$48 sps:$4 sm:$0xff]   ;;  %v6987_v39 = vld [vmem:[#allocation5 + $0x728] ss:$48 sps:$4 sm:$0xff]  }
  0x9f   :  { %2510 = vmatprep.subr.bf16.mxu0 %v6822_v18  ;;  %v6869_v18 = vld [vmem:[#allocation5 + $0x8a4] ss:$48 sps:$4 sm:$0xff]   ;;  %v6993_v43 = vld [vmem:[#allocation5 + $0x788] ss:$48 sps:$4 sm:$0xff]   ;;  %v7007_v48 = vld [vmem:[#allocation5 + $0x84c] ss:$48 sps:$4 sm:$0xff]   ;;  %p8112_p3 = por %p8111_p2, %p8110_p1 }
  0xa0   :  { %v6902_v42 = vld [vmem:[#allocation5 + $0xae4] ss:$48 sps:$4 sm:$0xff]   ;;  %v7005_v51 = vld [vmem:[#allocation5 + $0x848] ss:$48 sps:$4 sm:$0xff]  }
  0xa1   :  { %2591 = vmatpush1.bf16.msra.mxu1 %v6917_v52  ;;  %v6908_v46 = vld [vmem:[#allocation5 + $0xb44] ss:$48 sps:$4 sm:$0xff]   ;;  %v7013_v52 = vld [vmem:[#allocation5 + $0x8ac] ss:$48 sps:$4 sm:$0xff]   ;;  %p8113_p4 = pnand %p8112_p3, %p8106_p0 }
  0xa2   :  { %2511 = vmatpush1.bf16.msra.mxu0 %v6824_v19  ;;  %2592 = vmatprep.subr.bf16.mxu1 %v6921_v54  ;;  %v6959_v19 = vld [vmem:[#allocation5 + $0x548] ss:$48 sps:$4 sm:$0xff]   ;;  %v6914_v50 = vld [vmem:[#allocation5 + $0xba4] ss:$48 sps:$4 sm:$0xff]   ;;  %v6912_v54 = vld [vmem:[#allocation5 + $0xba0] ss:$48 sps:$4 sm:$0xff]  }
  0xa3   :  { %2512 = vmatprep.subr.bf16.mxu0 %v6825_v20  ;;  %v6963_v20 = vld [vmem:[#allocation5 + $0x5ac] ss:$48 sps:$4 sm:$0xff]  }
  0xa5   :  { %2593 = vmatpush1.bf16.msra.mxu1 %v6923_v58  ;;  %v7011_v58 = vld [vmem:[#allocation5 + $0x8a8] ss:$48 sps:$4 sm:$0xff]  }
  0xa6   :  { %2513 = vmatpush1.bf16.msra.mxu0 %v6827_v21  ;;  %2594 = vmatprep.subr.bf16.mxu1 %v6927_v59  ;;  %v6867_v21 = vld [vmem:[#allocation5 + $0x8a0] ss:$48 sps:$4 sm:$0xff]  }
  0xa7   :  { %2514 = vmatprep.subr.bf16.mxu0 %v6828_v24  ;;  %v6971_v24 = vld [vmem:[#allocation5 + $0x60c] ss:$48 sps:$4 sm:$0xff]  }
  0xa9   :  { %2595 = vmatpush1.bf16.msra.mxu1 %v6929_v62  ;;  %v6926_v62 = vld [vmem:[#allocation5 + $0x74] ss:$48 sps:$4 sm:$0xff]  }
  0xaa   :  { %2515 = vmatpush1.bf16.msra.mxu0 %v6830_v27  ;;  %2596 = vmatprep.subr.bf16.mxu1 %v6933_v63  ;;  %v6969_v27 = vld [vmem:[#allocation5 + $0x608] ss:$48 sps:$4 sm:$0xff]  }
  0xab   :  { %2516 = vmatprep.subr.bf16.mxu0 %v6831_v28  ;;  %v6977_v28 = vld [vmem:[#allocation5 + $0x66c] ss:$48 sps:$4 sm:$0xff]   ;;  %v7017_v63 = vld [vmem:[#allocation5 + $0x908] ss:$48 sps:$4 sm:$0xff]  }
  0xad   :  { %2597 = vmatpush1.bf16.msra.mxu1 %v6935_v2  ;;  %v6932_v2 = vld [vmem:[#allocation5 + $0xd4] ss:$48 sps:$4 sm:$0xff]  }
  0xae   :  { %2517 = vmatpush1.bf16.msra.mxu0 %v6833_v32  ;;  %2598 = vmatprep.subr.bf16.mxu1 %v6939_v3  ;;  %v6983_v32 = vld [vmem:[#allocation5 + $0x6cc] ss:$48 sps:$4 sm:$0xff]   ;;  %v7023_v3 = vld [vmem:[#allocation5 + $0x968] ss:$48 sps:$4 sm:$0xff]  }
  0xaf   :  { %2518 = vmatprep.subr.bf16.mxu0 %v6834_v33  ;;  %v6882_v33 = vld [vmem:[#allocation5 + $0x9c0] ss:$48 sps:$4 sm:$0xff]  }
  0xb1   :  { %2599 = vmatpush1.bf16.msra.mxu1 %v6941_v6  ;;  %v6938_v6 = vld [vmem:[#allocation5 + $0x134] ss:$48 sps:$4 sm:$0xff]  }
  0xb2   :  { %2519 = vmatpush1.bf16.msra.mxu0 %v6836_v36  ;;  %2600 = vmatprep.subr.bf16.mxu1 %v6945_v7  ;;  %v6989_v36 = vld [vmem:[#allocation5 + $0x72c] ss:$48 sps:$4 sm:$0xff]   ;;  %v7029_v7 = vld [vmem:[#allocation5 + $0x9c8] ss:$48 sps:$4 sm:$0xff]  }
  0xb3   :  { %2520 = vmatprep.subr.bf16.mxu0 %v6837_v37  ;;  %v6888_v37 = vld [vmem:[#allocation5 + $0xa20] ss:$48 sps:$4 sm:$0xff]  }
  0xb5   :  { %2601 = vmatpush1.bf16.msra.mxu1 %v6947_v10  ;;  %v6944_v10 = vld [vmem:[#allocation5 + $0x194] ss:$48 sps:$4 sm:$0xff]  }
  0xb6   :  { %2521 = vmatpush1.bf16.msra.mxu0 %v6839_v40  ;;  %2602 = vmatprep.subr.bf16.mxu1 %v6951_v11  ;;  %v6995_v40 = vld [vmem:[#allocation5 + $0x78c] ss:$48 sps:$4 sm:$0xff]   ;;  %v7035_v11 = vld [vmem:[#allocation5 + $0xa28] ss:$48 sps:$4 sm:$0xff]  }
  0xb7   :  { %2522 = vmatprep.subr.bf16.mxu0 %v6840_v41  ;;  %v6894_v41 = vld [vmem:[#allocation5 + $0xa80] ss:$48 sps:$4 sm:$0xff]  }
  0xb9   :  { %2603 = vmatpush1.bf16.msra.mxu1 %v6953_v15  ;;  %v6950_v15 = vld [vmem:[#allocation5 + $0x1f4] ss:$48 sps:$4 sm:$0xff]  }
  0xba   :  { %2523 = vmatpush1.bf16.msra.mxu0 %v6842_v44  ;;  %2604 = vmatprep.subr.bf16.mxu1 %v6957_v16  ;;  %v7001_v44 = vld [vmem:[#allocation5 + $0x7ec] ss:$48 sps:$4 sm:$0xff]   ;;  %v7041_v16 = vld [vmem:[#allocation5 + $0xa88] ss:$48 sps:$4 sm:$0xff]  }
  0xbb   :  { %2524 = vmatprep.subr.bf16.mxu0 %v6843_v45  ;;  %v6900_v45 = vld [vmem:[#allocation5 + $0xae0] ss:$48 sps:$4 sm:$0xff]  }
  0xbd   :  { %2605 = vmatpush1.bf16.msra.mxu1 %v6959_v19  ;;  %v6956_v19 = vld [vmem:[#allocation5 + $0x254] ss:$48 sps:$4 sm:$0xff]  }
  0xbe   :  { %2525 = vmatpush1.bf16.msra.mxu0 %v6845_v47  ;;  %2606 = vmatprep.subr.bf16.mxu1 %v6963_v20  ;;  %v6999_v47 = vld [vmem:[#allocation5 + $0x7e8] ss:$48 sps:$4 sm:$0xff]  }
  0xbf   :  { %2535 = vmatprep.subr.bf16.mxu0 %v6848_v49  ;;  %v6906_v49 = vld [vmem:[#allocation5 + $0xb40] ss:$48 sps:$4 sm:$0xff]   ;;  %v7047_v20 = vld [vmem:[#allocation5 + $0xae8] ss:$48 sps:$4 sm:$0xff]  }
  0xc1   :  { %2527 = vmatmul.mubr.bf16.vlgmr.msra.gmra.mrb[0].mxu0 %v8283_v53  ;;  %2607 = vmatpush1.bf16.msra.mxu1 %v6965_v23  ;;  %v6962_v23 = vld [vmem:[#allocation5 + $0x2b4] ss:$48 sps:$4 sm:$0xff]  }
  0xc2   :  { %2536 = vmatpush1.bf16.msra.mxu0 %v6846_v55  ;;  %2567 = vmatprep.mubr.bf16.mxu0 %v8285_v56  ;;  %v120_v55 = vld [vmem:[#allocation2 + $0x10] sm:$0xff] }
  0xc3   :  { %2537 = vmatprep.subr.bf16.mxu0 %v6851_v57  ;;  %2617 = vmatprep.subr.bf16.mxu1 %v6971_v24  ;;  %v6920_v57 = vld [vmem:[#allocation5 + $0x14] ss:$48 sps:$4 sm:$0xff]   ;;  %v8291_v59 = vpack.c.bf16 %v120_v55, %v120_v55  ;;  %v7053_v24 = vld [vmem:[#allocation5 + $0xb48] ss:$48 sps:$4 sm:$0xff]   ;;  %v7002_v55 = vld [vmem:[#allocation5 + $0x550] ss:$48 sps:$4 sm:$0xff]  }
  0xc4   :  { %2609 = vmatmul.mubr.bf16.vlgmr.msra.gmra.mrb[0].mxu1 %v8283_v53 }
  0xc5   :  { %2618 = vmatpush1.bf16.msra.mxu1 %v6969_v27  ;;  %2649 = vmatprep.mubr.bf16.mxu1 %v8285_v56  ;;  %v6968_v27 = vld [vmem:[#allocation5 + $0x314] ss:$48 sps:$4 sm:$0xff]  }
  0xc6   :  { %2538 = vmatpush1.bf16.msra.mxu0 %v6849_v60  ;;  %2619 = vmatprep.subr.bf16.mxu1 %v6977_v28  ;;  %v7019_v60 = vld [vmem:[#allocation5 + $0x90c] ss:$48 sps:$4 sm:$0xff]   ;;  %v7059_v28 = vld [vmem:[#allocation5 + $0xba8] ss:$48 sps:$4 sm:$0xff]  }
  0xc7   :  { %2539 = vmatprep.subr.bf16.mxu0 %v6854_v61  ;;  %v6918_v61 = vld [vmem:[#allocation5 + $0x10] ss:$48 sps:$4 sm:$0xff]  }
  0xc9   :  { %2620 = vmatpush1.bf16.msra.mxu1 %v6975_v31  ;;  %v6974_v31 = vld [vmem:[#allocation5 + $0x374] ss:$48 sps:$4 sm:$0xff]  }
  0xca   :  { %2540 = vmatpush1.bf16.msra.mxu0 %v6852_v0  ;;  %2621 = vmatprep.subr.bf16.mxu1 %v6983_v32  ;;  %v7025_v0 = vld [vmem:[#allocation5 + $0x96c] ss:$48 sps:$4 sm:$0xff]   ;;  %v7065_v32 = vld [vmem:[#allocation5 + $0x18] ss:$48 sps:$4 sm:$0xff]  }
  0xcb   :  { %2541 = vmatprep.subr.bf16.mxu0 %v6857_v1  ;;  %v6924_v1 = vld [vmem:[#allocation5 + $0x70] ss:$48 sps:$4 sm:$0xff]  }
  0xcd   :  { %2622 = vmatpush1.bf16.msra.mxu1 %v6981_v35  ;;  %v6980_v35 = vld [vmem:[#allocation5 + $0x3d4] ss:$48 sps:$4 sm:$0xff]  }
  0xce   :  { %2542 = vmatpush1.bf16.msra.mxu0 %v6855_v4  ;;  %2623 = vmatprep.subr.bf16.mxu1 %v6989_v36  ;;  %v7031_v4 = vld [vmem:[#allocation5 + $0x9cc] ss:$48 sps:$4 sm:$0xff]   ;;  %v7071_v36 = vld [vmem:[#allocation5 + $0x78] ss:$48 sps:$4 sm:$0xff]  }
  0xcf   :  { %2543 = vmatprep.subr.bf16.mxu0 %v6860_v5  ;;  %v6930_v5 = vld [vmem:[#allocation5 + $0xd0] ss:$48 sps:$4 sm:$0xff]  }
  0xd1   :  { %2624 = vmatpush1.bf16.msra.mxu1 %v6987_v39  ;;  %v6986_v39 = vld [vmem:[#allocation5 + $0x434] ss:$48 sps:$4 sm:$0xff]  }
  0xd2   :  { %2544 = vmatpush1.bf16.msra.mxu0 %v6858_v8  ;;  %2625 = vmatprep.subr.bf16.mxu1 %v6995_v40  ;;  %v7037_v8 = vld [vmem:[#allocation5 + $0xa2c] ss:$48 sps:$4 sm:$0xff]   ;;  %v7077_v40 = vld [vmem:[#allocation5 + $0xd8] ss:$48 sps:$4 sm:$0xff]  }
  0xd3   :  { %2545 = vmatprep.subr.bf16.mxu0 %v6863_v9  ;;  %v6936_v9 = vld [vmem:[#allocation5 + $0x130] ss:$48 sps:$4 sm:$0xff]  }
  0xd5   :  { %2626 = vmatpush1.bf16.msra.mxu1 %v6993_v43  ;;  %v6992_v43 = vld [vmem:[#allocation5 + $0x494] ss:$48 sps:$4 sm:$0xff]  }
  0xd6   :  { %2546 = vmatpush1.bf16.msra.mxu0 %v6861_v12  ;;  %2627 = vmatprep.subr.bf16.mxu1 %v7001_v44  ;;  %v7043_v12 = vld [vmem:[#allocation5 + $0xa8c] ss:$48 sps:$4 sm:$0xff]   ;;  %v7083_v44 = vld [vmem:[#allocation5 + $0x138] ss:$48 sps:$4 sm:$0xff]  }
  0xd7   :  { %2547 = vmatprep.subr.bf16.mxu0 %v6866_v13  ;;  %v6942_v13 = vld [vmem:[#allocation5 + $0x190] ss:$48 sps:$4 sm:$0xff]  }
  0xd9   :  { %2628 = vmatpush1.bf16.msra.mxu1 %v6999_v47  ;;  %v6998_v47 = vld [vmem:[#allocation5 + $0x4f4] ss:$48 sps:$4 sm:$0xff]  }
  0xda   :  { %2548 = vmatpush1.bf16.msra.mxu0 %v6864_v17  ;;  %2629 = vmatprep.subr.bf16.mxu1 %v7007_v48  ;;  %v7049_v17 = vld [vmem:[#allocation5 + $0xaec] ss:$48 sps:$4 sm:$0xff]   ;;  %v7089_v48 = vld [vmem:[#allocation5 + $0x198] ss:$48 sps:$4 sm:$0xff]  }
  0xdb   :  { %2549 = vmatprep.subr.bf16.mxu0 %v6869_v18  ;;  %v6948_v18 = vld [vmem:[#allocation5 + $0x1f0] ss:$48 sps:$4 sm:$0xff]  }
  0xdd   :  { %2630 = vmatpush1.bf16.msra.mxu1 %v7005_v51  ;;  %v7004_v51 = vld [vmem:[#allocation5 + $0x554] ss:$48 sps:$4 sm:$0xff]  }
  0xde   :  { %2550 = vmatpush1.bf16.msra.mxu0 %v6867_v21  ;;  %2631 = vmatprep.subr.bf16.mxu1 %v7013_v52  ;;  %v7055_v21 = vld [vmem:[#allocation5 + $0xb4c] ss:$48 sps:$4 sm:$0xff]   ;;  %v7095_v52 = vld [vmem:[#allocation5 + $0x1f8] ss:$48 sps:$4 sm:$0xff]  }
  0xdf   :  { %2551 = vmatprep.subr.bf16.mxu0 %v6872_v22  ;;  %v6954_v22 = vld [vmem:[#allocation5 + $0x250] ss:$48 sps:$4 sm:$0xff]  }
  0xe1   :  { %2632 = vmatpush1.bf16.msra.mxu1 %v7011_v58  ;;  %v7101_v58 = vld [vmem:[#allocation5 + $0x258] ss:$48 sps:$4 sm:$0xff]  }
  0xe2   :  { %2552 = vmatpush1.bf16.msra.mxu0 %v6870_v25  ;;  %2633 = vmatprep.subr.bf16.mxu1 %v7019_v60  ;;  %v7061_v25 = vld [vmem:[#allocation5 + $0xbac] ss:$48 sps:$4 sm:$0xff]  }
  0xe3   :  { %2553 = vmatprep.subr.bf16.mxu0 %v6878_v26  ;;  %v6960_v26 = vld [vmem:[#allocation5 + $0x2b0] ss:$48 sps:$4 sm:$0xff]   ;;  %v7109_v60 = vld [vmem:[#allocation5 + $0x2bc] ss:$48 sps:$4 sm:$0xff]  }
  0xe5   :  { %2634 = vmatpush1.bf16.msra.mxu1 %v7017_v63  ;;  %v7107_v63 = vld [vmem:[#allocation5 + $0x2b8] ss:$48 sps:$4 sm:$0xff]  }
  0xe6   :  { %2554 = vmatpush1.bf16.msra.mxu0 %v6876_v29  ;;  %2635 = vmatprep.subr.bf16.mxu1 %v7025_v0  ;;  %v7067_v29 = vld [vmem:[#allocation5 + $0x1c] ss:$48 sps:$4 sm:$0xff]  }
  0xe7   :  { %2555 = vmatprep.subr.bf16.mxu0 %v6884_v30  ;;  %v6966_v30 = vld [vmem:[#allocation5 + $0x310] ss:$48 sps:$4 sm:$0xff]   ;;  %v7115_v0 = vld [vmem:[#allocation5 + $0x31c] ss:$48 sps:$4 sm:$0xff]  }
  0xe9   :  { %2636 = vmatpush1.bf16.msra.mxu1 %v7023_v3  ;;  %v7113_v3 = vld [vmem:[#allocation5 + $0x318] ss:$48 sps:$4 sm:$0xff]  }
  0xea   :  { %2556 = vmatpush1.bf16.msra.mxu0 %v6882_v33  ;;  %2637 = vmatprep.subr.bf16.mxu1 %v7031_v4  ;;  %v7073_v33 = vld [vmem:[#allocation5 + $0x7c] ss:$48 sps:$4 sm:$0xff]  }
  0xeb   :  { %2557 = vmatprep.subr.bf16.mxu0 %v6890_v34  ;;  %v6972_v34 = vld [vmem:[#allocation5 + $0x370] ss:$48 sps:$4 sm:$0xff]   ;;  %v7121_v4 = vld [vmem:[#allocation5 + $0x37c] ss:$48 sps:$4 sm:$0xff]  }
  0xed   :  { %2638 = vmatpush1.bf16.msra.mxu1 %v7029_v7  ;;  %v7119_v7 = vld [vmem:[#allocation5 + $0x378] ss:$48 sps:$4 sm:$0xff]  }
  0xee   :  { %2558 = vmatpush1.bf16.msra.mxu0 %v6888_v37  ;;  %2639 = vmatprep.subr.bf16.mxu1 %v7037_v8  ;;  %v7079_v37 = vld [vmem:[#allocation5 + $0xdc] ss:$48 sps:$4 sm:$0xff]  }
  0xef   :  { %2559 = vmatprep.subr.bf16.mxu0 %v6896_v38  ;;  %v6978_v38 = vld [vmem:[#allocation5 + $0x3d0] ss:$48 sps:$4 sm:$0xff]   ;;  %v7127_v8 = vld [vmem:[#allocation5 + $0x3dc] ss:$48 sps:$4 sm:$0xff]  }
  0xf1   :  { %2640 = vmatpush1.bf16.msra.mxu1 %v7035_v11  ;;  %v7125_v11 = vld [vmem:[#allocation5 + $0x3d8] ss:$48 sps:$4 sm:$0xff]  }
  0xf2   :  { %2560 = vmatpush1.bf16.msra.mxu0 %v6894_v41  ;;  %2641 = vmatprep.subr.bf16.mxu1 %v7043_v12  ;;  %v7085_v41 = vld [vmem:[#allocation5 + $0x13c] ss:$48 sps:$4 sm:$0xff]  }
  0xf3   :  { %2561 = vmatprep.subr.bf16.mxu0 %v6902_v42  ;;  %v6984_v42 = vld [vmem:[#allocation5 + $0x430] ss:$48 sps:$4 sm:$0xff]   ;;  %v7133_v12 = vld [vmem:[#allocation5 + $0x43c] ss:$48 sps:$4 sm:$0xff]  }
  0xf5   :  { %2642 = vmatpush1.bf16.msra.mxu1 %v7041_v16  ;;  %v7131_v16 = vld [vmem:[#allocation5 + $0x438] ss:$48 sps:$4 sm:$0xff]  }
  0xf6   :  { %2562 = vmatpush1.bf16.msra.mxu0 %v6900_v45  ;;  %2643 = vmatprep.subr.bf16.mxu1 %v7049_v17  ;;  %v7091_v45 = vld [vmem:[#allocation5 + $0x19c] ss:$48 sps:$4 sm:$0xff]  }
  0xf7   :  { %2563 = vmatprep.subr.bf16.mxu0 %v6908_v46  ;;  %v6990_v46 = vld [vmem:[#allocation5 + $0x490] ss:$48 sps:$4 sm:$0xff]   ;;  %v7139_v17 = vld [vmem:[#allocation5 + $0x49c] ss:$48 sps:$4 sm:$0xff]  }
  0xf9   :  { %2644 = vmatpush1.bf16.msra.mxu1 %v7047_v20  ;;  %v7137_v20 = vld [vmem:[#allocation5 + $0x498] ss:$48 sps:$4 sm:$0xff]  }
  0xfa   :  { %2564 = vmatpush1.bf16.msra.mxu0 %v6906_v49  ;;  %2645 = vmatprep.subr.bf16.mxu1 %v7055_v21  ;;  %v7097_v49 = vld [vmem:[#allocation5 + $0x1fc] ss:$48 sps:$4 sm:$0xff]  }
  0xfb   :  { %2565 = vmatprep.subr.bf16.mxu0 %v6914_v50  ;;  %v6996_v50 = vld [vmem:[#allocation5 + $0x4f0] ss:$48 sps:$4 sm:$0xff]   ;;  %v7145_v21 = vld [vmem:[#allocation5 + $0x4fc] ss:$48 sps:$4 sm:$0xff]  }
  0xfd   :  { %2646 = vmatpush1.bf16.msra.mxu1 %v7053_v24  ;;  %v7143_v24 = vld [vmem:[#allocation5 + $0x4f8] ss:$48 sps:$4 sm:$0xff]  }
  0xfe   :  { %2566 = vmatpush1.bf16.msra.mxu0 %v6912_v54  ;;  %2647 = vmatprep.subr.bf16.mxu1 %v7061_v25  ;;  %v7103_v54 = vld [vmem:[#allocation5 + $0x25c] ss:$48 sps:$4 sm:$0xff]  }
  0xff   :  { %2658 = vmatprep.subr.bf16.mxu0 %v6920_v57  ;;  %v7010_v57 = vld [vmem:[#allocation5 + $0x5b4] ss:$48 sps:$4 sm:$0xff]   ;;  %v7151_v25 = vld [vmem:[#allocation5 + $0x55c] ss:$48 sps:$4 sm:$0xff]  }
 0x101   :  { %2568 = vmatmul.mubr.bf16.vlgmr.msra.gmra.mrb[0].mxu0 %v8291_v59  ;;  %2648 = vmatpush1.bf16.msra.mxu1 %v7059_v28  ;;  %v7149_v28 = vld [vmem:[#allocation5 + $0x558] ss:$48 sps:$4 sm:$0xff]  }
 0x102   :  { %2659 = vmatpush1.bf16.msra.mxu0 %v6918_v61  ;;  %2690 = vmatprep.mubr.bf16.mxu0 %v8279_v14  ;;  %v7008_v61 = vld [vmem:[#allocation5 + $0x5b0] ss:$48 sps:$4 sm:$0xff]  }
 0x103   :  { %2660 = vmatprep.subr.bf16.mxu0 %v6926_v62  ;;  %2740 = vmatprep.subr.bf16.mxu1 %v7067_v29  ;;  %v7016_v62 = vld [vmem:[#allocation5 + $0x614] ss:$48 sps:$4 sm:$0xff]   ;;  %v7157_v29 = vld [vmem:[#allocation5 + $0x5bc] ss:$48 sps:$4 sm:$0xff]  }
 0x104   :  { %2650 = vmatmul.mubr.bf16.vlgmr.msra.gmra.mrb[0].mxu1 %v8291_v59 }
 0x105   :  { %2741 = vmatpush1.bf16.msra.mxu1 %v7065_v32  ;;  %2772 = vmatprep.mubr.bf16.mxu1 %v8279_v14  ;;  %v7155_v32 = vld [vmem:[#allocation5 + $0x5b8] ss:$48 sps:$4 sm:$0xff]  }
 0x106   :  { %2661 = vmatpush1.bf16.msra.mxu0 %v6924_v1  ;;  %2742 = vmatprep.subr.bf16.mxu1 %v7073_v33  ;;  %v7014_v1 = vld [vmem:[#allocation5 + $0x610] ss:$48 sps:$4 sm:$0xff]   ;;  %v7163_v33 = vld [vmem:[#allocation5 + $0x61c] ss:$48 sps:$4 sm:$0xff]  }
 0x107   :  { %2662 = vmatprep.subr.bf16.mxu0 %v6932_v2  ;;  %v7022_v2 = vld [vmem:[#allocation5 + $0x674] ss:$48 sps:$4 sm:$0xff]  }
 0x109   :  { %2743 = vmatpush1.bf16.msra.mxu1 %v7071_v36  ;;  %v7161_v36 = vld [vmem:[#allocation5 + $0x618] ss:$48 sps:$4 sm:$0xff]  }
 0x10a   :  { %2663 = vmatpush1.bf16.msra.mxu0 %v6930_v5  ;;  %2744 = vmatprep.subr.bf16.mxu1 %v7079_v37  ;;  %v7020_v5 = vld [vmem:[#allocation5 + $0x670] ss:$48 sps:$4 sm:$0xff]   ;;  %v7169_v37 = vld [vmem:[#allocation5 + $0x67c] ss:$48 sps:$4 sm:$0xff]  }
 0x10b   :  { %2664 = vmatprep.subr.bf16.mxu0 %v6938_v6  ;;  %v7028_v6 = vld [vmem:[#allocation5 + $0x6d4] ss:$48 sps:$4 sm:$0xff]  }
 0x10d   :  { %2745 = vmatpush1.bf16.msra.mxu1 %v7077_v40  ;;  %v7167_v40 = vld [vmem:[#allocation5 + $0x678] ss:$48 sps:$4 sm:$0xff]  }
 0x10e   :  { %2665 = vmatpush1.bf16.msra.mxu0 %v6936_v9  ;;  %2746 = vmatprep.subr.bf16.mxu1 %v7085_v41  ;;  %v7026_v9 = vld [vmem:[#allocation5 + $0x6d0] ss:$48 sps:$4 sm:$0xff]   ;;  %v7175_v41 = vld [vmem:[#allocation5 + $0x6dc] ss:$48 sps:$4 sm:$0xff]  }
 0x10f   :  { %2666 = vmatprep.subr.bf16.mxu0 %v6944_v10  ;;  %v7034_v10 = vld [vmem:[#allocation5 + $0x734] ss:$48 sps:$4 sm:$0xff]  }
 0x111   :  { %2747 = vmatpush1.bf16.msra.mxu1 %v7083_v44  ;;  %v7173_v44 = vld [vmem:[#allocation5 + $0x6d8] ss:$48 sps:$4 sm:$0xff]  }
 0x112   :  { %2667 = vmatpush1.bf16.msra.mxu0 %v6942_v13  ;;  %2748 = vmatprep.subr.bf16.mxu1 %v7091_v45  ;;  %v7032_v13 = vld [vmem:[#allocation5 + $0x730] ss:$48 sps:$4 sm:$0xff]   ;;  %v7181_v45 = vld [vmem:[#allocation5 + $0x73c] ss:$48 sps:$4 sm:$0xff]  }
 0x113   :  { %2668 = vmatprep.subr.bf16.mxu0 %v6950_v15  ;;  %v7040_v15 = vld [vmem:[#allocation5 + $0x794] ss:$48 sps:$4 sm:$0xff]  }
 0x115   :  { %2749 = vmatpush1.bf16.msra.mxu1 %v7089_v48  ;;  %v7179_v48 = vld [vmem:[#allocation5 + $0x738] ss:$48 sps:$4 sm:$0xff]  }
 0x116   :  { %2669 = vmatpush1.bf16.msra.mxu0 %v6948_v18  ;;  %2750 = vmatprep.subr.bf16.mxu1 %v7097_v49  ;;  %v7038_v18 = vld [vmem:[#allocation5 + $0x790] ss:$48 sps:$4 sm:$0xff]   ;;  %v7187_v49 = vld [vmem:[#allocation5 + $0x79c] ss:$48 sps:$4 sm:$0xff]  }
 0x117   :  { %2670 = vmatprep.subr.bf16.mxu0 %v6956_v19  ;;  %v7046_v19 = vld [vmem:[#allocation5 + $0x7f4] ss:$48 sps:$4 sm:$0xff]  }
 0x119   :  { %2751 = vmatpush1.bf16.msra.mxu1 %v7095_v52  ;;  %v7185_v52 = vld [vmem:[#allocation5 + $0x798] ss:$48 sps:$4 sm:$0xff]  }
 0x11a   :  { %2671 = vmatpush1.bf16.msra.mxu0 %v6954_v22  ;;  %2752 = vmatprep.subr.bf16.mxu1 %v7103_v54  ;;  %v7044_v22 = vld [vmem:[#allocation5 + $0x7f0] ss:$48 sps:$4 sm:$0xff]   ;;  %v7193_v54 = vld [vmem:[#allocation5 + $0x7fc] ss:$48 sps:$4 sm:$0xff]  }
 0x11b   :  { %2672 = vmatprep.subr.bf16.mxu0 %v6962_v23  ;;  %v7052_v23 = vld [vmem:[#allocation5 + $0x854] ss:$48 sps:$4 sm:$0xff]  }
 0x11d   :  { %2753 = vmatpush1.bf16.msra.mxu1 %v7101_v58  ;;  %v7191_v58 = vld [vmem:[#allocation5 + $0x7f8] ss:$48 sps:$4 sm:$0xff]  }
 0x11e   :  { %2673 = vmatpush1.bf16.msra.mxu0 %v6960_v26  ;;  %2754 = vmatprep.subr.bf16.mxu1 %v7109_v60  ;;  %v7050_v26 = vld [vmem:[#allocation5 + $0x850] ss:$48 sps:$4 sm:$0xff]   ;;  %v7199_v60 = vld [vmem:[#allocation5 + $0x85c] ss:$48 sps:$4 sm:$0xff]  }
 0x11f   :  { %2674 = vmatprep.subr.bf16.mxu0 %v6968_v27  ;;  %v7058_v27 = vld [vmem:[#allocation5 + $0x8b4] ss:$48 sps:$4 sm:$0xff]  }
 0x121   :  { %2755 = vmatpush1.bf16.msra.mxu1 %v7107_v63  ;;  %v7197_v63 = vld [vmem:[#allocation5 + $0x858] ss:$48 sps:$4 sm:$0xff]  }
 0x122   :  { %2675 = vmatpush1.bf16.msra.mxu0 %v6966_v30  ;;  %2756 = vmatprep.subr.bf16.mxu1 %v7115_v0  ;;  %v7056_v30 = vld [vmem:[#allocation5 + $0x8b0] ss:$48 sps:$4 sm:$0xff]   ;;  %v7205_v0 = vld [vmem:[#allocation5 + $0x8bc] ss:$48 sps:$4 sm:$0xff]  }
 0x123   :  { %2676 = vmatprep.subr.bf16.mxu0 %v6974_v31  ;;  %v7064_v31 = vld [vmem:[#allocation5 + $0x914] ss:$48 sps:$4 sm:$0xff]  }
 0x125   :  { %2757 = vmatpush1.bf16.msra.mxu1 %v7113_v3  ;;  %v7203_v3 = vld [vmem:[#allocation5 + $0x8b8] ss:$48 sps:$4 sm:$0xff]  }
 0x126   :  { %2677 = vmatpush1.bf16.msra.mxu0 %v6972_v34  ;;  %2758 = vmatprep.subr.bf16.mxu1 %v7121_v4  ;;  %v7062_v34 = vld [vmem:[#allocation5 + $0x910] ss:$48 sps:$4 sm:$0xff]   ;;  %v7211_v4 = vld [vmem:[#allocation5 + $0x91c] ss:$48 sps:$4 sm:$0xff]  }
 0x127   :  { %2678 = vmatprep.subr.bf16.mxu0 %v6980_v35  ;;  %v7070_v35 = vld [vmem:[#allocation5 + $0x974] ss:$48 sps:$4 sm:$0xff]  }
 0x129   :  { %2759 = vmatpush1.bf16.msra.mxu1 %v7119_v7  ;;  %v7209_v7 = vld [vmem:[#allocation5 + $0x918] ss:$48 sps:$4 sm:$0xff]  }
 0x12a   :  { %2679 = vmatpush1.bf16.msra.mxu0 %v6978_v38  ;;  %2760 = vmatprep.subr.bf16.mxu1 %v7127_v8  ;;  %v7068_v38 = vld [vmem:[#allocation5 + $0x970] ss:$48 sps:$4 sm:$0xff]   ;;  %v7217_v8 = vld [vmem:[#allocation5 + $0x97c] ss:$48 sps:$4 sm:$0xff]  }
 0x12b   :  { %2680 = vmatprep.subr.bf16.mxu0 %v6986_v39  ;;  %v7076_v39 = vld [vmem:[#allocation5 + $0x9d4] ss:$48 sps:$4 sm:$0xff]  }
 0x12d   :  { %2761 = vmatpush1.bf16.msra.mxu1 %v7125_v11  ;;  %v7215_v11 = vld [vmem:[#allocation5 + $0x978] ss:$48 sps:$4 sm:$0xff]  }
 0x12e   :  { %2681 = vmatpush1.bf16.msra.mxu0 %v6984_v42  ;;  %2762 = vmatprep.subr.bf16.mxu1 %v7133_v12  ;;  %v7074_v42 = vld [vmem:[#allocation5 + $0x9d0] ss:$48 sps:$4 sm:$0xff]   ;;  %v7223_v12 = vld [vmem:[#allocation5 + $0x9dc] ss:$48 sps:$4 sm:$0xff]  }
 0x12f   :  { %2682 = vmatprep.subr.bf16.mxu0 %v6992_v43  ;;  %v7082_v43 = vld [vmem:[#allocation5 + $0xa34] ss:$48 sps:$4 sm:$0xff]  }
 0x131   :  { %2763 = vmatpush1.bf16.msra.mxu1 %v7131_v16  ;;  %v7221_v16 = vld [vmem:[#allocation5 + $0x9d8] ss:$48 sps:$4 sm:$0xff]  }
 0x132   :  { %2683 = vmatpush1.bf16.msra.mxu0 %v6990_v46  ;;  %2764 = vmatprep.subr.bf16.mxu1 %v7139_v17  ;;  %v7080_v46 = vld [vmem:[#allocation5 + $0xa30] ss:$48 sps:$4 sm:$0xff]   ;;  %v7229_v17 = vld [vmem:[#allocation5 + $0xa3c] ss:$48 sps:$4 sm:$0xff]  }
 0x133   :  { %2684 = vmatprep.subr.bf16.mxu0 %v6998_v47  ;;  %v7088_v47 = vld [vmem:[#allocation5 + $0xa94] ss:$48 sps:$4 sm:$0xff]  }
 0x135   :  { %2765 = vmatpush1.bf16.msra.mxu1 %v7137_v20  ;;  %v7227_v20 = vld [vmem:[#allocation5 + $0xa38] ss:$48 sps:$4 sm:$0xff]  }
 0x136   :  { %2685 = vmatpush1.bf16.msra.mxu0 %v6996_v50  ;;  %2766 = vmatprep.subr.bf16.mxu1 %v7145_v21  ;;  %v7086_v50 = vld [vmem:[#allocation5 + $0xa90] ss:$48 sps:$4 sm:$0xff]   ;;  %v7235_v21 = vld [vmem:[#allocation5 + $0xa9c] ss:$48 sps:$4 sm:$0xff]  }
 0x137   :  { %2686 = vmatprep.subr.bf16.mxu0 %v7004_v51  ;;  %v7094_v51 = vld [vmem:[#allocation5 + $0xaf4] ss:$48 sps:$4 sm:$0xff]  }
 0x139   :  { %2767 = vmatpush1.bf16.msra.mxu1 %v7143_v24  ;;  %v7233_v24 = vld [vmem:[#allocation5 + $0xa98] ss:$48 sps:$4 sm:$0xff]  }
 0x13a   :  { %2687 = vmatpush1.bf16.msra.mxu0 %v7002_v55  ;;  %2768 = vmatprep.subr.bf16.mxu1 %v7151_v25  ;;  %v7092_v55 = vld [vmem:[#allocation5 + $0xaf0] ss:$48 sps:$4 sm:$0xff]   ;;  %v7241_v25 = vld [vmem:[#allocation5 + $0xafc] ss:$48 sps:$4 sm:$0xff]  }
 0x13b   :  { %2688 = vmatprep.subr.bf16.mxu0 %v7010_v57  ;;  %v7100_v57 = vld [vmem:[#allocation5 + $0xb54] ss:$48 sps:$4 sm:$0xff]  }
 0x13d   :  { %2769 = vmatpush1.bf16.msra.mxu1 %v7149_v28  ;;  %v7239_v28 = vld [vmem:[#allocation5 + $0xaf8] ss:$48 sps:$4 sm:$0xff]  }
 0x13e   :  { %2689 = vmatpush1.bf16.msra.mxu0 %v7008_v61  ;;  %2770 = vmatprep.subr.bf16.mxu1 %v7157_v29  ;;  %v7098_v61 = vld [vmem:[#allocation5 + $0xb50] ss:$48 sps:$4 sm:$0xff]   ;;  %v7247_v29 = vld [vmem:[#allocation5 + $0xb5c] ss:$48 sps:$4 sm:$0xff]  }
 0x13f   :  { %2699 = vmatprep.subr.bf16.mxu0 %v7016_v62  ;;  %v7106_v62 = vld [vmem:[#allocation5 + $0xbb4] ss:$48 sps:$4 sm:$0xff]  }
 0x141   :  { %2691 = vmatmul.mubr.bf16.vlgmr.msra.gmra.mrb[4].mxu0 %v8283_v53  ;;  %2771 = vmatpush1.bf16.msra.mxu1 %v7155_v32  ;;  %v7245_v32 = vld [vmem:[#allocation5 + $0xb58] ss:$48 sps:$4 sm:$0xff]  }
 0x142   :  { %2700 = vmatpush1.bf16.msra.mxu0 %v7014_v1  ;;  %2731 = vmatprep.mubr.bf16.mxu0 %v8285_v56  ;;  %v7104_v1 = vld [vmem:[#allocation5 + $0xbb0] ss:$48 sps:$4 sm:$0xff]  }
 0x143   :  { %2701 = vmatprep.subr.bf16.mxu0 %v7022_v2  ;;  %2781 = vmatprep.subr.bf16.mxu1 %v7163_v33  ;;  %v7112_v2 = vld [vmem:[#allocation5 + $0x24] ss:$48 sps:$4 sm:$0xff]   ;;  %v7253_v33 = vld [vmem:[#allocation5 + $0xbbc] ss:$48 sps:$4 sm:$0xff]  }
 0x144   :  { %2773 = vmatmul.mubr.bf16.vlgmr.msra.gmra.mrb[4].mxu1 %v8283_v53 }
 0x145   :  { %2782 = vmatpush1.bf16.msra.mxu1 %v7161_v36  ;;  %2813 = vmatprep.mubr.bf16.mxu1 %v8285_v56  ;;  %v7251_v36 = vld [vmem:[#allocation5 + $0xbb8] ss:$48 sps:$4 sm:$0xff]  }
 0x146   :  { %2702 = vmatpush1.bf16.msra.mxu0 %v7020_v5  ;;  %2783 = vmatprep.subr.bf16.mxu1 %v7169_v37  ;;  %v7110_v5 = vld [vmem:[#allocation5 + $0x20] ss:$48 sps:$4 sm:$0xff]   ;;  %v7259_v37 = vld [vmem:[#allocation5 + $0x2c] ss:$48 sps:$4 sm:$0xff]  }
 0x147   :  { %2703 = vmatprep.subr.bf16.mxu0 %v7028_v6  ;;  %v7118_v6 = vld [vmem:[#allocation5 + $0x84] ss:$48 sps:$4 sm:$0xff]  }
 0x149   :  { %2784 = vmatpush1.bf16.msra.mxu1 %v7167_v40  ;;  %v7257_v40 = vld [vmem:[#allocation5 + $0x28] ss:$48 sps:$4 sm:$0xff]  }
 0x14a   :  { %2704 = vmatpush1.bf16.msra.mxu0 %v7026_v9  ;;  %2785 = vmatprep.subr.bf16.mxu1 %v7175_v41  ;;  %v7116_v9 = vld [vmem:[#allocation5 + $0x80] ss:$48 sps:$4 sm:$0xff]   ;;  %v7265_v41 = vld [vmem:[#allocation5 + $0x8c] ss:$48 sps:$4 sm:$0xff]  }
 0x14b   :  { %2705 = vmatprep.subr.bf16.mxu0 %v7034_v10  ;;  %v7124_v10 = vld [vmem:[#allocation5 + $0xe4] ss:$48 sps:$4 sm:$0xff]  }
 0x14d   :  { %2786 = vmatpush1.bf16.msra.mxu1 %v7173_v44  ;;  %v7263_v44 = vld [vmem:[#allocation5 + $0x88] ss:$48 sps:$4 sm:$0xff]  }
 0x14e   :  { %2706 = vmatpush1.bf16.msra.mxu0 %v7032_v13  ;;  %2787 = vmatprep.subr.bf16.mxu1 %v7181_v45  ;;  %v7122_v13 = vld [vmem:[#allocation5 + $0xe0] ss:$48 sps:$4 sm:$0xff]   ;;  %v7271_v45 = vld [vmem:[#allocation5 + $0xec] ss:$48 sps:$4 sm:$0xff]  }
 0x14f   :  { %2707 = vmatprep.subr.bf16.mxu0 %v7040_v15  ;;  %v7130_v15 = vld [vmem:[#allocation5 + $0x144] ss:$48 sps:$4 sm:$0xff]  }
 0x151   :  { %2788 = vmatpush1.bf16.msra.mxu1 %v7179_v48  ;;  %v7269_v48 = vld [vmem:[#allocation5 + $0xe8] ss:$48 sps:$4 sm:$0xff]  }
 0x152   :  { %2708 = vmatpush1.bf16.msra.mxu0 %v7038_v18  ;;  %2789 = vmatprep.subr.bf16.mxu1 %v7187_v49  ;;  %v7128_v18 = vld [vmem:[#allocation5 + $0x140] ss:$48 sps:$4 sm:$0xff]   ;;  %v7277_v49 = vld [vmem:[#allocation5 + $0x14c] ss:$48 sps:$4 sm:$0xff]  }
 0x153   :  { %2709 = vmatprep.subr.bf16.mxu0 %v7046_v19  ;;  %v7136_v19 = vld [vmem:[#allocation5 + $0x1a4] ss:$48 sps:$4 sm:$0xff]  }
 0x155   :  { %2790 = vmatpush1.bf16.msra.mxu1 %v7185_v52  ;;  %v7275_v52 = vld [vmem:[#allocation5 + $0x148] ss:$48 sps:$4 sm:$0xff]  }
 0x156   :  { %2710 = vmatpush1.bf16.msra.mxu0 %v7044_v22  ;;  %2791 = vmatprep.subr.bf16.mxu1 %v7193_v54  ;;  %v7134_v22 = vld [vmem:[#allocation5 + $0x1a0] ss:$48 sps:$4 sm:$0xff]   ;;  %v7283_v54 = vld [vmem:[#allocation5 + $0x1ac] ss:$48 sps:$4 sm:$0xff]  }
 0x157   :  { %2711 = vmatprep.subr.bf16.mxu0 %v7052_v23  ;;  %v7142_v23 = vld [vmem:[#allocation5 + $0x204] ss:$48 sps:$4 sm:$0xff]  }
 0x159   :  { %2792 = vmatpush1.bf16.msra.mxu1 %v7191_v58  ;;  %v7289_v58 = vld [vmem:[#allocation5 + $0x20c] ss:$48 sps:$4 sm:$0xff]  }
 0x15a   :  { %2712 = vmatpush1.bf16.msra.mxu0 %v7050_v26  ;;  %2793 = vmatprep.subr.bf16.mxu1 %v7199_v60  ;;  %v7140_v26 = vld [vmem:[#allocation5 + $0x200] ss:$48 sps:$4 sm:$0xff]  }
 0x15b   :  { %2713 = vmatprep.subr.bf16.mxu0 %v7058_v27  ;;  %v7148_v27 = vld [vmem:[#allocation5 + $0x264] ss:$48 sps:$4 sm:$0xff]   ;;  %v7188_v60 = vld [vmem:[#allocation5 + $0x500] ss:$48 sps:$4 sm:$0xff]  }
 0x15d   :  { %2794 = vmatpush1.bf16.msra.mxu1 %v7197_v63  ;;  %v7295_v63 = vld [vmem:[#allocation5 + $0x26c] ss:$48 sps:$4 sm:$0xff]  }
 0x15e   :  { %2714 = vmatpush1.bf16.msra.mxu0 %v7056_v30  ;;  %2795 = vmatprep.subr.bf16.mxu1 %v7205_v0  ;;  %v7146_v30 = vld [vmem:[#allocation5 + $0x260] ss:$48 sps:$4 sm:$0xff]  }
 0x15f   :  { %2715 = vmatprep.subr.bf16.mxu0 %v7064_v31  ;;  %v7154_v31 = vld [vmem:[#allocation5 + $0x2c4] ss:$48 sps:$4 sm:$0xff]   ;;  %v7194_v0 = vld [vmem:[#allocation5 + $0x560] ss:$48 sps:$4 sm:$0xff]  }
 0x161   :  { %2796 = vmatpush1.bf16.msra.mxu1 %v7203_v3  ;;  %v7301_v3 = vld [vmem:[#allocation5 + $0x2cc] ss:$48 sps:$4 sm:$0xff]  }
 0x162   :  { %2716 = vmatpush1.bf16.msra.mxu0 %v7062_v34  ;;  %2797 = vmatprep.subr.bf16.mxu1 %v7211_v4  ;;  %v7152_v34 = vld [vmem:[#allocation5 + $0x2c0] ss:$48 sps:$4 sm:$0xff]  }
 0x163   :  { %2717 = vmatprep.subr.bf16.mxu0 %v7070_v35  ;;  %v7160_v35 = vld [vmem:[#allocation5 + $0x324] ss:$48 sps:$4 sm:$0xff]   ;;  %v7200_v4 = vld [vmem:[#allocation5 + $0x5c0] ss:$48 sps:$4 sm:$0xff]  }
 0x165   :  { %2798 = vmatpush1.bf16.msra.mxu1 %v7209_v7  ;;  %v7307_v7 = vld [vmem:[#allocation5 + $0x32c] ss:$48 sps:$4 sm:$0xff]  }
 0x166   :  { %2718 = vmatpush1.bf16.msra.mxu0 %v7068_v38  ;;  %2799 = vmatprep.subr.bf16.mxu1 %v7217_v8  ;;  %v7158_v38 = vld [vmem:[#allocation5 + $0x320] ss:$48 sps:$4 sm:$0xff]  }
 0x167   :  { %2719 = vmatprep.subr.bf16.mxu0 %v7076_v39  ;;  %v7166_v39 = vld [vmem:[#allocation5 + $0x384] ss:$48 sps:$4 sm:$0xff]   ;;  %v7206_v8 = vld [vmem:[#allocation5 + $0x620] ss:$48 sps:$4 sm:$0xff]  }
 0x169   :  { %2800 = vmatpush1.bf16.msra.mxu1 %v7215_v11  ;;  %v7313_v11 = vld [vmem:[#allocation5 + $0x38c] ss:$48 sps:$4 sm:$0xff]  }
 0x16a   :  { %2720 = vmatpush1.bf16.msra.mxu0 %v7074_v42  ;;  %2801 = vmatprep.subr.bf16.mxu1 %v7223_v12  ;;  %v7164_v42 = vld [vmem:[#allocation5 + $0x380] ss:$48 sps:$4 sm:$0xff]  }
 0x16b   :  { %2721 = vmatprep.subr.bf16.mxu0 %v7082_v43  ;;  %v7172_v43 = vld [vmem:[#allocation5 + $0x3e4] ss:$48 sps:$4 sm:$0xff]   ;;  %v7212_v12 = vld [vmem:[#allocation5 + $0x680] ss:$48 sps:$4 sm:$0xff]  }
 0x16d   :  { %2802 = vmatpush1.bf16.msra.mxu1 %v7221_v16  ;;  %v7319_v16 = vld [vmem:[#allocation5 + $0x3ec] ss:$48 sps:$4 sm:$0xff]  }
 0x16e   :  { %2722 = vmatpush1.bf16.msra.mxu0 %v7080_v46  ;;  %2803 = vmatprep.subr.bf16.mxu1 %v7229_v17  ;;  %v7170_v46 = vld [vmem:[#allocation5 + $0x3e0] ss:$48 sps:$4 sm:$0xff]  }
 0x16f   :  { %2723 = vmatprep.subr.bf16.mxu0 %v7088_v47  ;;  %v7178_v47 = vld [vmem:[#allocation5 + $0x444] ss:$48 sps:$4 sm:$0xff]   ;;  %v7218_v17 = vld [vmem:[#allocation5 + $0x6e0] ss:$48 sps:$4 sm:$0xff]  }
 0x171   :  { %2804 = vmatpush1.bf16.msra.mxu1 %v7227_v20  ;;  %v7325_v20 = vld [vmem:[#allocation5 + $0x44c] ss:$48 sps:$4 sm:$0xff]  }
 0x172   :  { %2724 = vmatpush1.bf16.msra.mxu0 %v7086_v50  ;;  %2805 = vmatprep.subr.bf16.mxu1 %v7235_v21  ;;  %v7176_v50 = vld [vmem:[#allocation5 + $0x440] ss:$48 sps:$4 sm:$0xff]  }
 0x173   :  { %2725 = vmatprep.subr.bf16.mxu0 %v7094_v51  ;;  %v7184_v51 = vld [vmem:[#allocation5 + $0x4a4] ss:$48 sps:$4 sm:$0xff]   ;;  %v7224_v21 = vld [vmem:[#allocation5 + $0x740] ss:$48 sps:$4 sm:$0xff]  }
 0x175   :  { %2806 = vmatpush1.bf16.msra.mxu1 %v7233_v24  ;;  %v7331_v24 = vld [vmem:[#allocation5 + $0x4ac] ss:$48 sps:$4 sm:$0xff]  }
 0x176   :  { %2726 = vmatpush1.bf16.msra.mxu0 %v7092_v55  ;;  %2807 = vmatprep.subr.bf16.mxu1 %v7241_v25  ;;  %v7190_v55 = vld [vmem:[#allocation5 + $0x504] ss:$48 sps:$4 sm:$0xff]   ;;  %v7230_v25 = vld [vmem:[#allocation5 + $0x7a0] ss:$48 sps:$4 sm:$0xff]  }
 0x177   :  { %2727 = vmatprep.subr.bf16.mxu0 %v7100_v57  ;;  %v7281_v57 = vld [vmem:[#allocation5 + $0x1a8] ss:$48 sps:$4 sm:$0xff]  }
 0x179   :  { %2808 = vmatpush1.bf16.msra.mxu1 %v7239_v28  ;;  %v7337_v28 = vld [vmem:[#allocation5 + $0x50c] ss:$48 sps:$4 sm:$0xff]  }
 0x17a   :  { %2728 = vmatpush1.bf16.msra.mxu0 %v7098_v61  ;;  %2809 = vmatprep.subr.bf16.mxu1 %v7247_v29  ;;  %v7196_v61 = vld [vmem:[#allocation5 + $0x564] ss:$48 sps:$4 sm:$0xff]   ;;  %v7236_v29 = vld [vmem:[#allocation5 + $0x800] ss:$48 sps:$4 sm:$0xff]  }
 0x17b   :  { %2729 = vmatprep.subr.bf16.mxu0 %v7106_v62  ;;  %v7287_v62 = vld [vmem:[#allocation5 + $0x208] ss:$48 sps:$4 sm:$0xff]  }
 0x17d   :  { %2810 = vmatpush1.bf16.msra.mxu1 %v7245_v32  ;;  %v7335_v32 = vld [vmem:[#allocation5 + $0x508] ss:$48 sps:$4 sm:$0xff]  }
 0x17e   :  { %2730 = vmatpush1.bf16.msra.mxu0 %v7104_v1  ;;  %2811 = vmatprep.subr.bf16.mxu1 %v7253_v33  ;;  %v7202_v1 = vld [vmem:[#allocation5 + $0x5c4] ss:$48 sps:$4 sm:$0xff]  }
 0x17f   :  { %2822 = vmatprep.subr.bf16.mxu0 %v7112_v2  ;;  %v7293_v2 = vld [vmem:[#allocation5 + $0x268] ss:$48 sps:$4 sm:$0xff]  }
 0x181   :  { %2732 = vmatmul.mubr.bf16.vlgmr.msra.gmra.mrb[4].mxu0 %v8291_v59  ;;  %2812 = vmatpush1.bf16.msra.mxu1 %v7251_v36  ;;  %v7242_v36 = vld [vmem:[#allocation5 + $0x860] ss:$48 sps:$4 sm:$0xff]  }
 0x182   :  { %2823 = vmatpush1.bf16.msra.mxu0 %v7110_v5  ;;  %2854 = vmatprep.mubr.bf16.mxu0 %v8279_v14  ;;  %v7208_v5 = vld [vmem:[#allocation5 + $0x624] ss:$48 sps:$4 sm:$0xff]  }
 0x183   :  { %2824 = vmatprep.subr.bf16.mxu0 %v7118_v6  ;;  %2904 = vmatprep.subr.bf16.mxu1 %v7259_v37  ;;  %v7299_v6 = vld [vmem:[#allocation5 + $0x2c8] ss:$48 sps:$4 sm:$0xff]  }
 0x184   :  { %2814 = vmatmul.mubr.bf16.vlgmr.msra.gmra.mrb[4].mxu1 %v8291_v59 }
 0x185   :  { %2905 = vmatpush1.bf16.msra.mxu1 %v7257_v40  ;;  %2936 = vmatprep.mubr.bf16.mxu1 %v8279_v14  ;;  %v7182_v14 = vld [vmem:[#allocation5 + $0x4a0] ss:$48 sps:$4 sm:$0xff]   ;;  %v7349_v40 = vld [vmem:[#allocation5 + $0x5cc] ss:$48 sps:$4 sm:$0xff]  }
 0x186   :  { %2825 = vmatpush1.bf16.msra.mxu0 %v7116_v9  ;;  %2906 = vmatprep.subr.bf16.mxu1 %v7265_v41  ;;  %v7214_v9 = vld [vmem:[#allocation5 + $0x684] ss:$48 sps:$4 sm:$0xff]   ;;  %v7248_v41 = vld [vmem:[#allocation5 + $0x8c0] ss:$48 sps:$4 sm:$0xff]  }
 0x187   :  { %2826 = vmatprep.subr.bf16.mxu0 %v7124_v10  ;;  %v7305_v10 = vld [vmem:[#allocation5 + $0x328] ss:$48 sps:$4 sm:$0xff]  }
 0x189   :  { %2907 = vmatpush1.bf16.msra.mxu1 %v7263_v44  ;;  %v7355_v44 = vld [vmem:[#allocation5 + $0x62c] ss:$48 sps:$4 sm:$0xff]  }
 0x18a   :  { %2827 = vmatpush1.bf16.msra.mxu0 %v7122_v13  ;;  %2908 = vmatprep.subr.bf16.mxu1 %v7271_v45  ;;  %v7220_v13 = vld [vmem:[#allocation5 + $0x6e4] ss:$48 sps:$4 sm:$0xff]   ;;  %v7254_v45 = vld [vmem:[#allocation5 + $0x920] ss:$48 sps:$4 sm:$0xff]  }
 0x18b   :  { %2828 = vmatprep.subr.bf16.mxu0 %v7130_v15  ;;  %v7311_v15 = vld [vmem:[#allocation5 + $0x388] ss:$48 sps:$4 sm:$0xff]  }
 0x18d   :  { %2909 = vmatpush1.bf16.msra.mxu1 %v7269_v48  ;;  %v7361_v48 = vld [vmem:[#allocation5 + $0x68c] ss:$48 sps:$4 sm:$0xff]  }
 0x18e   :  { %2829 = vmatpush1.bf16.msra.mxu0 %v7128_v18  ;;  %2910 = vmatprep.subr.bf16.mxu1 %v7277_v49  ;;  %v7226_v18 = vld [vmem:[#allocation5 + $0x744] ss:$48 sps:$4 sm:$0xff]   ;;  %v7260_v49 = vld [vmem:[#allocation5 + $0x980] ss:$48 sps:$4 sm:$0xff]  }
 0x18f   :  { %2830 = vmatprep.subr.bf16.mxu0 %v7136_v19  ;;  %v7317_v19 = vld [vmem:[#allocation5 + $0x3e8] ss:$48 sps:$4 sm:$0xff]  }
 0x191   :  { %2911 = vmatpush1.bf16.msra.mxu1 %v7275_v52  ;;  %v7367_v52 = vld [vmem:[#allocation5 + $0x6ec] ss:$48 sps:$4 sm:$0xff]  }
 0x192   :  { %2831 = vmatpush1.bf16.msra.mxu0 %v7134_v22  ;;  %2912 = vmatprep.subr.bf16.mxu1 %v7283_v54  ;;  %v7232_v22 = vld [vmem:[#allocation5 + $0x7a4] ss:$48 sps:$4 sm:$0xff]   ;;  %v7266_v54 = vld [vmem:[#allocation5 + $0x9e0] ss:$48 sps:$4 sm:$0xff]  }
 0x193   :  { %2832 = vmatprep.subr.bf16.mxu0 %v7142_v23  ;;  %v7323_v23 = vld [vmem:[#allocation5 + $0x448] ss:$48 sps:$4 sm:$0xff]  }
 0x195   :  { %2913 = vmatpush1.bf16.msra.mxu1 %v7281_v57  ;;  %v7373_v57 = vld [vmem:[#allocation5 + $0x74c] ss:$48 sps:$4 sm:$0xff]  }
 0x196   :  { %2833 = vmatpush1.bf16.msra.mxu0 %v7140_v26  ;;  %2914 = vmatprep.subr.bf16.mxu1 %v7289_v58  ;;  %v7238_v26 = vld [vmem:[#allocation5 + $0x804] ss:$48 sps:$4 sm:$0xff]   ;;  %v514_v58 = vlaneseq }
 0x197   :  { %2834 = vmatprep.subr.bf16.mxu0 %v7148_v27  ;;  %v7329_v27 = vld [vmem:[#allocation5 + $0x4a8] ss:$48 sps:$4 sm:$0xff]  }
 0x199   :  { %2915 = vmatpush1.bf16.msra.mxu1 %v7287_v62  ;;  %v7371_v62 = vld [vmem:[#allocation5 + $0x748] ss:$48 sps:$4 sm:$0xff]  }
 0x19a   :  { %2835 = vmatpush1.bf16.msra.mxu0 %v7146_v30  ;;  %2916 = vmatprep.subr.bf16.mxu1 %v7295_v63  ;;  %v7244_v30 = vld [vmem:[#allocation5 + $0x864] ss:$48 sps:$4 sm:$0xff]   ;;  %v8313_v63 = vshrl.u32 %v514_v58, 7  ;;  %v7443_v58 = vld [vmem:[#allocation5 + $0xbc8] ss:$48 sps:$4 sm:$0xff]  }
 0x19b   :  { %2836 = vmatprep.subr.bf16.mxu0 %v7154_v31 }
 0x19d   :  { %2917 = vmatpush1.bf16.msra.mxu1 %v7293_v2  ;;  %v8315_v2 = vld [vmem:[#allocation7] sm:$0xff] }
 0x19e   :  { %2837 = vmatpush1.bf16.msra.mxu0 %v7152_v34  ;;  %2918 = vmatprep.subr.bf16.mxu1 %v7301_v3  ;;  %v7343_v34 = vld [vmem:[#allocation5 + $0x56c] ss:$48 sps:$4 sm:$0xff]  }
 0x19f   :  { %2838 = vmatprep.subr.bf16.mxu0 %v7160_v35  ;;  %v7385_v3 = vld [vmem:[#allocation5 + $0x80c] ss:$48 sps:$4 sm:$0xff]  }
 0x1a1   :  { %2919 = vmatpush1.bf16.msra.mxu1 %v7299_v6  ;;  %v7292_v6 = vld [vmem:[#allocation5 + $0xb64] ss:$48 sps:$4 sm:$0xff]  }
 0x1a2   :  { %2839 = vmatpush1.bf16.msra.mxu0 %v7158_v38  ;;  %2920 = vmatprep.subr.bf16.mxu1 %v7307_v7  ;;  %v7250_v38 = vld [vmem:[#allocation5 + $0x8c4] ss:$48 sps:$4 sm:$0xff]   ;;  %v7383_v7 = vld [vmem:[#allocation5 + $0x808] ss:$48 sps:$4 sm:$0xff]  }
 0x1a3   :  { %2840 = vmatprep.subr.bf16.mxu0 %v7166_v39  ;;  %v7341_v39 = vld [vmem:[#allocation5 + $0x568] ss:$48 sps:$4 sm:$0xff]  }
 0x1a5   :  { %2921 = vmatpush1.bf16.msra.mxu1 %v7305_v10  ;;  %v7290_v10 = vld [vmem:[#allocation5 + $0xb60] ss:$48 sps:$4 sm:$0xff]  }
 0x1a6   :  { %2841 = vmatpush1.bf16.msra.mxu0 %v7164_v42  ;;  %2922 = vmatprep.subr.bf16.mxu1 %v7313_v11  ;;  %v7256_v42 = vld [vmem:[#allocation5 + $0x924] ss:$48 sps:$4 sm:$0xff]  }
 0x1a7   :  { %2842 = vmatprep.subr.bf16.mxu0 %v7172_v43  ;;  %v7347_v43 = vld [vmem:[#allocation5 + $0x5c8] ss:$48 sps:$4 sm:$0xff]   ;;  %v7298_v11 = vld [vmem:[#allocation5 + $0xbc4] ss:$48 sps:$4 sm:$0xff]  }
 0x1a9   :  { %2923 = vmatpush1.bf16.msra.mxu1 %v7311_v15 }
 0x1aa   :  { %2843 = vmatpush1.bf16.msra.mxu0 %v7170_v46  ;;  %2924 = vmatprep.subr.bf16.mxu1 %v7319_v16  ;;  %v7262_v46 = vld [vmem:[#allocation5 + $0x984] ss:$48 sps:$4 sm:$0xff]   ;;  %v7397_v16 = vld [vmem:[#allocation5 + $0x8cc] ss:$48 sps:$4 sm:$0xff]  }
 0x1ab   :  { %2844 = vmatprep.subr.bf16.mxu0 %v7178_v47  ;;  %v7353_v47 = vld [vmem:[#allocation5 + $0x628] ss:$48 sps:$4 sm:$0xff]  }
 0x1ad   :  { %2925 = vmatpush1.bf16.msra.mxu1 %v7317_v19 }
 0x1ae   :  { %2845 = vmatpush1.bf16.msra.mxu0 %v7176_v50  ;;  %2926 = vmatprep.subr.bf16.mxu1 %v7325_v20  ;;  %v7268_v50 = vld [vmem:[#allocation5 + $0x9e4] ss:$48 sps:$4 sm:$0xff]  }
 0x1af   :  { %2846 = vmatprep.subr.bf16.mxu0 %v7184_v51  ;;  %v7359_v51 = vld [vmem:[#allocation5 + $0x688] ss:$48 sps:$4 sm:$0xff]  }
 0x1b1   :  { %2927 = vmatpush1.bf16.msra.mxu1 %v7323_v23  ;;  %v7403_v23 = vld [vmem:[#allocation5 + $0x92c] ss:$48 sps:$4 sm:$0xff]  }
 0x1b2   :  { %2847 = vmatpush1.bf16.msra.mxu0 %v7182_v14  ;;  %2928 = vmatprep.subr.bf16.mxu1 %v7331_v24  ;;  %v7274_v14 = vld [vmem:[#allocation5 + $0xa44] ss:$48 sps:$4 sm:$0xff]  }
 0x1b3   :  { %2848 = vmatprep.subr.bf16.mxu0 %v7190_v55  ;;  %v7365_v55 = vld [vmem:[#allocation5 + $0x6e8] ss:$48 sps:$4 sm:$0xff]  }
 0x1b5   :  { %2929 = vmatpush1.bf16.msra.mxu1 %v7329_v27  ;;  %v7401_v27 = vld [vmem:[#allocation5 + $0x928] ss:$48 sps:$4 sm:$0xff]  }
 0x1b6   :  { %2849 = vmatpush1.bf16.msra.mxu0 %v7188_v60  ;;  %2930 = vmatprep.subr.bf16.mxu1 %v7337_v28  ;;  %v7272_v60 = vld [vmem:[#allocation5 + $0xa40] ss:$48 sps:$4 sm:$0xff]  }
 0x1b7   :  { %2850 = vmatprep.subr.bf16.mxu0 %v7196_v61  ;;  %v7280_v61 = vld [vmem:[#allocation5 + $0xaa4] ss:$48 sps:$4 sm:$0xff]  }
 0x1b9   :  { %2931 = vmatpush1.bf16.msra.mxu1 %v7335_v32  ;;  %v7316_v32 = vld [vmem:[#allocation8 + $0x24] ss:$8 sps:$4 sm:$0xff]  }
 0x1ba   :  { %2851 = vmatpush1.bf16.msra.mxu0 %v7194_v0  ;;  %2932 = vmatprep.subr.bf16.mxu1 %v7343_v34  ;;  %v7278_v0 = vld [vmem:[#allocation5 + $0xaa0] ss:$48 sps:$4 sm:$0xff]   ;;  %v7415_v34 = vld [vmem:[#allocation5 + $0x9ec] ss:$48 sps:$4 sm:$0xff]  }
 0x1bb   :  { %2852 = vmatprep.subr.bf16.mxu0 %v7202_v1  ;;  %v7377_v1 = vld [vmem:[#allocation5 + $0x7a8] ss:$48 sps:$4 sm:$0xff]  }
 0x1bd   :  { %2933 = vmatpush1.bf16.msra.mxu1 %v7341_v39  ;;  %v7320_v39 = vld [vmem:[#allocation8 + $0x30] ss:$8 sps:$4 sm:$0xff]  }
 0x1be   :  { %2853 = vmatpush1.bf16.msra.mxu0 %v7200_v4  ;;  %2934 = vmatprep.subr.bf16.mxu1 %v7349_v40  ;;  %v8318_v4 = vsub.s32 1, %v8313_v63  ;;  %v7328_v40 = vld [vmem:[#allocation8 + $0x44] ss:$8 sps:$4 sm:$0xff]  }
 0x1bf   :  { %2863 = vmatprep.subr.bf16.mxu0 %v7208_v5  ;;  %v7284_v5 = vld [vmem:[#allocation5 + $0xb00] ss:$48 sps:$4 sm:$0xff]  }
 0x1c1   :  { %2855 = vmatmul.mubr.bf16.vlgmr.msra.gmra.mrb[8].mxu0 %v8283_v53  ;;  %2935 = vmatpush1.bf16.msra.mxu1 %v7347_v43  ;;  %v7326_v43 = vld [vmem:[#allocation8 + $0x40] ss:$8 sps:$4 sm:$0xff]  }
 0x1c2   :  { %2864 = vmatpush1.bf16.msra.mxu0 %v7206_v8  ;;  %2895 = vmatprep.mubr.bf16.mxu0 %v8285_v56  ;;  %v7391_v8 = vld [vmem:[#allocation5 + $0x86c] ss:$48 sps:$4 sm:$0xff]  }
 0x1c3   :  { %2865 = vmatprep.subr.bf16.mxu0 %v7214_v9  ;;  %2945 = vmatprep.subr.bf16.mxu1 %v7355_v44  ;;  %v521_v9 = vrot.slane %v8315_v2, %v8318_v4  ;;  %v7334_v44 = vld [vmem:[#allocation8 + $0x54] ss:$8 sps:$4 sm:$0xff]  }
 0x1c4   :  { %2937 = vmatmul.mubr.bf16.vlgmr.msra.gmra.mrb[8].mxu1 %v8283_v53  ;;  %v7379_v53 = vld [vmem:[#allocation5 + $0x7ac] ss:$48 sps:$4 sm:$0xff]  }
 0x1c5   :  { %2946 = vmatpush1.bf16.msra.mxu1 %v7353_v47  ;;  %2977 = vmatprep.mubr.bf16.mxu1 %v8285_v56  ;;  %v7286_v56 = vld [vmem:[#allocation5 + $0xb04] ss:$48 sps:$4 sm:$0xff]  }
 0x1c6   :  { %2866 = vmatpush1.bf16.msra.mxu0 %v7212_v12  ;;  %2947 = vmatprep.subr.bf16.mxu1 %v7361_v48  ;;  %v7332_v47 = vld [vmem:[#allocation8 + $0x50] ss:$8 sps:$4 sm:$0xff]   ;;  %v7340_v48 = vld [vmem:[#allocation8 + $0x64] ss:$8 sps:$4 sm:$0xff]  }
 0x1c7   :  { %2867 = vmatprep.subr.bf16.mxu0 %v7220_v13  ;;  %v7389_v13 = vld [vmem:[#allocation5 + $0x868] ss:$48 sps:$4 sm:$0xff]  }
 0x1c9   :  { %2948 = vmatpush1.bf16.msra.mxu1 %v7359_v51  ;;  %v7338_v51 = vld [vmem:[#allocation8 + $0x60] ss:$8 sps:$4 sm:$0xff]  }
 0x1ca   :  { %2868 = vmatpush1.bf16.msra.mxu0 %v7218_v17  ;;  %2949 = vmatprep.subr.bf16.mxu1 %v7367_v52  ;;  %v7346_v52 = vld [vmem:[#allocation8 + $0x74] ss:$8 sps:$4 sm:$0xff]  }
 0x1cb   :  { %2869 = vmatprep.subr.bf16.mxu0 %v7226_v18  ;;  %v7296_v18 = vld [vmem:[#allocation5 + $0xbc0] ss:$48 sps:$4 sm:$0xff]  }
 0x1cd   :  { %2950 = vmatpush1.bf16.msra.mxu1 %v7365_v55  ;;  %v7344_v55 = vld [vmem:[#allocation8 + $0x70] ss:$8 sps:$4 sm:$0xff]  }
 0x1ce   :  { %2870 = vmatpush1.bf16.msra.mxu0 %v7224_v21  ;;  %2951 = vmatprep.subr.bf16.mxu1 %v7373_v57  ;;  %v7304_v21 = vld [vmem:[#allocation8 + $0x4] ss:$8 sps:$4 sm:$0xff]  }
 0x1cf   :  { %2871 = vmatprep.subr.bf16.mxu0 %v7232_v22  ;;  %v7395_v22 = vld [vmem:[#allocation5 + $0x8c8] ss:$48 sps:$4 sm:$0xff]  }
 0x1d0   :  { %v7352_v57 = vld [vmem:[#allocation8 + $0x84] ss:$8 sps:$4 sm:$0xff]  }
 0x1d1   :  { %2952 = vmatpush1.bf16.msra.mxu1 %v7371_v62  ;;  %v7356_v62 = vld [vmem:[#allocation8 + $0x90] ss:$8 sps:$4 sm:$0xff]  }
 0x1d2   :  { %2872 = vmatpush1.bf16.msra.mxu0 %v7230_v25  ;;  %2953 = vmatprep.subr.bf16.mxu1 %v7379_v53  ;;  %v7302_v25 = vld [vmem:[#allocation8] ss:$8 sps:$4 sm:$0xff]   ;;  %v7364_v53 = vld [vmem:[#allocation8 + $0xa4] ss:$8 sps:$4 sm:$0xff]  }
 0x1d3   :  { %2873 = vmatprep.subr.bf16.mxu0 %v7238_v26  ;;  %v7310_v26 = vld [vmem:[#allocation8 + $0x14] ss:$8 sps:$4 sm:$0xff]  }
 0x1d4   :  { %v8307_v31 = vpop.f32.mrb[0].mxu0 }
 0x1d5   :  { %v8309_v33 = vpop.f32.mrb[1].mxu0  ;;  %2954 = vmatpush1.bf16.msra.mxu1 %v7377_v1  ;;  %v7368_v1 = vld [vmem:[#allocation8 + $0xb0] ss:$8 sps:$4 sm:$0xff]  }
 0x1d6   :  { %v2573_v35 = vpop.f32.mrb[2].mxu0  ;;  %2874 = vmatpush1.bf16.msra.mxu0 %v7236_v29  ;;  %2955 = vmatprep.subr.bf16.mxu1 %v7385_v3  ;;  %v6727_v17 = vadd.f32 %v8309_v33, %v521_v9  ;;  %v7308_v29 = vld [vmem:[#allocation8 + $0x10] ss:$8 sps:$4 sm:$0xff]   ;;  %v7407_v33 = vld [vmem:[#allocation5 + $0x988] ss:$48 sps:$4 sm:$0xff]  }
 0x1d7   :  { %v2574_v37 = vpop.f32.mrb[3].mxu0  ;;  %2875 = vmatprep.subr.bf16.mxu0 %v7244_v30  ;;  %v8322_v12 = vpop.f32.mrb[0].mxu1  ;;  %v7409_v30 = vld [vmem:[#allocation5 + $0x98c] ss:$48 sps:$4 sm:$0xff]   ;;  %v7376_v3 = vld [vmem:[#allocation8 + $0xc4] ss:$8 sps:$4 sm:$0xff]  }
 0x1d8   :  { %v8324_v15 = vpop.f32.mrb[1].mxu1  ;;  %v2987_v24 = vmax.f32 %v6727_v17, 0.0  ;;  %v7314_v35 = vld [vmem:[#allocation8 + $0x20] ss:$8 sps:$4 sm:$0xff]   ;;  %v7413_v37 = vld [vmem:[#allocation5 + $0x9e8] ss:$48 sps:$4 sm:$0xff]  }
 0x1d9   :  { %v2655_v19 = vpop.f32.mrb[2].mxu1  ;;  %2956 = vmatpush1.bf16.msra.mxu1 %v7383_v7  ;;  %v7382_v7 = vld [vmem:[#allocation8 + $0xd4] ss:$8 sps:$4 sm:$0xff]  }
 0x1da   :  { %2876 = vmatpush1.bf16.msra.mxu0 %v7242_v36  ;;  %v2656_v20 = vpop.f32.mrb[3].mxu1  ;;  %2957 = vmatprep.subr.bf16.mxu1 %v7391_v8  ;;  %v2999_v28 = vpack.c.bf16 %v2987_v24, %v2987_v24  ;;  %v7322_v36 = vld [vmem:[#allocation8 + $0x34] ss:$8 sps:$4 sm:$0xff]   ;;  %v8333_v8 = vsub.s32 3, %v8313_v63  ;;  %v7392_v19 = vld [vmem:[#allocation8 + $0xf0] ss:$8 sps:$4 sm:$0xff]  }
 0x1db   :  { %2877 = vmatprep.subr.bf16.mxu0 %v7250_v38  ;;  %v7421_v38 = vld [vmem:[#allocation5 + $0xa4c] ss:$48 sps:$4 sm:$0xff]   ;;  %v7394_v17 = vld [vmem:[#allocation8 + $0xf4] ss:$8 sps:$4 sm:$0xff]  }
 0x1dd   :  { %2958 = vmatpush1.bf16.msra.mxu1 %v7389_v13  ;;  %v7386_v13 = vld [vmem:[#allocation8 + $0xe0] ss:$8 sps:$4 sm:$0xff]  }
 0x1de   :  { %2878 = vmatpush1.bf16.msra.mxu0 %v7248_v41  ;;  %2959 = vmatprep.subr.bf16.mxu1 %v7397_v16  ;;  %v7419_v41 = vld [vmem:[#allocation5 + $0xa48] ss:$48 sps:$4 sm:$0xff]  }
 0x1df   :  { %2879 = vmatprep.subr.bf16.mxu0 %v7256_v42  ;;  %v7427_v42 = vld [vmem:[#allocation5 + $0xaac] ss:$48 sps:$4 sm:$0xff]  }
 0x1e1   :  { %2960 = vmatpush1.bf16.msra.mxu1 %v7395_v22 }
 0x1e2   :  { %2880 = vmatpush1.bf16.msra.mxu0 %v7254_v45  ;;  %2961 = vmatprep.subr.bf16.mxu1 %v7403_v23  ;;  %v7425_v45 = vld [vmem:[#allocation5 + $0xaa8] ss:$48 sps:$4 sm:$0xff]   ;;  %v7398_v23 = vld [vmem:[#allocation8 + $0x100] ss:$8 sps:$4 sm:$0xff]  }
 0x1e3   :  { %2881 = vmatprep.subr.bf16.mxu0 %v7262_v46  ;;  %v7433_v46 = vld [vmem:[#allocation5 + $0xb0c] ss:$48 sps:$4 sm:$0xff]  }
 0x1e5   :  { %2962 = vmatpush1.bf16.msra.mxu1 %v7401_v27  ;;  %v7412_v27 = vld [vmem:[#allocation8 + $0x124] ss:$8 sps:$4 sm:$0xff]  }
 0x1e6   :  { %2882 = vmatpush1.bf16.msra.mxu0 %v7260_v49  ;;  %2963 = vmatprep.subr.bf16.mxu1 %v7409_v30  ;;  %v7431_v49 = vld [vmem:[#allocation5 + $0xb08] ss:$48 sps:$4 sm:$0xff]  }
 0x1e7   :  { %2883 = vmatprep.subr.bf16.mxu0 %v7268_v50  ;;  %v7439_v50 = vld [vmem:[#allocation5 + $0xb6c] ss:$48 sps:$4 sm:$0xff]   ;;  %v7424_v30 = vld [vmem:[#allocation8 + $0x144] ss:$8 sps:$4 sm:$0xff]  }
 0x1e9   :  { %2964 = vmatpush1.bf16.msra.mxu1 %v7407_v33  ;;  %v7430_v33 = vld [vmem:[#allocation8 + $0x154] ss:$8 sps:$4 sm:$0xff]  }
 0x1ea   :  { %2884 = vmatpush1.bf16.msra.mxu0 %v7266_v54  ;;  %2965 = vmatprep.subr.bf16.mxu1 %v7415_v34  ;;  %v7437_v54 = vld [vmem:[#allocation5 + $0xb68] ss:$48 sps:$4 sm:$0xff]   ;;  %v7428_v34 = vld [vmem:[#allocation8 + $0x150] ss:$8 sps:$4 sm:$0xff]  }
 0x1eb   :  { %2885 = vmatprep.subr.bf16.mxu0 %v7274_v14  ;;  %v7445_v14 = vld [vmem:[#allocation5 + $0xbcc] ss:$48 sps:$4 sm:$0xff]  }
 0x1ed   :  { %2966 = vmatpush1.bf16.msra.mxu1 %v7413_v37 }
 0x1ee   :  { %2886 = vmatpush1.bf16.msra.mxu0 %v7272_v60  ;;  %2967 = vmatprep.subr.bf16.mxu1 %v7421_v38  ;;  %v7350_v60 = vld [vmem:[#allocation8 + $0x80] ss:$8 sps:$4 sm:$0xff]  }
 0x1ef   :  { %2887 = vmatprep.subr.bf16.mxu0 %v7280_v61  ;;  %v7358_v61 = vld [vmem:[#allocation8 + $0x94] ss:$8 sps:$4 sm:$0xff]  }
 0x1f1   :  { %2968 = vmatpush1.bf16.msra.mxu1 %v7419_v41  ;;  %v7442_v41 = vld [vmem:[#allocation8 + $0x174] ss:$8 sps:$4 sm:$0xff]  }
 0x1f2   :  { %2888 = vmatpush1.bf16.msra.mxu0 %v7278_v0  ;;  %2969 = vmatprep.subr.bf16.mxu1 %v7427_v42  ;;  %v7362_v0 = vld [vmem:[#allocation8 + $0xa0] ss:$8 sps:$4 sm:$0xff]   ;;  %v7440_v42 = vld [vmem:[#allocation8 + $0x170] ss:$8 sps:$4 sm:$0xff]  }
 0x1f3   :  { %2889 = vmatprep.subr.bf16.mxu0 %v7286_v56  ;;  %v7370_v56 = vld [vmem:[#allocation8 + $0xb4] ss:$8 sps:$4 sm:$0xff]  }
 0x1f5   :  { %2970 = vmatpush1.bf16.msra.mxu1 %v7425_v45  ;;  %v7451_v45 = vld [vmem:[#allocation8 + $0x194] ss:$8 sps:$4 sm:$0xff]  }
 0x1f6   :  { %2890 = vmatpush1.bf16.msra.mxu0 %v7284_v5  ;;  %2971 = vmatprep.subr.bf16.mxu1 %v7433_v46  ;;  %v7374_v5 = vld [vmem:[#allocation8 + $0xc0] ss:$8 sps:$4 sm:$0xff]   ;;  %v7449_v46 = vld [vmem:[#allocation8 + $0x190] ss:$8 sps:$4 sm:$0xff]  }
 0x1f7   :  { %2891 = vmatprep.subr.bf16.mxu0 %v7292_v6  ;;  %v8330_v6 = vsub.s32 0, %v8313_v63 }
 0x1f9   :  { %2972 = vmatpush1.bf16.msra.mxu1 %v7431_v49  ;;  %v517_v9 = vrot.slane %v8315_v2, %v8330_v6  ;;  %v7457_v49 = vld [vmem:[#allocation8 + $0x1b4] ss:$8 sps:$4 sm:$0xff]  }
 0x1fa   :  { %2892 = vmatpush1.bf16.msra.mxu0 %v7290_v10  ;;  %2973 = vmatprep.subr.bf16.mxu1 %v7439_v50  ;;  %v7388_v10 = vld [vmem:[#allocation8 + $0xe4] ss:$8 sps:$4 sm:$0xff]   ;;  %v7455_v50 = vld [vmem:[#allocation8 + $0x1b0] ss:$8 sps:$4 sm:$0xff]  }
 0x1fb   :  { %2893 = vmatprep.subr.bf16.mxu0 %v7298_v11  ;;  %v529_v11 = vrot.slane %v8315_v2, %v8333_v8  ;;  %v6726_v16 = vadd.f32 %v8307_v31, %v517_v9  ;;  %v7404_v31 = vld [vmem:[#allocation8 + $0x110] ss:$8 sps:$4 sm:$0xff]  }
 0x1fd   :  { %2974 = vmatpush1.bf16.msra.mxu1 %v7437_v54  ;;  %v2986_v20 = vmax.f32 %v6726_v16, 0.0  ;;  %v8344_v54 = vsub.s32 2, %v8313_v63 }
 0x1fe   :  { %2894 = vmatpush1.bf16.msra.mxu0 %v7296_v18  ;;  %2975 = vmatprep.subr.bf16.mxu1 %v7445_v14  ;;  %v6729_v18 = vadd.f32 %v8324_v15, %v529_v11  ;;  %v7410_v15 = vld [vmem:[#allocation8 + $0x120] ss:$8 sps:$4 sm:$0xff]   ;;  %v7463_v14 = vld [vmem:[#allocation8 + $0x1d4] ss:$8 sps:$4 sm:$0xff]  }
 0x1ff   :  { %3406 = vmatprep.subr.bf16.mxu0 %v7304_v21  ;;  %v7400_v21 = vld [vmem:[#allocation8 + $0x104] ss:$8 sps:$4 sm:$0xff]   ;;  %v2998_v24 = vpack.c.bf16 %v2986_v20, %v2986_v20  ;;  %v7476_v20 = vld [vmem:[#allocation8 + $0x220] ss:$8 sps:$4 sm:$0xff]  }
 0x200   :  { %v2989_v22 = vmax.f32 %v6729_v18, 0.0 }
 0x201   :  { %2896 = vmatmul.mubr.bf16.vlgmr.msra.gmra.mrb[8].mxu0 %v8291_v59  ;;  %2976 = vmatpush1.bf16.msra.mxu1 %v7443_v58  ;;  %v525_v58 = vrot.slane %v8315_v2, %v8344_v54 }
 0x202   :  { %3407 = vmatpush1.bf16.msra.mxu0 %v7302_v25  ;;  %3438 = vmatprep.mubr.bf16.mxu0 %v2999_v28  ;;  %v7406_v25 = vld [vmem:[#allocation8 + $0x114] ss:$8 sps:$4 sm:$0xff]  }
 0x203   :  { %3408 = vmatprep.subr.bf16.mxu0 %v7310_v26  ;;  %v3001_v26 = vpack.c.bf16 %v2989_v22, %v2989_v22  ;;  %v7418_v28 = vld [vmem:[#allocation8 + $0x134] ss:$8 sps:$4 sm:$0xff]   ;;  %v7479_v22 = vld [vmem:[#allocation8 + $0x230] ss:$8 sps:$4 sm:$0xff]  }
 0x204   :  { %2978 = vmatmul.mubr.bf16.vlgmr.msra.gmra.mrb[8].mxu1 %v8291_v59  ;;  %v7380_v59 = vld [vmem:[#allocation8 + $0xd0] ss:$8 sps:$4 sm:$0xff]  }
 0x206   :  { %3409 = vmatpush1.bf16.msra.mxu0 %v7308_v29  ;;  %v7416_v29 = vld [vmem:[#allocation8 + $0x130] ss:$8 sps:$4 sm:$0xff]  }
 0x207   :  { %3410 = vmatprep.subr.bf16.mxu0 %v7316_v32  ;;  %v7422_v32 = vld [vmem:[#allocation8 + $0x140] ss:$8 sps:$4 sm:$0xff]  }
 0x20a   :  { %3411 = vmatpush1.bf16.msra.mxu0 %v7314_v35  ;;  %v7436_v35 = vld [vmem:[#allocation8 + $0x164] ss:$8 sps:$4 sm:$0xff]  }
 0x20b   :  { %3412 = vmatprep.subr.bf16.mxu0 %v7322_v36 }
 0x20e   :  { %3413 = vmatpush1.bf16.msra.mxu0 %v7320_v39  ;;  %v7434_v39 = vld [vmem:[#allocation8 + $0x160] ss:$8 sps:$4 sm:$0xff]  }
 0x20f   :  { %3414 = vmatprep.subr.bf16.mxu0 %v7328_v40 }
 0x212   :  { %3415 = vmatpush1.bf16.msra.mxu0 %v7326_v43  ;;  %v7448_v43 = vld [vmem:[#allocation8 + $0x184] ss:$8 sps:$4 sm:$0xff]  }
 0x213   :  { %3416 = vmatprep.subr.bf16.mxu0 %v7334_v44  ;;  %v7446_v44 = vld [vmem:[#allocation8 + $0x180] ss:$8 sps:$4 sm:$0xff]  }
 0x216   :  { %3417 = vmatpush1.bf16.msra.mxu0 %v7332_v47  ;;  %v7454_v47 = vld [vmem:[#allocation8 + $0x1a4] ss:$8 sps:$4 sm:$0xff]  }
 0x217   :  { %3418 = vmatprep.subr.bf16.mxu0 %v7340_v48  ;;  %v7452_v48 = vld [vmem:[#allocation8 + $0x1a0] ss:$8 sps:$4 sm:$0xff]  }
 0x21a   :  { %3419 = vmatpush1.bf16.msra.mxu0 %v7338_v51  ;;  %v7460_v51 = vld [vmem:[#allocation8 + $0x1c4] ss:$8 sps:$4 sm:$0xff]  }
 0x21b   :  { %3420 = vmatprep.subr.bf16.mxu0 %v7346_v52  ;;  %v7458_v52 = vld [vmem:[#allocation8 + $0x1c0] ss:$8 sps:$4 sm:$0xff]  }
 0x21e   :  { %3421 = vmatpush1.bf16.msra.mxu0 %v7344_v55  ;;  %v536_v55 = vsub.s32 5, %v8313_v63 }
 0x21f   :  { %3422 = vmatprep.subr.bf16.mxu0 %v7352_v57  ;;  %v7461_v57 = vld [vmem:[#allocation8 + $0x1d0] ss:$8 sps:$4 sm:$0xff]  }
 0x222   :  { %3423 = vmatpush1.bf16.msra.mxu0 %v7350_v60  ;;  %v7466_v60 = vld [vmem:[#allocation8 + $0x1e4] ss:$8 sps:$4 sm:$0xff]  }
 0x223   :  { %3424 = vmatprep.subr.bf16.mxu0 %v7358_v61  ;;  %v537_v61 = vrot.slane %v8315_v2, %v536_v55  ;;  %v7511_v55 = vld [vmem:[#allocation8 + $0x2d4] ss:$8 sps:$4 sm:$0xff]  }
 0x226   :  { %3425 = vmatpush1.bf16.msra.mxu0 %v7356_v62  ;;  %v7464_v62 = vld [vmem:[#allocation8 + $0x1e0] ss:$8 sps:$4 sm:$0xff]  }
 0x227   :  { %3426 = vmatprep.subr.bf16.mxu0 %v7364_v53 }
 0x22a   :  { %3427 = vmatpush1.bf16.msra.mxu0 %v7362_v0  ;;  %v6728_v0 = vadd.f32 %v8322_v12, %v525_v58  ;;  %v7473_v12 = vld [vmem:[#allocation8 + $0x210] ss:$8 sps:$4 sm:$0xff]  }
 0x22b   :  { %3428 = vmatprep.subr.bf16.mxu0 %v7370_v56  ;;  %v7469_v56 = vld [vmem:[#allocation8 + $0x1f4] ss:$8 sps:$4 sm:$0xff]   ;;  %v7509_v58 = vld [vmem:[#allocation8 + $0x2d0] ss:$8 sps:$4 sm:$0xff]  }
 0x22c   :  { %v2988_v9 = vmax.f32 %v6728_v0, 0.0  ;;  %v7514_v0 = vld [vmem:[#allocation8 + $0x2e4] ss:$8 sps:$4 sm:$0xff]  }
 0x22e   :  { %3429 = vmatpush1.bf16.msra.mxu0 %v7368_v1  ;;  %v3000_v16 = vpack.c.bf16 %v2988_v9, %v2988_v9  ;;  %v7517_v9 = vld [vmem:[#allocation8 + $0x2f4] ss:$8 sps:$4 sm:$0xff]  }
 0x22f   :  { %3430 = vmatprep.subr.bf16.mxu0 %v7376_v3 }
 0x232   :  { %3431 = vmatpush1.bf16.msra.mxu0 %v7374_v5 }
 0x233   :  { %3432 = vmatprep.subr.bf16.mxu0 %v7382_v7 }
 0x236   :  { %3433 = vmatpush1.bf16.msra.mxu0 %v7380_v59  ;;  %v7467_v59 = vld [vmem:[#allocation8 + $0x1f0] ss:$8 sps:$4 sm:$0xff]  }
 0x237   :  { %3434 = vmatprep.subr.bf16.mxu0 %v7388_v10  ;;  %v7472_v10 = vld [vmem:[#allocation8 + $0x204] ss:$8 sps:$4 sm:$0xff]  }
 0x23a   :  { %3435 = vmatpush1.bf16.msra.mxu0 %v7386_v13  ;;  %v7470_v13 = vld [vmem:[#allocation8 + $0x200] ss:$8 sps:$4 sm:$0xff]  }
 0x23b   :  { %3436 = vmatprep.subr.bf16.mxu0 %v7394_v17  ;;  %v7475_v17 = vld [vmem:[#allocation8 + $0x214] ss:$8 sps:$4 sm:$0xff]  }
 0x23e   :  { %3437 = vmatpush1.bf16.msra.mxu0 %v7392_v19  ;;  %v7478_v19 = vld [vmem:[#allocation8 + $0x224] ss:$8 sps:$4 sm:$0xff]  }
 0x23f   :  { %3447 = vmatprep.subr.bf16.mxu0 %v7400_v21  ;;  %v7481_v21 = vld [vmem:[#allocation8 + $0x234] ss:$8 sps:$4 sm:$0xff]  }
 0x241   :  { %3439 = vmatmul.mubr.bf16.vlgmr.msra.gmra.mrb[12].mxu0 %v2998_v24  ;;  %v7482_v24 = vld [vmem:[#allocation8 + $0x240] ss:$8 sps:$4 sm:$0xff]  }
 0x242   :  { %3448 = vmatpush1.bf16.msra.mxu0 %v7398_v23  ;;  %3479 = vmatprep.mubr.bf16.mxu0 %v3001_v26  ;;  %v7484_v23 = vld [vmem:[#allocation8 + $0x244] ss:$8 sps:$4 sm:$0xff]   ;;  %v7485_v26 = vld [vmem:[#allocation8 + $0x250] ss:$8 sps:$4 sm:$0xff]  }
 0x243   :  { %3449 = vmatprep.subr.bf16.mxu0 %v7406_v25  ;;  %v7487_v25 = vld [vmem:[#allocation8 + $0x254] ss:$8 sps:$4 sm:$0xff]  }
 0x246   :  { %3450 = vmatpush1.bf16.msra.mxu0 %v7404_v31  ;;  %v7490_v31 = vld [vmem:[#allocation8 + $0x264] ss:$8 sps:$4 sm:$0xff]  }
 0x247   :  { %3451 = vmatprep.subr.bf16.mxu0 %v7412_v27  ;;  %v7488_v27 = vld [vmem:[#allocation8 + $0x260] ss:$8 sps:$4 sm:$0xff]  }
 0x24a   :  { %3452 = vmatpush1.bf16.msra.mxu0 %v7410_v15  ;;  %v7493_v15 = vld [vmem:[#allocation8 + $0x274] ss:$8 sps:$4 sm:$0xff]  }
 0x24b   :  { %3453 = vmatprep.subr.bf16.mxu0 %v7418_v28  ;;  %v7491_v28 = vld [vmem:[#allocation8 + $0x270] ss:$8 sps:$4 sm:$0xff]  }
 0x24e   :  { %3454 = vmatpush1.bf16.msra.mxu0 %v7416_v29  ;;  %v7587_v29 = vld [vmem:[#allocation11] ss:$16 sps:$4 sm:$0xff]  }
 0x24f   :  { %3455 = vmatprep.subr.bf16.mxu0 %v7424_v30  ;;  %v7589_v30 = vld [vmem:[#allocation11 + $0x4] ss:$16 sps:$4 sm:$0xff]  }
 0x250   :  { %3898 = vmatprep.subr.bf16.mxu1 %v7589_v30  ;;  %v7661_v30 = vld [vmem:[#allocation11 + $0x184] ss:$16 sps:$4 sm:$0xff]  }
 0x251   :  { %3899 = vmatpush1.bf16.msra.mxu1 %v7587_v29  ;;  %v7659_v29 = vld [vmem:[#allocation11 + $0x180] ss:$16 sps:$4 sm:$0xff]  }
 0x252   :  { %3456 = vmatpush1.bf16.msra.mxu0 %v7422_v32  ;;  %v7496_v32 = vld [vmem:[#allocation8 + $0x284] ss:$8 sps:$4 sm:$0xff]  }
 0x253   :  { %3457 = vmatprep.subr.bf16.mxu0 %v7430_v33  ;;  %v7494_v33 = vld [vmem:[#allocation8 + $0x280] ss:$8 sps:$4 sm:$0xff]  }
 0x254   :  { %v8341_v36 = vpop.f32.mrb[4].mxu0 }
 0x255   :  { %v2735_v37 = vpop.f32.mrb[5].mxu0 }
 0x256   :  { %v2737_v38 = vpop.f32.mrb[6].mxu0  ;;  %3458 = vmatpush1.bf16.msra.mxu0 %v7428_v34  ;;  %v6731_v3 = vadd.f32 %v2735_v37, %v537_v61  ;;  %v7593_v34 = vld [vmem:[#allocation11 + $0x20] ss:$16 sps:$4 sm:$0xff]   ;;  %v7625_v61 = vld [vmem:[#allocation11 + $0xc4] ss:$16 sps:$4 sm:$0xff]  }
 0x257   :  { %v2738_v40 = vpop.f32.mrb[7].mxu0  ;;  %3459 = vmatprep.subr.bf16.mxu0 %v7436_v35  ;;  %v8350_v53 = vpop.f32.mrb[4].mxu1  ;;  %v7595_v35 = vld [vmem:[#allocation11 + $0x24] ss:$16 sps:$4 sm:$0xff]  }
 0x258   :  { %v8353_v1 = vpop.f32.mrb[5].mxu1  ;;  %v2991_v11 = vmax.f32 %v6731_v3, 0.0  ;;  %v7499_v37 = vld [vmem:[#allocation8 + $0x294] ss:$8 sps:$4 sm:$0xff]   ;;  %3900 = vmatprep.subr.bf16.mxu1 %v7595_v35  ;;  %v7497_v38 = vld [vmem:[#allocation8 + $0x290] ss:$8 sps:$4 sm:$0xff]  }
 0x259   :  { %v2819_v5 = vpop.f32.mrb[6].mxu1  ;;  %3901 = vmatpush1.bf16.msra.mxu1 %v7593_v34  ;;  %v7601_v40 = vld [vmem:[#allocation11 + $0x44] ss:$16 sps:$4 sm:$0xff]   ;;  %v7665_v34 = vld [vmem:[#allocation11 + $0x1a0] ss:$16 sps:$4 sm:$0xff]  }
 0x25a   :  { %3460 = vmatpush1.bf16.msra.mxu0 %v7434_v39  ;;  %v2820_v7 = vpop.f32.mrb[7].mxu1  ;;  %v3003_v18 = vpack.c.bf16 %v2991_v11, %v2991_v11  ;;  %v7599_v39 = vld [vmem:[#allocation11 + $0x40] ss:$16 sps:$4 sm:$0xff]   ;;  %3902 = vmatprep.subr.bf16.mxu1 %v7601_v40  ;;  %v7667_v35 = vld [vmem:[#allocation11 + $0x1a4] ss:$16 sps:$4 sm:$0xff]  }
 0x25b   :  { %3461 = vmatprep.subr.bf16.mxu0 %v7442_v41  ;;  %v7502_v41 = vld [vmem:[#allocation8 + $0x2a4] ss:$8 sps:$4 sm:$0xff]   ;;  %v7512_v3 = vld [vmem:[#allocation8 + $0x2e0] ss:$8 sps:$4 sm:$0xff]   ;;  %v7515_v11 = vld [vmem:[#allocation8 + $0x2f0] ss:$8 sps:$4 sm:$0xff]  }
 0x25c   :  { %v7629_v5 = vld [vmem:[#allocation11 + $0xe0] ss:$16 sps:$4 sm:$0xff]   ;;  %v7631_v7 = vld [vmem:[#allocation11 + $0xe4] ss:$16 sps:$4 sm:$0xff]  }
 0x25d   :  { %3903 = vmatpush1.bf16.msra.mxu1 %v7599_v39  ;;  %v7673_v39 = vld [vmem:[#allocation11 + $0x1c4] ss:$16 sps:$4 sm:$0xff]  }
 0x25e   :  { %3462 = vmatpush1.bf16.msra.mxu0 %v7440_v42  ;;  %v7500_v42 = vld [vmem:[#allocation8 + $0x2a0] ss:$8 sps:$4 sm:$0xff]   ;;  %v7538_v40 = vld [vmem:[#allocation8 + $0x364] ss:$8 sps:$4 sm:$0xff]  }
 0x25f   :  { %3463 = vmatprep.subr.bf16.mxu0 %v7448_v43  ;;  %v7605_v43 = vld [vmem:[#allocation11 + $0x60] ss:$16 sps:$4 sm:$0xff]  }
 0x262   :  { %3464 = vmatpush1.bf16.msra.mxu0 %v7446_v44  ;;  %v7607_v44 = vld [vmem:[#allocation11 + $0x64] ss:$16 sps:$4 sm:$0xff]  }
 0x263   :  { %3465 = vmatprep.subr.bf16.mxu0 %v7451_v45  ;;  %v7505_v45 = vld [vmem:[#allocation8 + $0x2b4] ss:$8 sps:$4 sm:$0xff]   ;;  %3904 = vmatprep.subr.bf16.mxu1 %v7607_v44 }
 0x264   :  { %3905 = vmatpush1.bf16.msra.mxu1 %v7605_v43 }
 0x266   :  { %3466 = vmatpush1.bf16.msra.mxu0 %v7449_v46  ;;  %v7503_v46 = vld [vmem:[#allocation8 + $0x2b0] ss:$8 sps:$4 sm:$0xff]  }
 0x267   :  { %3467 = vmatprep.subr.bf16.mxu0 %v7454_v47  ;;  %v7611_v47 = vld [vmem:[#allocation11 + $0x80] ss:$16 sps:$4 sm:$0xff]  }
 0x26a   :  { %3468 = vmatpush1.bf16.msra.mxu0 %v7452_v48  ;;  %v7613_v48 = vld [vmem:[#allocation11 + $0x84] ss:$16 sps:$4 sm:$0xff]  }
 0x26b   :  { %3469 = vmatprep.subr.bf16.mxu0 %v7457_v49  ;;  %v7508_v49 = vld [vmem:[#allocation8 + $0x2c4] ss:$8 sps:$4 sm:$0xff]   ;;  %3906 = vmatprep.subr.bf16.mxu1 %v7613_v48  ;;  %v7541_v48 = vld [vmem:[#allocation8 + $0x374] ss:$8 sps:$4 sm:$0xff]  }
 0x26c   :  { %3907 = vmatpush1.bf16.msra.mxu1 %v7611_v47 }
 0x26e   :  { %3470 = vmatpush1.bf16.msra.mxu0 %v7455_v50  ;;  %v7506_v50 = vld [vmem:[#allocation8 + $0x2c0] ss:$8 sps:$4 sm:$0xff]  }
 0x26f   :  { %3471 = vmatprep.subr.bf16.mxu0 %v7460_v51  ;;  %v7617_v51 = vld [vmem:[#allocation11 + $0xa0] ss:$16 sps:$4 sm:$0xff]  }
 0x272   :  { %3472 = vmatpush1.bf16.msra.mxu0 %v7458_v52  ;;  %v7619_v52 = vld [vmem:[#allocation11 + $0xa4] ss:$16 sps:$4 sm:$0xff]  }
 0x273   :  { %3473 = vmatprep.subr.bf16.mxu0 %v7463_v14  ;;  %v532_v14 = vsub.s32 4, %v8313_v63  ;;  %3908 = vmatprep.subr.bf16.mxu1 %v7619_v52  ;;  %v7544_v52 = vld [vmem:[#allocation8 + $0x384] ss:$8 sps:$4 sm:$0xff]  }
 0x274   :  { %3909 = vmatpush1.bf16.msra.mxu1 %v7617_v51  ;;  %v7685_v51 = vld [vmem:[#allocation11 + $0xc] ss:$16 sps:$4 sm:$0xff]  }
 0x275   :  { %3910 = vmatprep.subr.bf16.mxu1 %v7625_v61  ;;  %v7553_v61 = vld [vmem:[#allocation8 + $0x3b4] ss:$8 sps:$4 sm:$0xff]  }
 0x276   :  { %3474 = vmatpush1.bf16.msra.mxu0 %v7461_v57  ;;  %v544_v57 = vsub.s32 7, %v8313_v63 }
 0x277   :  { %3475 = vmatprep.subr.bf16.mxu0 %v7466_v60  ;;  %v7623_v60 = vld [vmem:[#allocation11 + $0xc0] ss:$16 sps:$4 sm:$0xff]  }
 0x278   :  { %3911 = vmatpush1.bf16.msra.mxu1 %v7623_v60  ;;  %v7548_v60 = vld [vmem:[#allocation8 + $0x3a0] ss:$8 sps:$4 sm:$0xff]  }
 0x279   :  { %3912 = vmatprep.subr.bf16.mxu1 %v7631_v7  ;;  %v8364_v7 = vld [vmem:[#allocation7 + $0x8] sm:$0xf] }
 0x27a   :  { %3476 = vmatpush1.bf16.msra.mxu0 %v7464_v62  ;;  %v533_v62 = vrot.slane %v8315_v2, %v532_v14  ;;  %v7542_v14 = vld [vmem:[#allocation8 + $0x380] ss:$8 sps:$4 sm:$0xff]  }
 0x27b   :  { %3477 = vmatprep.subr.bf16.mxu0 %v7469_v56  ;;  %v545_v56 = vrot.slane %v8315_v2, %v544_v57  ;;  %v7520_v2 = vld [vmem:[#allocation8 + $0x304] ss:$8 sps:$4 sm:$0xff]   ;;  %v7545_v57 = vld [vmem:[#allocation8 + $0x390] ss:$8 sps:$4 sm:$0xff]  }
 0x27c   :  { %3913 = vmatpush1.bf16.msra.mxu1 %v7629_v5  ;;  %v7559_v5 = vld [vmem:[#allocation8 + $0x3d4] ss:$8 sps:$4 sm:$0xff]  }
 0x27e   :  { %3478 = vmatpush1.bf16.msra.mxu0 %v7467_v59  ;;  %v6730_v59 = vadd.f32 %v8341_v36, %v533_v62  ;;  %v7643_v36 = vld [vmem:[#allocation11 + $0x124] ss:$16 sps:$4 sm:$0xff]  }
 0x27f   :  { %4382 = vmatprep.subr.bf16.mxu0 %v7472_v10  ;;  %v6733_v10 = vadd.f32 %v8353_v1, %v545_v56  ;;  %v7551_v62 = vld [vmem:[#allocation8 + $0x3b0] ss:$8 sps:$4 sm:$0xff]   ;;  %v7554_v56 = vld [vmem:[#allocation8 + $0x3c0] ss:$8 sps:$4 sm:$0xff]  }
 0x281   :  { %3480 = vmatmul.mubr.bf16.vlgmr.msra.gmra.mrb[12].mxu0 %v3000_v16  ;;  %v7637_v16 = vld [vmem:[#allocation11 + $0x104] ss:$16 sps:$4 sm:$0xff]  }
 0x282   :  { %4383 = vmatpush1.bf16.msra.mxu0 %v7470_v13  ;;  %4414 = vmatprep.mubr.bf16.mxu0 %v3003_v18  ;;  %v7635_v13 = vld [vmem:[#allocation11 + $0x100] ss:$16 sps:$4 sm:$0xff]   ;;  %v2993_v18 = vmax.f32 %v6733_v10, 0.0 }
 0x283   :  { %4384 = vmatprep.subr.bf16.mxu0 %v7475_v17  ;;  %v2990_v17 = vmax.f32 %v6730_v59, 0.0  ;;  %3914 = vmatprep.subr.bf16.mxu1 %v7637_v16  ;;  %v7557_v59 = vld [vmem:[#allocation8 + $0x3d0] ss:$8 sps:$4 sm:$0xff]   ;;  %v7560_v16 = vld [vmem:[#allocation8 + $0x3e0] ss:$8 sps:$4 sm:$0xff]  }
 0x284   :  { %3915 = vmatpush1.bf16.msra.mxu1 %v7635_v13  ;;  %v3005_v1 = vpack.c.bf16 %v2993_v18, %v2993_v18  ;;  %v553_v13 = vrot.slane %v8364_v7, %v8318_v4 }
 0x285   :  { %3916 = vmatprep.subr.bf16.mxu1 %v7643_v36 }
 0x286   :  { %4385 = vmatpush1.bf16.msra.mxu0 %v7473_v12  ;;  %v7518_v12 = vld [vmem:[#allocation8 + $0x300] ss:$8 sps:$4 sm:$0xff]  }
 0x287   :  { %4386 = vmatprep.subr.bf16.mxu0 %v7478_v19  ;;  %v7641_v19 = vld [vmem:[#allocation11 + $0x120] ss:$16 sps:$4 sm:$0xff]  }
 0x288   :  { %3917 = vmatpush1.bf16.msra.mxu1 %v7641_v19 }
 0x28a   :  { %4387 = vmatpush1.bf16.msra.mxu0 %v7476_v20  ;;  %v3002_v20 = vpack.c.bf16 %v2990_v17, %v2990_v17 }
 0x28b   :  { %4388 = vmatprep.subr.bf16.mxu0 %v7481_v21  ;;  %v7523_v21 = vld [vmem:[#allocation8 + $0x314] ss:$8 sps:$4 sm:$0xff]  }
 0x28e   :  { %4389 = vmatpush1.bf16.msra.mxu0 %v7479_v22  ;;  %v7521_v22 = vld [vmem:[#allocation8 + $0x310] ss:$8 sps:$4 sm:$0xff]  }
 0x28f   :  { %4390 = vmatprep.subr.bf16.mxu0 %v7484_v23  ;;  %v7647_v23 = vld [vmem:[#allocation11 + $0x140] ss:$16 sps:$4 sm:$0xff]  }
 0x292   :  { %4391 = vmatpush1.bf16.msra.mxu0 %v7482_v24  ;;  %v7649_v24 = vld [vmem:[#allocation11 + $0x144] ss:$16 sps:$4 sm:$0xff]  }
 0x293   :  { %4392 = vmatprep.subr.bf16.mxu0 %v7487_v25  ;;  %v7526_v25 = vld [vmem:[#allocation8 + $0x324] ss:$8 sps:$4 sm:$0xff]   ;;  %3918 = vmatprep.subr.bf16.mxu1 %v7649_v24 }
 0x294   :  { %3919 = vmatpush1.bf16.msra.mxu1 %v7647_v23  ;;  %v7566_v23 = vld [vmem:[#allocation8 + $0x400] ss:$8 sps:$4 sm:$0xff]  }
 0x296   :  { %4393 = vmatpush1.bf16.msra.mxu0 %v7485_v26  ;;  %v7524_v26 = vld [vmem:[#allocation8 + $0x320] ss:$8 sps:$4 sm:$0xff]  }
 0x297   :  { %4394 = vmatprep.subr.bf16.mxu0 %v7490_v31  ;;  %v7653_v31 = vld [vmem:[#allocation11 + $0x160] ss:$16 sps:$4 sm:$0xff]  }
 0x29a   :  { %4395 = vmatpush1.bf16.msra.mxu0 %v7488_v27  ;;  %v7655_v27 = vld [vmem:[#allocation11 + $0x164] ss:$16 sps:$4 sm:$0xff]  }
 0x29b   :  { %4396 = vmatprep.subr.bf16.mxu0 %v7493_v15  ;;  %v7529_v15 = vld [vmem:[#allocation8 + $0x334] ss:$8 sps:$4 sm:$0xff]   ;;  %3920 = vmatprep.subr.bf16.mxu1 %v7655_v27  ;;  %v7572_v27 = vld [vmem:[#allocation8 + $0x420] ss:$8 sps:$4 sm:$0xff]  }
 0x29c   :  { %3921 = vmatpush1.bf16.msra.mxu1 %v7653_v31  ;;  %v7574_v31 = vld [vmem:[#allocation8 + $0x424] ss:$8 sps:$4 sm:$0xff]  }
 0x29d   :  { %3922 = vmatprep.subr.bf16.mxu1 %v7661_v30  ;;  %v7578_v30 = vld [vmem:[#allocation8 + $0x440] ss:$8 sps:$4 sm:$0xff]  }
 0x29e   :  { %4397 = vmatpush1.bf16.msra.mxu0 %v7491_v28  ;;  %v7527_v28 = vld [vmem:[#allocation8 + $0x330] ss:$8 sps:$4 sm:$0xff]  }
 0x29f   :  { %4398 = vmatprep.subr.bf16.mxu0 %v7496_v32  ;;  %v7532_v32 = vld [vmem:[#allocation8 + $0x344] ss:$8 sps:$4 sm:$0xff]  }
 0x2a0   :  { %3923 = vmatpush1.bf16.msra.mxu1 %v7659_v29  ;;  %v7580_v29 = vld [vmem:[#allocation8 + $0x444] ss:$8 sps:$4 sm:$0xff]  }
 0x2a1   :  { %3924 = vmatprep.subr.bf16.mxu1 %v7667_v35  ;;  %v7584_v35 = vld [vmem:[#allocation8 + $0x460] ss:$8 sps:$4 sm:$0xff]  }
 0x2a2   :  { %4399 = vmatpush1.bf16.msra.mxu0 %v7494_v33  ;;  %v7530_v33 = vld [vmem:[#allocation8 + $0x340] ss:$8 sps:$4 sm:$0xff]  }
 0x2a3   :  { %4400 = vmatprep.subr.bf16.mxu0 %v7499_v37  ;;  %v7535_v37 = vld [vmem:[#allocation8 + $0x354] ss:$8 sps:$4 sm:$0xff]  }
 0x2a4   :  { %3925 = vmatpush1.bf16.msra.mxu1 %v7665_v34  ;;  %v7586_v34 = vld [vmem:[#allocation8 + $0x464] ss:$8 sps:$4 sm:$0xff]  }
 0x2a5   :  { %3926 = vmatprep.subr.bf16.mxu1 %v7673_v39  ;;  %v7598_v39 = vld [vmem:[#allocation8 + $0x484] ss:$8 sps:$4 sm:$0xff]  }
 0x2a6   :  { %4401 = vmatpush1.bf16.msra.mxu0 %v7497_v38  ;;  %v7533_v38 = vld [vmem:[#allocation8 + $0x350] ss:$8 sps:$4 sm:$0xff]  }
 0x2a7   :  { %4402 = vmatprep.subr.bf16.mxu0 %v7502_v41  ;;  %v7671_v41 = vld [vmem:[#allocation11 + $0x1c0] ss:$16 sps:$4 sm:$0xff]  }
 0x2a8   :  { %3927 = vmatpush1.bf16.msra.mxu1 %v7671_v41  ;;  %v7604_v41 = vld [vmem:[#allocation8 + $0x494] ss:$8 sps:$4 sm:$0xff]  }
 0x2aa   :  { %4403 = vmatpush1.bf16.msra.mxu0 %v7500_v42 }
 0x2ab   :  { %4404 = vmatprep.subr.bf16.mxu0 %v7505_v45  ;;  %v7536_v45 = vld [vmem:[#allocation8 + $0x360] ss:$8 sps:$4 sm:$0xff]  }
 0x2ae   :  { %4405 = vmatpush1.bf16.msra.mxu0 %v7503_v46  ;;  %v7679_v46 = vld [vmem:[#allocation11 + $0x1e4] ss:$16 sps:$4 sm:$0xff]  }
 0x2af   :  { %4406 = vmatprep.subr.bf16.mxu0 %v7508_v49  ;;  %v7677_v49 = vld [vmem:[#allocation11 + $0x1e0] ss:$16 sps:$4 sm:$0xff]   ;;  %3928 = vmatprep.subr.bf16.mxu1 %v7679_v46 }
 0x2b0   :  { %3929 = vmatpush1.bf16.msra.mxu1 %v7677_v49  ;;  %v7616_v46 = vld [vmem:[#allocation8 + $0x4b4] ss:$8 sps:$4 sm:$0xff]   ;;  %v7620_v49 = vld [vmem:[#allocation8 + $0x4c0] ss:$8 sps:$4 sm:$0xff]  }
 0x2b1   :  { %3939 = vmatprep.subr.bf16.mxu1 %v7685_v51  ;;  %v7626_v51 = vld [vmem:[#allocation8 + $0x4d0] ss:$8 sps:$4 sm:$0xff]  }
 0x2b2   :  { %4407 = vmatpush1.bf16.msra.mxu0 %v7506_v50  ;;  %v7539_v50 = vld [vmem:[#allocation8 + $0x370] ss:$8 sps:$4 sm:$0xff]  }
 0x2b3   :  { %4408 = vmatprep.subr.bf16.mxu0 %v7511_v55  ;;  %v7547_v55 = vld [vmem:[#allocation8 + $0x394] ss:$8 sps:$4 sm:$0xff]  }
 0x2b6   :  { %4409 = vmatpush1.bf16.msra.mxu0 %v7509_v58  ;;  %v7550_v58 = vld [vmem:[#allocation8 + $0x3a4] ss:$8 sps:$4 sm:$0xff]  }
 0x2b7   :  { %4410 = vmatprep.subr.bf16.mxu0 %v7514_v0  ;;  %v7556_v0 = vld [vmem:[#allocation8 + $0x3c4] ss:$8 sps:$4 sm:$0xff]  }
 0x2ba   :  { %4411 = vmatpush1.bf16.msra.mxu0 %v7512_v3  ;;  %v540_v3 = vsub.s32 6, %v8313_v63  ;;  %v7565_v63 = vld [vmem:[#allocation8 + $0x3f4] ss:$8 sps:$4 sm:$0xff]  }
 0x2bb   :  { %4412 = vmatprep.subr.bf16.mxu0 %v7517_v9  ;;  %v7950_v9 = vld [vmem:[#allocation7] sm:$0xff] }
 0x2bc   :  { %v541_v10 = vrot.slane %v7950_v9, %v540_v3  ;;  %v7652_v9 = vld [vmem:[#allocation8 + $0x514] ss:$8 sps:$4 sm:$0xff]  }
 0x2be   :  { %4413 = vmatpush1.bf16.msra.mxu0 %v7515_v11  ;;  %v7562_v11 = vld [vmem:[#allocation8 + $0x3e4] ss:$8 sps:$4 sm:$0xff]  }
 0x2bf   :  { %4423 = vmatprep.subr.bf16.mxu0 %v7520_v2  ;;  %v6732_v2 = vadd.f32 %v8350_v53, %v541_v10  ;;  %v7569_v53 = vld [vmem:[#allocation8 + $0x410] ss:$8 sps:$4 sm:$0xff]  }
 0x2c1   :  { %4415 = vmatmul.mubr.bf16.vlgmr.msra.gmra.mrb[16].mxu0 %v3002_v20  ;;  %v7563_v20 = vld [vmem:[#allocation8 + $0x3f0] ss:$8 sps:$4 sm:$0xff]  }
 0x2c2   :  { %4424 = vmatpush1.bf16.msra.mxu0 %v7518_v12  ;;  %4455 = vmatprep.mubr.bf16.mxu0 %v3005_v1  ;;  %v7568_v1 = vld [vmem:[#allocation8 + $0x404] ss:$8 sps:$4 sm:$0xff]  }
 0x2c3   :  { %4425 = vmatprep.subr.bf16.mxu0 %v7523_v21  ;;  %v2992_v21 = vmax.f32 %v6732_v2, 0.0  ;;  %v7662_v2 = vld [vmem:[#allocation8 + $0x530] ss:$8 sps:$4 sm:$0xff]  }
 0x2c5   :  { %v3004_v24 = vpack.c.bf16 %v2992_v21, %v2992_v21  ;;  %v7674_v21 = vld [vmem:[#allocation8 + $0x550] ss:$8 sps:$4 sm:$0xff]  }
 0x2c6   :  { %4426 = vmatpush1.bf16.msra.mxu0 %v7521_v22 }
 0x2c7   :  { %4427 = vmatprep.subr.bf16.mxu0 %v7526_v25  ;;  %v7571_v25 = vld [vmem:[#allocation8 + $0x414] ss:$8 sps:$4 sm:$0xff]  }
 0x2ca   :  { %4428 = vmatpush1.bf16.msra.mxu0 %v7524_v26 }
 0x2cb   :  { %4429 = vmatprep.subr.bf16.mxu0 %v7529_v15  ;;  %v7577_v15 = vld [vmem:[#allocation8 + $0x434] ss:$8 sps:$4 sm:$0xff]  }
 0x2ce   :  { %4430 = vmatpush1.bf16.msra.mxu0 %v7527_v28  ;;  %v7575_v28 = vld [vmem:[#allocation8 + $0x430] ss:$8 sps:$4 sm:$0xff]  }
 0x2cf   :  { %4431 = vmatprep.subr.bf16.mxu0 %v7532_v32  ;;  %v7583_v32 = vld [vmem:[#allocation8 + $0x454] ss:$8 sps:$4 sm:$0xff]  }
 0x2d2   :  { %4432 = vmatpush1.bf16.msra.mxu0 %v7530_v33  ;;  %v7581_v33 = vld [vmem:[#allocation8 + $0x450] ss:$8 sps:$4 sm:$0xff]  }
 0x2d3   :  { %4433 = vmatprep.subr.bf16.mxu0 %v7535_v37  ;;  %v7592_v37 = vld [vmem:[#allocation8 + $0x474] ss:$8 sps:$4 sm:$0xff]  }
 0x2d4   :  { %v8361_v42 = vpop.f32.mrb[8].mxu0 }
 0x2d5   :  { %v2899_v43 = vpop.f32.mrb[9].mxu0 }
 0x2d6   :  { %v2901_v44 = vpop.f32.mrb[10].mxu0  ;;  %4434 = vmatpush1.bf16.msra.mxu0 %v7533_v38  ;;  %v6735_v12 = vadd.f32 %v2899_v43, %v553_v13  ;;  %v7590_v38 = vld [vmem:[#allocation8 + $0x470] ss:$8 sps:$4 sm:$0xff]   ;;  %v7656_v13 = vld [vmem:[#allocation8 + $0x520] ss:$8 sps:$4 sm:$0xff]  }
 0x2d7   :  { %v2902_v47 = vpop.f32.mrb[11].mxu0  ;;  %4435 = vmatprep.subr.bf16.mxu0 %v7538_v40  ;;  %v8368_v17 = vpop.f32.mrb[8].mxu1  ;;  %v7596_v40 = vld [vmem:[#allocation8 + $0x480] ss:$8 sps:$4 sm:$0xff]   ;;  %v7602_v43 = vld [vmem:[#allocation8 + $0x490] ss:$8 sps:$4 sm:$0xff]  }
 0x2d8   :  { %v8371_v18 = vpop.f32.mrb[9].mxu1  ;;  %v2995_v22 = vmax.f32 %v6735_v12, 0.0  ;;  %v7610_v44 = vld [vmem:[#allocation8 + $0x4a4] ss:$8 sps:$4 sm:$0xff]   ;;  %v7614_v47 = vld [vmem:[#allocation8 + $0x4b0] ss:$8 sps:$4 sm:$0xff]  }
 0x2d9   :  { %v2983_v19 = vpop.f32.mrb[10].mxu1  ;;  %v3074_v12 = vld [vmem:[#allocation10] sm:$0x3] }
 0x2da   :  { %4436 = vmatpush1.bf16.msra.mxu0 %v7536_v45  ;;  %v2984_v36 = vpop.f32.mrb[11].mxu1  ;;  %v3007_v26 = vpack.c.bf16 %v2995_v22, %v2995_v22  ;;  %v7608_v45 = vld [vmem:[#allocation8 + $0x4a0] ss:$8 sps:$4 sm:$0xff]   ;;  %v7676_v19 = vld [vmem:[#allocation8 + $0x554] ss:$8 sps:$4 sm:$0xff]  }
 0x2db   :  { %4437 = vmatprep.subr.bf16.mxu0 %v7541_v48  ;;  %v7622_v48 = vld [vmem:[#allocation8 + $0x4c4] ss:$8 sps:$4 sm:$0xff]   ;;  %v3079_v36 = vrot.slane %v3074_v12, %v8330_v6 }
 0x2de   :  { %4438 = vmatpush1.bf16.msra.mxu0 %v7539_v50  ;;  %v7628_v50 = vld [vmem:[#allocation8 + $0x4d4] ss:$8 sps:$4 sm:$0xff]  }
 0x2df   :  { %4439 = vmatprep.subr.bf16.mxu0 %v7544_v52  ;;  %v549_v52 = vrot.slane %v8364_v7, %v8330_v6 }
 0x2e2   :  { %4440 = vmatpush1.bf16.msra.mxu0 %v7542_v14  ;;  %v7634_v14 = vld [vmem:[#allocation8 + $0x4e4] ss:$8 sps:$4 sm:$0xff]  }
 0x2e3   :  { %4441 = vmatprep.subr.bf16.mxu0 %v7547_v55  ;;  %v561_v55 = vrot.slane %v8364_v7, %v8333_v8 }
 0x2e6   :  { %4442 = vmatpush1.bf16.msra.mxu0 %v7545_v57  ;;  %v7632_v57 = vld [vmem:[#allocation8 + $0x4e0] ss:$8 sps:$4 sm:$0xff]  }
 0x2e7   :  { %4443 = vmatprep.subr.bf16.mxu0 %v7550_v58  ;;  %v6734_v58 = vadd.f32 %v8361_v42, %v549_v52  ;;  %v7650_v42 = vld [vmem:[#allocation8 + $0x510] ss:$8 sps:$4 sm:$0xff]  }
 0x2e8   :  { %v7715_v52 = vld [vmem:[#allocation11 + $0xac] ss:$16 sps:$4 sm:$0xff]  }
 0x2ea   :  { %4444 = vmatpush1.bf16.msra.mxu0 %v7548_v60  ;;  %v7640_v60 = vld [vmem:[#allocation8 + $0x4f4] ss:$8 sps:$4 sm:$0xff]  }
 0x2eb   :  { %4445 = vmatprep.subr.bf16.mxu0 %v7553_v61  ;;  %v6737_v61 = vadd.f32 %v8371_v18, %v561_v55  ;;  %v7668_v18 = vld [vmem:[#allocation8 + $0x540] ss:$8 sps:$4 sm:$0xff]  }
 0x2ec   :  { %v7713_v55 = vld [vmem:[#allocation11 + $0xa8] ss:$16 sps:$4 sm:$0xff]  }
 0x2ed   :  { %v2997_v3 = vmax.f32 %v6737_v61, 0.0  ;;  %v7719_v61 = vld [vmem:[#allocation11 + $0xc8] ss:$16 sps:$4 sm:$0xff]  }
 0x2ee   :  { %4446 = vmatpush1.bf16.msra.mxu0 %v7551_v62  ;;  %v7638_v62 = vld [vmem:[#allocation8 + $0x4f0] ss:$8 sps:$4 sm:$0xff]  }
 0x2ef   :  { %4447 = vmatprep.subr.bf16.mxu0 %v7556_v0  ;;  %v2994_v0 = vmax.f32 %v6734_v58, 0.0  ;;  %v3009_v10 = vpack.c.bf16 %v2997_v3, %v2997_v3  ;;  %v7721_v58 = vld [vmem:[#allocation11 + $0xcc] ss:$16 sps:$4 sm:$0xff]  }
 0x2f0   :  { %v7730_v3 = vld [vmem:[#allocation8 + $0x5e4] ss:$8 sps:$4 sm:$0xff]  }
 0x2f2   :  { %4448 = vmatpush1.bf16.msra.mxu0 %v7554_v56  ;;  %v7646_v56 = vld [vmem:[#allocation8 + $0x504] ss:$8 sps:$4 sm:$0xff]  }
 0x2f3   :  { %4449 = vmatprep.subr.bf16.mxu0 %v7559_v5  ;;  %v7644_v5 = vld [vmem:[#allocation8 + $0x500] ss:$8 sps:$4 sm:$0xff]  }
 0x2f6   :  { %4450 = vmatpush1.bf16.msra.mxu0 %v7557_v59  ;;  %v3006_v59 = vpack.c.bf16 %v2994_v0, %v2994_v0  ;;  %v7727_v0 = vld [vmem:[#allocation11 + $0xec] ss:$16 sps:$4 sm:$0xff]  }
 0x2f7   :  { %4451 = vmatprep.subr.bf16.mxu0 %v7562_v11  ;;  %v7658_v11 = vld [vmem:[#allocation8 + $0x524] ss:$8 sps:$4 sm:$0xff]  }
 0x2fa   :  { %4452 = vmatpush1.bf16.msra.mxu0 %v7560_v16  ;;  %v7664_v16 = vld [vmem:[#allocation8 + $0x534] ss:$8 sps:$4 sm:$0xff]  }
 0x2fb   :  { %4453 = vmatprep.subr.bf16.mxu0 %v7565_v63  ;;  %v7670_v63 = vld [vmem:[#allocation8 + $0x544] ss:$8 sps:$4 sm:$0xff]  }
 0x2fe   :  { %4454 = vmatpush1.bf16.msra.mxu0 %v7563_v20  ;;  %v3083_v20 = vrot.slane %v3074_v12, %v8318_v4  ;;  %v7740_v12 = vld [vmem:[#allocation11 + $0x148] ss:$16 sps:$4 sm:$0xff]  }
 0x2ff   :  { %5360 = vmatprep.subr.bf16.mxu0 %v7568_v1  ;;  %v7682_v1 = vld [vmem:[#allocation8 + $0x564] ss:$8 sps:$4 sm:$0xff]  }
 0x301   :  { %4456 = vmatmul.mubr.bf16.vlgmr.msra.gmra.mrb[16].mxu0 %v3004_v24 }
 0x302   :  { %5361 = vmatpush1.bf16.msra.mxu0 %v7566_v23  ;;  %5392 = vmatprep.mubr.bf16.mxu0 %v3007_v26 }
 0x303   :  { %5362 = vmatprep.subr.bf16.mxu0 %v7571_v25 }
 0x306   :  { %5363 = vmatpush1.bf16.msra.mxu0 %v7569_v53  ;;  %v7680_v53 = vld [vmem:[#allocation8 + $0x560] ss:$8 sps:$4 sm:$0xff]  }
 0x307   :  { %5364 = vmatprep.subr.bf16.mxu0 %v7574_v31 }
 0x30a   :  { %5365 = vmatpush1.bf16.msra.mxu0 %v7572_v27 }
 0x30b   :  { %5366 = vmatprep.subr.bf16.mxu0 %v7577_v15  ;;  %v7688_v15 = vld [vmem:[#allocation8 + $0x574] ss:$8 sps:$4 sm:$0xff]  }
 0x30e   :  { %5367 = vmatpush1.bf16.msra.mxu0 %v7575_v28 }
 0x30f   :  { %5368 = vmatprep.subr.bf16.mxu0 %v7580_v29 }
 0x312   :  { %5369 = vmatpush1.bf16.msra.mxu0 %v7578_v30  ;;  %v7683_v30 = vld [vmem:[#allocation11 + $0x8] ss:$16 sps:$4 sm:$0xff]  }
 0x313   :  { %5370 = vmatprep.subr.bf16.mxu0 %v7583_v32 }
 0x316   :  { %5371 = vmatpush1.bf16.msra.mxu0 %v7581_v33  ;;  %v7686_v33 = vld [vmem:[#allocation8 + $0x570] ss:$8 sps:$4 sm:$0xff]  }
 0x317   :  { %5372 = vmatprep.subr.bf16.mxu0 %v7586_v34  ;;  %v7691_v34 = vld [vmem:[#allocation11 + $0x2c] ss:$16 sps:$4 sm:$0xff]  }
 0x31a   :  { %5373 = vmatpush1.bf16.msra.mxu0 %v7584_v35  ;;  %v7694_v35 = vld [vmem:[#allocation8 + $0x584] ss:$8 sps:$4 sm:$0xff]  }
 0x31b   :  { %5374 = vmatprep.subr.bf16.mxu0 %v7592_v37  ;;  %v7689_v37 = vld [vmem:[#allocation11 + $0x28] ss:$16 sps:$4 sm:$0xff]  }
 0x31e   :  { %5375 = vmatpush1.bf16.msra.mxu0 %v7590_v38  ;;  %v7692_v38 = vld [vmem:[#allocation8 + $0x580] ss:$8 sps:$4 sm:$0xff]  }
 0x31f   :  { %5376 = vmatprep.subr.bf16.mxu0 %v7598_v39  ;;  %v7697_v39 = vld [vmem:[#allocation11 + $0x4c] ss:$16 sps:$4 sm:$0xff]  }
 0x322   :  { %5377 = vmatpush1.bf16.msra.mxu0 %v7596_v40  ;;  %v7700_v40 = vld [vmem:[#allocation8 + $0x594] ss:$8 sps:$4 sm:$0xff]  }
 0x323   :  { %5378 = vmatprep.subr.bf16.mxu0 %v7604_v41  ;;  %v7695_v41 = vld [vmem:[#allocation11 + $0x48] ss:$16 sps:$4 sm:$0xff]  }
 0x326   :  { %5379 = vmatpush1.bf16.msra.mxu0 %v7602_v43  ;;  %v7698_v43 = vld [vmem:[#allocation8 + $0x590] ss:$8 sps:$4 sm:$0xff]  }
 0x327   :  { %5380 = vmatprep.subr.bf16.mxu0 %v7610_v44  ;;  %v7703_v44 = vld [vmem:[#allocation11 + $0x6c] ss:$16 sps:$4 sm:$0xff]  }
 0x32a   :  { %5381 = vmatpush1.bf16.msra.mxu0 %v7608_v45  ;;  %v7706_v45 = vld [vmem:[#allocation8 + $0x5a4] ss:$8 sps:$4 sm:$0xff]  }
 0x32b   :  { %5382 = vmatprep.subr.bf16.mxu0 %v7616_v46  ;;  %v7701_v46 = vld [vmem:[#allocation11 + $0x68] ss:$16 sps:$4 sm:$0xff]  }
 0x32e   :  { %5383 = vmatpush1.bf16.msra.mxu0 %v7614_v47  ;;  %v7704_v47 = vld [vmem:[#allocation8 + $0x5a0] ss:$8 sps:$4 sm:$0xff]  }
 0x32f   :  { %5384 = vmatprep.subr.bf16.mxu0 %v7622_v48  ;;  %v7709_v48 = vld [vmem:[#allocation11 + $0x8c] ss:$16 sps:$4 sm:$0xff]  }
 0x332   :  { %5385 = vmatpush1.bf16.msra.mxu0 %v7620_v49  ;;  %v7712_v49 = vld [vmem:[#allocation8 + $0x5b4] ss:$8 sps:$4 sm:$0xff]  }
 0x333   :  { %5386 = vmatprep.subr.bf16.mxu0 %v7628_v50  ;;  %v7707_v50 = vld [vmem:[#allocation11 + $0x88] ss:$16 sps:$4 sm:$0xff]  }
 0x336   :  { %5387 = vmatpush1.bf16.msra.mxu0 %v7626_v51  ;;  %v7710_v51 = vld [vmem:[#allocation8 + $0x5b0] ss:$8 sps:$4 sm:$0xff]  }
 0x337   :  { %5388 = vmatprep.subr.bf16.mxu0 %v7634_v14  ;;  %v7718_v14 = vld [vmem:[#allocation8 + $0x5c4] ss:$8 sps:$4 sm:$0xff]  }
 0x33a   :  { %5389 = vmatpush1.bf16.msra.mxu0 %v7632_v57  ;;  %v7716_v57 = vld [vmem:[#allocation8 + $0x5c0] ss:$8 sps:$4 sm:$0xff]  }
 0x33b   :  { %5390 = vmatprep.subr.bf16.mxu0 %v7640_v60  ;;  %v7724_v60 = vld [vmem:[#allocation8 + $0x5d4] ss:$8 sps:$4 sm:$0xff]  }
 0x33e   :  { %5391 = vmatpush1.bf16.msra.mxu0 %v7638_v62  ;;  %v7722_v62 = vld [vmem:[#allocation8 + $0x5d0] ss:$8 sps:$4 sm:$0xff]  }
 0x33f   :  { %5401 = vmatprep.subr.bf16.mxu0 %v7646_v56  ;;  %v557_v56 = vrot.slane %v8364_v7, %v8344_v54  ;;  %v7737_v7 = vld [vmem:[#allocation11 + $0x128] ss:$16 sps:$4 sm:$0xff]  }
 0x341   :  { %5393 = vmatmul.mubr.bf16.vlgmr.msra.gmra.mrb[20].mxu0 %v3006_v59  ;;  %v7728_v59 = vld [vmem:[#allocation8 + $0x5e0] ss:$8 sps:$4 sm:$0xff]  }
 0x342   :  { %5402 = vmatpush1.bf16.msra.mxu0 %v7644_v5  ;;  %5433 = vmatprep.mubr.bf16.mxu0 %v3009_v10  ;;  %v7725_v5 = vld [vmem:[#allocation11 + $0xe8] ss:$16 sps:$4 sm:$0xff]   ;;  %v6736_v10 = vadd.f32 %v8368_v17, %v557_v56  ;;  %v7745_v17 = vld [vmem:[#allocation11 + $0x16c] ss:$16 sps:$4 sm:$0xff]  }
 0x343   :  { %5403 = vmatprep.subr.bf16.mxu0 %v7652_v9  ;;  %v7733_v9 = vld [vmem:[#allocation11 + $0x10c] ss:$16 sps:$4 sm:$0xff]  }
 0x346   :  { %5404 = vmatpush1.bf16.msra.mxu0 %v7650_v42  ;;  %v7736_v42 = vld [vmem:[#allocation8 + $0x5f4] ss:$8 sps:$4 sm:$0xff]  }
 0x347   :  { %5405 = vmatprep.subr.bf16.mxu0 %v7658_v11  ;;  %v7731_v11 = vld [vmem:[#allocation11 + $0x108] ss:$16 sps:$4 sm:$0xff]  }
 0x34a   :  { %5406 = vmatpush1.bf16.msra.mxu0 %v7656_v13  ;;  %v7734_v13 = vld [vmem:[#allocation8 + $0x5f0] ss:$8 sps:$4 sm:$0xff]  }
 0x34b   :  { %5407 = vmatprep.subr.bf16.mxu0 %v7664_v16  ;;  %v7739_v16 = vld [vmem:[#allocation11 + $0x12c] ss:$16 sps:$4 sm:$0xff]  }
 0x34e   :  { %5408 = vmatpush1.bf16.msra.mxu0 %v7662_v2  ;;  %v2996_v2 = vmax.f32 %v6736_v10, 0.0 }
 0x34f   :  { %5409 = vmatprep.subr.bf16.mxu0 %v7670_v63  ;;  %v7742_v63 = vld [vmem:[#allocation11 + $0x14c] ss:$16 sps:$4 sm:$0xff]  }
 0x352   :  { %5410 = vmatpush1.bf16.msra.mxu0 %v7668_v18  ;;  %v3008_v18 = vpack.c.bf16 %v2996_v2, %v2996_v2  ;;  %v7806_v2 = vld [vmem:[#allocation11 + $0x208] ss:$16 sps:$4 sm:$0xff]  }
 0x353   :  { %5411 = vmatprep.subr.bf16.mxu0 %v7676_v19  ;;  %v7743_v19 = vld [vmem:[#allocation11 + $0x168] ss:$16 sps:$4 sm:$0xff]  }
 0x354   :  { %v3481_v22 = vpop.f32.mrb[12].mxu0 }
 0x355   :  { %v6738_v23 = vadd.f32 %v3481_v22, %v3079_v36  ;;  %v3483_v24 = vpop.f32.mrb[13].mxu0  ;;  %v7748_v36 = vld [vmem:[#allocation11 + $0x18c] ss:$16 sps:$4 sm:$0xff]  }
 0x356   :  { %v6739_v25 = vadd.f32 %v3483_v24, %v3083_v20  ;;  %v3485_v26 = vpop.f32.mrb[14].mxu0  ;;  %5412 = vmatpush1.bf16.msra.mxu0 %v7674_v21  ;;  %v7746_v20 = vld [vmem:[#allocation11 + $0x188] ss:$16 sps:$4 sm:$0xff]   ;;  %v7751_v21 = vld [vmem:[#allocation11 + $0x1ac] ss:$16 sps:$4 sm:$0xff]  }
 0x357   :  { %v3488_v31 = vmax.f32 %v6738_v23, 0.0  ;;  %v3486_v27 = vpop.f32.mrb[15].mxu0  ;;  %5413 = vmatprep.subr.bf16.mxu0 %v7682_v1  ;;  %v7749_v1 = vld [vmem:[#allocation11 + $0x1a8] ss:$16 sps:$4 sm:$0xff]   ;;  %v7754_v22 = vld [vmem:[#allocation11 + $0x1cc] ss:$16 sps:$4 sm:$0xff]  }
 0x358   :  { %v3489_v28 = vmax.f32 %v6739_v25, 0.0  ;;  %v7752_v23 = vld [vmem:[#allocation11 + $0x1c8] ss:$16 sps:$4 sm:$0xff]   ;;  %v7757_v24 = vld [vmem:[#allocation11 + $0x1ec] ss:$16 sps:$4 sm:$0xff]  }
 0x359   :  { %v8381_v32 = vpack.c.bf16 %v3488_v31, %v3488_v31  ;;  %v7755_v25 = vld [vmem:[#allocation11 + $0x1e8] ss:$16 sps:$4 sm:$0xff]   ;;  %v7760_v26 = vld [vmem:[#allocation11 + $0x204] ss:$16 sps:$4 sm:$0xff]   ;;  %v7761_v27 = vld [vmem:[#allocation11 + $0x220] ss:$16 sps:$4 sm:$0xff]  }
 0x35a   :  { %v3491_v29 = vpack.c.bf16 %v3489_v28, %v3489_v28  ;;  %5414 = vmatpush1.bf16.msra.mxu0 %v7680_v53  ;;  %v7758_v53 = vld [vmem:[#allocation11 + $0x200] ss:$16 sps:$4 sm:$0xff]   ;;  %v7763_v31 = vld [vmem:[#allocation11 + $0x224] ss:$16 sps:$4 sm:$0xff]  }
 0x35b   :  { %5415 = vmatprep.subr.bf16.mxu0 %v7688_v15  ;;  %v7766_v15 = vld [vmem:[#allocation11 + $0x244] ss:$16 sps:$4 sm:$0xff]   ;;  %v7764_v28 = vld [vmem:[#allocation11 + $0x240] ss:$16 sps:$4 sm:$0xff]  }
 0x35c   :  { %3930 = vmatprep.mubr.bf16.mxu1 %v3491_v29 }
 0x35d   :  { %3931 = vmatmul.mubr.bf16.vlgmr.msra.gmra.mrb[12].mxu1 %v8381_v32 }
 0x35e   :  { %3940 = vmatpush1.bf16.msra.mxu1 %v7683_v30  ;;  %3971 = vmatprep.mubr.bf16.mxu1 %v3491_v29  ;;  %v7769_v29 = vld [vmem:[#allocation11 + $0x264] ss:$16 sps:$4 sm:$0xff]   ;;  %v7767_v30 = vld [vmem:[#allocation11 + $0x260] ss:$16 sps:$4 sm:$0xff]  }
 0x35f   :  { %5416 = vmatpush1.bf16.msra.mxu0 %v7686_v33  ;;  %3941 = vmatprep.subr.bf16.mxu1 %v7691_v34  ;;  %v7772_v33 = vld [vmem:[#allocation11 + $0x284] ss:$16 sps:$4 sm:$0xff]   ;;  %v7770_v34 = vld [vmem:[#allocation11 + $0x280] ss:$16 sps:$4 sm:$0xff]  }
 0x360   :  { %5417 = vmatprep.subr.bf16.mxu0 %v7694_v35  ;;  %v7775_v35 = vld [vmem:[#allocation11 + $0x2a4] ss:$16 sps:$4 sm:$0xff]  }
 0x362   :  { %3942 = vmatpush1.bf16.msra.mxu1 %v7689_v37  ;;  %v7773_v37 = vld [vmem:[#allocation11 + $0x2a0] ss:$16 sps:$4 sm:$0xff]  }
 0x363   :  { %5418 = vmatpush1.bf16.msra.mxu0 %v7692_v38  ;;  %3943 = vmatprep.subr.bf16.mxu1 %v7697_v39  ;;  %v7776_v38 = vld [vmem:[#allocation11 + $0x2c0] ss:$16 sps:$4 sm:$0xff]   ;;  %v7781_v39 = vld [vmem:[#allocation11 + $0x2e4] ss:$16 sps:$4 sm:$0xff]  }
 0x364   :  { %5419 = vmatprep.subr.bf16.mxu0 %v7700_v40  ;;  %v7779_v40 = vld [vmem:[#allocation11 + $0x2e0] ss:$16 sps:$4 sm:$0xff]  }
 0x366   :  { %3944 = vmatpush1.bf16.msra.mxu1 %v7695_v41  ;;  %v7784_v41 = vld [vmem:[#allocation11 + $0x304] ss:$16 sps:$4 sm:$0xff]  }
 0x367   :  { %5420 = vmatpush1.bf16.msra.mxu0 %v7698_v43  ;;  %3945 = vmatprep.subr.bf16.mxu1 %v7703_v44  ;;  %v7782_v43 = vld [vmem:[#allocation11 + $0x300] ss:$16 sps:$4 sm:$0xff]   ;;  %v7787_v44 = vld [vmem:[#allocation11 + $0x324] ss:$16 sps:$4 sm:$0xff]  }
 0x368   :  { %5421 = vmatprep.subr.bf16.mxu0 %v7706_v45  ;;  %v7785_v45 = vld [vmem:[#allocation11 + $0x320] ss:$16 sps:$4 sm:$0xff]  }
 0x36a   :  { %3946 = vmatpush1.bf16.msra.mxu1 %v7701_v46  ;;  %v7790_v46 = vld [vmem:[#allocation11 + $0x344] ss:$16 sps:$4 sm:$0xff]  }
 0x36b   :  { %5422 = vmatpush1.bf16.msra.mxu0 %v7704_v47  ;;  %3947 = vmatprep.subr.bf16.mxu1 %v7709_v48  ;;  %v7788_v47 = vld [vmem:[#allocation11 + $0x340] ss:$16 sps:$4 sm:$0xff]   ;;  %v7793_v48 = vld [vmem:[#allocation11 + $0x364] ss:$16 sps:$4 sm:$0xff]  }
 0x36c   :  { %5423 = vmatprep.subr.bf16.mxu0 %v7712_v49  ;;  %v7791_v49 = vld [vmem:[#allocation11 + $0x360] ss:$16 sps:$4 sm:$0xff]  }
 0x36e   :  { %3948 = vmatpush1.bf16.msra.mxu1 %v7707_v50  ;;  %v7796_v50 = vld [vmem:[#allocation11 + $0x384] ss:$16 sps:$4 sm:$0xff]  }
 0x36f   :  { %5424 = vmatpush1.bf16.msra.mxu0 %v7710_v51  ;;  %3949 = vmatprep.subr.bf16.mxu1 %v7715_v52  ;;  %v7794_v51 = vld [vmem:[#allocation11 + $0x380] ss:$16 sps:$4 sm:$0xff]   ;;  %v7799_v52 = vld [vmem:[#allocation11 + $0x3a4] ss:$16 sps:$4 sm:$0xff]  }
 0x370   :  { %5425 = vmatprep.subr.bf16.mxu0 %v7718_v14  ;;  %v7797_v14 = vld [vmem:[#allocation11 + $0x3a0] ss:$16 sps:$4 sm:$0xff]  }
 0x372   :  { %3950 = vmatpush1.bf16.msra.mxu1 %v7713_v55  ;;  %v4050_v55 = vld [vmem:[#allocation10 + $0x2] sm:$0x3] }
 0x373   :  { %5426 = vmatpush1.bf16.msra.mxu0 %v7716_v57  ;;  %3951 = vmatprep.subr.bf16.mxu1 %v7721_v58  ;;  %v7802_v57 = vld [vmem:[#allocation11 + $0x3c4] ss:$16 sps:$4 sm:$0xff]   ;;  %v4055_v58 = vrot.slane %v4050_v55, %v8330_v6 }
 0x374   :  { %5427 = vmatprep.subr.bf16.mxu0 %v7724_v60  ;;  %v7800_v60 = vld [vmem:[#allocation11 + $0x3c0] ss:$16 sps:$4 sm:$0xff]  }
 0x376   :  { %3952 = vmatpush1.bf16.msra.mxu1 %v7719_v61  ;;  %v4059_v61 = vrot.slane %v4050_v55, %v8318_v4  ;;  %v7871_v55 = vld [vmem:[#allocation11 + $0x4a4] ss:$16 sps:$4 sm:$0xff]  }
 0x377   :  { %5428 = vmatpush1.bf16.msra.mxu0 %v7722_v62  ;;  %3953 = vmatprep.subr.bf16.mxu1 %v7727_v0  ;;  %v7805_v62 = vld [vmem:[#allocation11 + $0x3e4] ss:$16 sps:$4 sm:$0xff]  }
 0x378   :  { %5429 = vmatprep.subr.bf16.mxu0 %v7730_v3 }
 0x37a   :  { %3954 = vmatpush1.bf16.msra.mxu1 %v7725_v5 }
 0x37b   :  { %5430 = vmatpush1.bf16.msra.mxu0 %v7728_v59  ;;  %3955 = vmatprep.subr.bf16.mxu1 %v7733_v9  ;;  %v7803_v9 = vld [vmem:[#allocation11 + $0x3e0] ss:$16 sps:$4 sm:$0xff]  }
 0x37c   :  { %5431 = vmatprep.subr.bf16.mxu0 %v7736_v42 }
 0x37e   :  { %3956 = vmatpush1.bf16.msra.mxu1 %v7731_v11  ;;  %v7808_v11 = vld [vmem:[#allocation11 + $0x20c] ss:$16 sps:$4 sm:$0xff]  }
 0x37f   :  { %5432 = vmatpush1.bf16.msra.mxu0 %v7734_v13  ;;  %3957 = vmatprep.subr.bf16.mxu1 %v7739_v16 }
 0x382   :  { %3958 = vmatpush1.bf16.msra.mxu1 %v7737_v7  ;;  %5434 = vmatmul.mubr.bf16.vlgmr.msra.gmra.mrb[20].mxu0 %v3008_v18  ;;  %v7809_v18 = vld [vmem:[#allocation11 + $0x228] ss:$16 sps:$4 sm:$0xff]  }
 0x383   :  { %3959 = vmatprep.subr.bf16.mxu1 %v7742_v63  ;;  %v7811_v63 = vld [vmem:[#allocation11 + $0x22c] ss:$16 sps:$4 sm:$0xff]  }
 0x386   :  { %3960 = vmatpush1.bf16.msra.mxu1 %v7740_v12  ;;  %v7814_v12 = vld [vmem:[#allocation11 + $0x24c] ss:$16 sps:$4 sm:$0xff]  }
 0x387   :  { %3961 = vmatprep.subr.bf16.mxu1 %v7745_v17  ;;  %v7812_v17 = vld [vmem:[#allocation11 + $0x248] ss:$16 sps:$4 sm:$0xff]  }
 0x38a   :  { %3962 = vmatpush1.bf16.msra.mxu1 %v7743_v19  ;;  %v7817_v19 = vld [vmem:[#allocation11 + $0x26c] ss:$16 sps:$4 sm:$0xff]  }
 0x38b   :  { %3963 = vmatprep.subr.bf16.mxu1 %v7748_v36  ;;  %v7815_v36 = vld [vmem:[#allocation11 + $0x268] ss:$16 sps:$4 sm:$0xff]  }
 0x38e   :  { %3964 = vmatpush1.bf16.msra.mxu1 %v7746_v20  ;;  %v7820_v20 = vld [vmem:[#allocation11 + $0x28c] ss:$16 sps:$4 sm:$0xff]  }
 0x38f   :  { %3965 = vmatprep.subr.bf16.mxu1 %v7751_v21  ;;  %v7818_v21 = vld [vmem:[#allocation11 + $0x288] ss:$16 sps:$4 sm:$0xff]  }
 0x392   :  { %3966 = vmatpush1.bf16.msra.mxu1 %v7749_v1  ;;  %v7823_v1 = vld [vmem:[#allocation11 + $0x2ac] ss:$16 sps:$4 sm:$0xff]  }
 0x393   :  { %3967 = vmatprep.subr.bf16.mxu1 %v7754_v22  ;;  %v7821_v22 = vld [vmem:[#allocation11 + $0x2a8] ss:$16 sps:$4 sm:$0xff]  }
 0x396   :  { %3968 = vmatpush1.bf16.msra.mxu1 %v7752_v23  ;;  %v7826_v23 = vld [vmem:[#allocation11 + $0x2cc] ss:$16 sps:$4 sm:$0xff]  }
 0x397   :  { %3969 = vmatprep.subr.bf16.mxu1 %v7757_v24  ;;  %v7824_v24 = vld [vmem:[#allocation11 + $0x2c8] ss:$16 sps:$4 sm:$0xff]  }
 0x39a   :  { %3970 = vmatpush1.bf16.msra.mxu1 %v7755_v25  ;;  %v7829_v25 = vld [vmem:[#allocation11 + $0x2ec] ss:$16 sps:$4 sm:$0xff]  }
 0x39b   :  { %4876 = vmatprep.subr.bf16.mxu1 %v7760_v26  ;;  %v7827_v26 = vld [vmem:[#allocation11 + $0x2e8] ss:$16 sps:$4 sm:$0xff]  }
 0x39d   :  { %3972 = vmatmul.mubr.bf16.vlgmr.msra.gmra.mrb[16].mxu1 %v8381_v32  ;;  %v7778_v32 = vld [vmem:[#allocation11 + $0x2c4] ss:$16 sps:$4 sm:$0xff]  }
 0x39e   :  { %4877 = vmatpush1.bf16.msra.mxu1 %v7758_v53  ;;  %v7832_v53 = vld [vmem:[#allocation11 + $0x30c] ss:$16 sps:$4 sm:$0xff]  }
 0x39f   :  { %4878 = vmatprep.subr.bf16.mxu1 %v7763_v31  ;;  %v7830_v31 = vld [vmem:[#allocation11 + $0x308] ss:$16 sps:$4 sm:$0xff]  }
 0x3a2   :  { %4879 = vmatpush1.bf16.msra.mxu1 %v7761_v27  ;;  %v7835_v27 = vld [vmem:[#allocation11 + $0x32c] ss:$16 sps:$4 sm:$0xff]  }
 0x3a3   :  { %4880 = vmatprep.subr.bf16.mxu1 %v7766_v15  ;;  %v7833_v15 = vld [vmem:[#allocation11 + $0x328] ss:$16 sps:$4 sm:$0xff]  }
 0x3a6   :  { %4881 = vmatpush1.bf16.msra.mxu1 %v7764_v28  ;;  %v7838_v28 = vld [vmem:[#allocation11 + $0x34c] ss:$16 sps:$4 sm:$0xff]  }
 0x3a7   :  { %4882 = vmatprep.subr.bf16.mxu1 %v7769_v29  ;;  %v7836_v29 = vld [vmem:[#allocation11 + $0x348] ss:$16 sps:$4 sm:$0xff]  }
 0x3aa   :  { %4883 = vmatpush1.bf16.msra.mxu1 %v7767_v30  ;;  %v7841_v30 = vld [vmem:[#allocation11 + $0x36c] ss:$16 sps:$4 sm:$0xff]  }
 0x3ab   :  { %4884 = vmatprep.subr.bf16.mxu1 %v7772_v33  ;;  %v7839_v33 = vld [vmem:[#allocation11 + $0x368] ss:$16 sps:$4 sm:$0xff]  }
 0x3ae   :  { %4885 = vmatpush1.bf16.msra.mxu1 %v7770_v34  ;;  %v7844_v34 = vld [vmem:[#allocation11 + $0x38c] ss:$16 sps:$4 sm:$0xff]  }
 0x3af   :  { %4886 = vmatprep.subr.bf16.mxu1 %v7775_v35  ;;  %v7842_v35 = vld [vmem:[#allocation11 + $0x388] ss:$16 sps:$4 sm:$0xff]  }
 0x3b2   :  { %4887 = vmatpush1.bf16.msra.mxu1 %v7773_v37  ;;  %v7847_v37 = vld [vmem:[#allocation11 + $0x3ac] ss:$16 sps:$4 sm:$0xff]  }
 0x3b3   :  { %4888 = vmatprep.subr.bf16.mxu1 %v7778_v32  ;;  %v7845_v32 = vld [vmem:[#allocation11 + $0x3a8] ss:$16 sps:$4 sm:$0xff]  }
 0x3b6   :  { %4889 = vmatpush1.bf16.msra.mxu1 %v7776_v38  ;;  %v7850_v38 = vld [vmem:[#allocation11 + $0x3cc] ss:$16 sps:$4 sm:$0xff]  }
 0x3b7   :  { %4890 = vmatprep.subr.bf16.mxu1 %v7781_v39  ;;  %v7848_v39 = vld [vmem:[#allocation11 + $0x3c8] ss:$16 sps:$4 sm:$0xff]  }
 0x3ba   :  { %4891 = vmatpush1.bf16.msra.mxu1 %v7779_v40  ;;  %v7853_v40 = vld [vmem:[#allocation11 + $0x3ec] ss:$16 sps:$4 sm:$0xff]  }
 0x3bb   :  { %4892 = vmatprep.subr.bf16.mxu1 %v7784_v41  ;;  %v7851_v41 = vld [vmem:[#allocation11 + $0x3e8] ss:$16 sps:$4 sm:$0xff]  }
 0x3be   :  { %4893 = vmatpush1.bf16.msra.mxu1 %v7782_v43  ;;  %v7856_v43 = vld [vmem:[#allocation11 + $0x404] ss:$16 sps:$4 sm:$0xff]  }
 0x3bf   :  { %4894 = vmatprep.subr.bf16.mxu1 %v7787_v44  ;;  %v7854_v44 = vld [vmem:[#allocation11 + $0x400] ss:$16 sps:$4 sm:$0xff]  }
 0x3c2   :  { %4895 = vmatpush1.bf16.msra.mxu1 %v7785_v45  ;;  %v7859_v45 = vld [vmem:[#allocation11 + $0x424] ss:$16 sps:$4 sm:$0xff]  }
 0x3c3   :  { %4896 = vmatprep.subr.bf16.mxu1 %v7790_v46  ;;  %v7857_v46 = vld [vmem:[#allocation11 + $0x420] ss:$16 sps:$4 sm:$0xff]  }
 0x3c6   :  { %4897 = vmatpush1.bf16.msra.mxu1 %v7788_v47  ;;  %v7862_v47 = vld [vmem:[#allocation11 + $0x444] ss:$16 sps:$4 sm:$0xff]  }
 0x3c7   :  { %4898 = vmatprep.subr.bf16.mxu1 %v7793_v48  ;;  %v7860_v48 = vld [vmem:[#allocation11 + $0x440] ss:$16 sps:$4 sm:$0xff]  }
 0x3ca   :  { %4899 = vmatpush1.bf16.msra.mxu1 %v7791_v49  ;;  %v7865_v49 = vld [vmem:[#allocation11 + $0x464] ss:$16 sps:$4 sm:$0xff]  }
 0x3cb   :  { %4900 = vmatprep.subr.bf16.mxu1 %v7796_v50  ;;  %v7863_v50 = vld [vmem:[#allocation11 + $0x460] ss:$16 sps:$4 sm:$0xff]  }
 0x3ce   :  { %4901 = vmatpush1.bf16.msra.mxu1 %v7794_v51  ;;  %v7868_v51 = vld [vmem:[#allocation11 + $0x484] ss:$16 sps:$4 sm:$0xff]  }
 0x3cf   :  { %4902 = vmatprep.subr.bf16.mxu1 %v7799_v52  ;;  %v7866_v52 = vld [vmem:[#allocation11 + $0x480] ss:$16 sps:$4 sm:$0xff]  }
 0x3d2   :  { %4903 = vmatpush1.bf16.msra.mxu1 %v7797_v14  ;;  %v8394_v14 = vld [vmem:[#allocation13] sm:$0xf] }
 0x3d3   :  { %4904 = vmatprep.subr.bf16.mxu1 %v7802_v57  ;;  %v3561_v57 = vrot.slane %v8394_v14, %v8330_v6 }
 0x3d4   :  { %v4457_v0 = vpop.f32.mrb[16].mxu0 }
 0x3d5   :  { %v6740_v56 = vadd.f32 %v4457_v0, %v4055_v58  ;;  %v4459_v3 = vpop.f32.mrb[17].mxu0  ;;  %v7869_v58 = vld [vmem:[#allocation11 + $0x4a0] ss:$16 sps:$4 sm:$0xff]  }
 0x3d6   :  { %v6741_v5 = vadd.f32 %v4459_v3, %v4059_v61  ;;  %4905 = vmatpush1.bf16.msra.mxu1 %v7800_v60  ;;  %v4461_v59 = vpop.f32.mrb[18].mxu0  ;;  %v3565_v60 = vrot.slane %v8394_v14, %v8318_v4  ;;  %v7874_v61 = vld [vmem:[#allocation11 + $0x4c4] ss:$16 sps:$4 sm:$0xff]  }
 0x3d7   :  { %v4464_v10 = vmax.f32 %v6740_v56, 0.0  ;;  %v4462_v42 = vpop.f32.mrb[19].mxu0  ;;  %4906 = vmatprep.subr.bf16.mxu1 %v7805_v62  ;;  %v7872_v59 = vld [vmem:[#allocation11 + $0x4c0] ss:$16 sps:$4 sm:$0xff]  }
 0x3d8   :  { %v4465_v13 = vmax.f32 %v6741_v5, 0.0  ;;  %v7875_v42 = vld [vmem:[#allocation11 + $0x4e0] ss:$16 sps:$4 sm:$0xff]  }
 0x3d9   :  { %v8390_v7 = vpack.c.bf16 %v4464_v10, %v4464_v10  ;;  %v7877_v10 = vld [vmem:[#allocation11 + $0x4e4] ss:$16 sps:$4 sm:$0xff]  }
 0x3da   :  { %v4467_v16 = vpack.c.bf16 %v4465_v13, %v4465_v13  ;;  %4907 = vmatpush1.bf16.msra.mxu1 %v7803_v9  ;;  %v7878_v13 = vld [vmem:[#allocation11 + $0x500] ss:$16 sps:$4 sm:$0xff]  }
 0x3db   :  { %4917 = vmatprep.subr.bf16.mxu1 %v7808_v11  ;;  %v7880_v11 = vld [vmem:[#allocation11 + $0x504] ss:$16 sps:$4 sm:$0xff]  }
 0x3dc   :  { %4908 = vmatprep.mubr.bf16.mxu1 %v4467_v16 }
 0x3dd   :  { %4909 = vmatmul.mubr.bf16.vlgmr.msra.gmra.mrb[20].mxu1 %v8390_v7 }
 0x3de   :  { %4918 = vmatpush1.bf16.msra.mxu1 %v7806_v2  ;;  %4949 = vmatprep.mubr.bf16.mxu1 %v4467_v16  ;;  %v7883_v16 = vld [vmem:[#allocation11 + $0x524] ss:$16 sps:$4 sm:$0xff]   ;;  %v7881_v2 = vld [vmem:[#allocation11 + $0x520] ss:$16 sps:$4 sm:$0xff]  }
 0x3df   :  { %4919 = vmatprep.subr.bf16.mxu1 %v7811_v63  ;;  %v7884_v63 = vld [vmem:[#allocation11 + $0x540] ss:$16 sps:$4 sm:$0xff]  }
 0x3e2   :  { %4920 = vmatpush1.bf16.msra.mxu1 %v7809_v18  ;;  %v7889_v18 = vld [vmem:[#allocation11 + $0x564] ss:$16 sps:$4 sm:$0xff]  }
 0x3e3   :  { %4921 = vmatprep.subr.bf16.mxu1 %v7814_v12  ;;  %v7887_v12 = vld [vmem:[#allocation11 + $0x560] ss:$16 sps:$4 sm:$0xff]  }
 0x3e6   :  { %4922 = vmatpush1.bf16.msra.mxu1 %v7812_v17  ;;  %v7892_v17 = vld [vmem:[#allocation11 + $0x584] ss:$16 sps:$4 sm:$0xff]  }
 0x3e7   :  { %4923 = vmatprep.subr.bf16.mxu1 %v7817_v19  ;;  %v7890_v19 = vld [vmem:[#allocation11 + $0x580] ss:$16 sps:$4 sm:$0xff]  }
 0x3ea   :  { %4924 = vmatpush1.bf16.msra.mxu1 %v7815_v36  ;;  %v7895_v36 = vld [vmem:[#allocation11 + $0x5a4] ss:$16 sps:$4 sm:$0xff]  }
 0x3eb   :  { %4925 = vmatprep.subr.bf16.mxu1 %v7820_v20  ;;  %v7893_v20 = vld [vmem:[#allocation11 + $0x5a0] ss:$16 sps:$4 sm:$0xff]  }
 0x3ee   :  { %4926 = vmatpush1.bf16.msra.mxu1 %v7818_v21  ;;  %v5028_v21 = vld [vmem:[#allocation10 + $0x4] sm:$0x3] }
 0x3ef   :  { %4927 = vmatprep.subr.bf16.mxu1 %v7823_v1  ;;  %v7898_v1 = vld [vmem:[#allocation11 + $0x5c4] ss:$16 sps:$4 sm:$0xff]  }
 0x3f2   :  { %4928 = vmatpush1.bf16.msra.mxu1 %v7821_v22  ;;  %v5033_v22 = vrot.slane %v5028_v21, %v8330_v6 }
 0x3f3   :  { %4929 = vmatprep.subr.bf16.mxu1 %v7826_v23  ;;  %v7896_v23 = vld [vmem:[#allocation11 + $0x5c0] ss:$16 sps:$4 sm:$0xff]  }
 0x3f6   :  { %4930 = vmatpush1.bf16.msra.mxu1 %v7824_v24  ;;  %v5037_v24 = vrot.slane %v5028_v21, %v8318_v4 }
 0x3f7   :  { %4931 = vmatprep.subr.bf16.mxu1 %v7829_v25  ;;  %v7901_v25 = vld [vmem:[#allocation11 + $0x5e4] ss:$16 sps:$4 sm:$0xff]  }
 0x3fa   :  { %4932 = vmatpush1.bf16.msra.mxu1 %v7827_v26 }
 0x3fb   :  { %4933 = vmatprep.subr.bf16.mxu1 %v7832_v53 }
 0x3fe   :  { %4934 = vmatpush1.bf16.msra.mxu1 %v7830_v31 }
 0x3ff   :  { %4935 = vmatprep.subr.bf16.mxu1 %v7835_v27  ;;  %v7899_v27 = vld [vmem:[#allocation11 + $0x5e0] ss:$16 sps:$4 sm:$0xff]  }
 0x402   :  { %4936 = vmatpush1.bf16.msra.mxu1 %v7833_v15 }
 0x403   :  { %4937 = vmatprep.subr.bf16.mxu1 %v7838_v28 }
 0x406   :  { %4938 = vmatpush1.bf16.msra.mxu1 %v7836_v29  ;;  %v7904_v29 = vld [vmem:[#allocation11 + $0x40c] ss:$16 sps:$4 sm:$0xff]  }
 0x407   :  { %4939 = vmatprep.subr.bf16.mxu1 %v7841_v30 }
 0x40a   :  { %4940 = vmatpush1.bf16.msra.mxu1 %v7839_v33 }
 0x40b   :  { %4941 = vmatprep.subr.bf16.mxu1 %v7844_v34 }
 0x40e   :  { %4942 = vmatpush1.bf16.msra.mxu1 %v7842_v35 }
 0x40f   :  { %4943 = vmatprep.subr.bf16.mxu1 %v7847_v37  ;;  %v7902_v37 = vld [vmem:[#allocation11 + $0x408] ss:$16 sps:$4 sm:$0xff]  }
 0x412   :  { %4944 = vmatpush1.bf16.msra.mxu1 %v7845_v32 }
 0x413   :  { %4945 = vmatprep.subr.bf16.mxu1 %v7850_v38  ;;  %v7907_v38 = vld [vmem:[#allocation11 + $0x42c] ss:$16 sps:$4 sm:$0xff]  }
 0x416   :  { %4946 = vmatpush1.bf16.msra.mxu1 %v7848_v39  ;;  %v7905_v39 = vld [vmem:[#allocation11 + $0x428] ss:$16 sps:$4 sm:$0xff]  }
 0x417   :  { %4947 = vmatprep.subr.bf16.mxu1 %v7853_v40  ;;  %v7910_v40 = vld [vmem:[#allocation11 + $0x44c] ss:$16 sps:$4 sm:$0xff]  }
 0x41a   :  { %4948 = vmatpush1.bf16.msra.mxu1 %v7851_v41  ;;  %v7908_v41 = vld [vmem:[#allocation11 + $0x448] ss:$16 sps:$4 sm:$0xff]  }
 0x41b   :  { %5854 = vmatprep.subr.bf16.mxu1 %v7856_v43  ;;  %v7913_v43 = vld [vmem:[#allocation11 + $0x46c] ss:$16 sps:$4 sm:$0xff]  }
 0x41d   :  { %4950 = vmatmul.mubr.bf16.vlgmr.msra.gmra.mrb[24].mxu1 %v8390_v7  ;;  %v7886_v7 = vld [vmem:[#allocation11 + $0x544] ss:$16 sps:$4 sm:$0xff]  }
 0x41e   :  { %5855 = vmatpush1.bf16.msra.mxu1 %v7854_v44  ;;  %v7911_v44 = vld [vmem:[#allocation11 + $0x468] ss:$16 sps:$4 sm:$0xff]  }
 0x41f   :  { %5856 = vmatprep.subr.bf16.mxu1 %v7859_v45  ;;  %v7916_v45 = vld [vmem:[#allocation11 + $0x48c] ss:$16 sps:$4 sm:$0xff]  }
 0x422   :  { %5857 = vmatpush1.bf16.msra.mxu1 %v7857_v46  ;;  %v7914_v46 = vld [vmem:[#allocation11 + $0x488] ss:$16 sps:$4 sm:$0xff]  }
 0x423   :  { %5858 = vmatprep.subr.bf16.mxu1 %v7862_v47  ;;  %v7919_v47 = vld [vmem:[#allocation11 + $0x4ac] ss:$16 sps:$4 sm:$0xff]  }
 0x426   :  { %5859 = vmatpush1.bf16.msra.mxu1 %v7860_v48  ;;  %v3569_v48 = vrot.slane %v8394_v14, %v8344_v54 }
 0x427   :  { %5860 = vmatprep.subr.bf16.mxu1 %v7865_v49  ;;  %v3573_v49 = vrot.slane %v8394_v14, %v8333_v8  ;;  %v7928_v14 = vld [vmem:[#allocation11 + $0x50c] ss:$16 sps:$4 sm:$0xff]  }
 0x42a   :  { %5861 = vmatpush1.bf16.msra.mxu1 %v7863_v50  ;;  %v7917_v50 = vld [vmem:[#allocation11 + $0x4a8] ss:$16 sps:$4 sm:$0xff]  }
 0x42b   :  { %5862 = vmatprep.subr.bf16.mxu1 %v7868_v51 }
 0x42e   :  { %5863 = vmatpush1.bf16.msra.mxu1 %v7866_v52  ;;  %v7922_v52 = vld [vmem:[#allocation11 + $0x4cc] ss:$16 sps:$4 sm:$0xff]  }
 0x42f   :  { %5864 = vmatprep.subr.bf16.mxu1 %v7871_v55 }
 0x430   :  { %v3932_v62 = vpop.f32.mrb[12].mxu1 }
 0x431   :  { %v3933_v0 = vadd.f32 %v3932_v62, %v3561_v57  ;;  %v3934_v56 = vpop.f32.mrb[13].mxu1  ;;  %v7920_v62 = vld [vmem:[#allocation11 + $0x4c8] ss:$16 sps:$4 sm:$0xff]  }
 0x432   :  { %v3935_v3 = vadd.f32 %v3934_v56, %v3565_v60  ;;  %5865 = vmatpush1.bf16.msra.mxu1 %v7869_v58  ;;  %v3936_v5 = vpop.f32.mrb[14].mxu1  ;;  %v7923_v56 = vld [vmem:[#allocation11 + $0x4e8] ss:$16 sps:$4 sm:$0xff]  }
 0x433   :  { %3980 = vst [vmem:[#allocation14] sm:$0xff] %v3933_v0  ;;  %v3937_v9 = vpop.f32.mrb[15].mxu1  ;;  %5866 = vmatprep.subr.bf16.mxu1 %v7874_v61  ;;  %v7925_v0 = vld [vmem:[#allocation11 + $0x4ec] ss:$16 sps:$4 sm:$0xff]  }
 0x434   :  { %3981 = vst [vmem:[#allocation14 + $0x8] sm:$0xff] %v3935_v3  ;;  %v7926_v3 = vld [vmem:[#allocation11 + $0x508] ss:$16 sps:$4 sm:$0xff]   ;;  %v7931_v5 = vld [vmem:[#allocation11 + $0x52c] ss:$16 sps:$4 sm:$0xff]  }
 0x435   :  { %v7934_v9 = vld [vmem:[#allocation11 + $0x54c] ss:$16 sps:$4 sm:$0xff]  }
 0x436   :  { %5867 = vmatpush1.bf16.msra.mxu1 %v7872_v59  ;;  %v7929_v59 = vld [vmem:[#allocation11 + $0x528] ss:$16 sps:$4 sm:$0xff]  }
 0x437   :  { %5868 = vmatprep.subr.bf16.mxu1 %v7877_v10  ;;  %v7932_v10 = vld [vmem:[#allocation11 + $0x548] ss:$16 sps:$4 sm:$0xff]  }
 0x43a   :  { %5869 = vmatpush1.bf16.msra.mxu1 %v7875_v42  ;;  %v7937_v42 = vld [vmem:[#allocation11 + $0x56c] ss:$16 sps:$4 sm:$0xff]  }
 0x43b   :  { %5870 = vmatprep.subr.bf16.mxu1 %v7880_v11  ;;  %v7935_v11 = vld [vmem:[#allocation11 + $0x568] ss:$16 sps:$4 sm:$0xff]  }
 0x43e   :  { %5871 = vmatpush1.bf16.msra.mxu1 %v7878_v13  ;;  %v7940_v13 = vld [vmem:[#allocation11 + $0x58c] ss:$16 sps:$4 sm:$0xff]  }
 0x43f   :  { %5872 = vmatprep.subr.bf16.mxu1 %v7883_v16  ;;  %v7938_v16 = vld [vmem:[#allocation11 + $0x588] ss:$16 sps:$4 sm:$0xff]  }
 0x442   :  { %5873 = vmatpush1.bf16.msra.mxu1 %v7881_v2  ;;  %v7943_v2 = vld [vmem:[#allocation11 + $0x5ac] ss:$16 sps:$4 sm:$0xff]  }
 0x443   :  { %5874 = vmatprep.subr.bf16.mxu1 %v7886_v7  ;;  %v7941_v7 = vld [vmem:[#allocation11 + $0x5a8] ss:$16 sps:$4 sm:$0xff]  }
 0x446   :  { %5875 = vmatpush1.bf16.msra.mxu1 %v7884_v63  ;;  %v7946_v63 = vld [vmem:[#allocation11 + $0x5cc] ss:$16 sps:$4 sm:$0xff]  }
 0x447   :  { %5876 = vmatprep.subr.bf16.mxu1 %v7889_v18  ;;  %v7944_v18 = vld [vmem:[#allocation11 + $0x5c8] ss:$16 sps:$4 sm:$0xff]  }
 0x44a   :  { %5877 = vmatpush1.bf16.msra.mxu1 %v7887_v12  ;;  %v7949_v12 = vld [vmem:[#allocation11 + $0x5ec] ss:$16 sps:$4 sm:$0xff]  }
 0x44b   :  { %5878 = vmatprep.subr.bf16.mxu1 %v7892_v17  ;;  %v7947_v17 = vld [vmem:[#allocation11 + $0x5e8] ss:$16 sps:$4 sm:$0xff]  }
 0x44e   :  { %5879 = vmatpush1.bf16.msra.mxu1 %v7890_v19  ;;  %v4534_v19 = vld [vmem:[#allocation13 + $0x4] sm:$0xf] }
 0x44f   :  { %5880 = vmatprep.subr.bf16.mxu1 %v7895_v36  ;;  %v4539_v36 = vrot.slane %v4534_v19, %v8330_v6 }
 0x452   :  { %5881 = vmatpush1.bf16.msra.mxu1 %v7893_v20  ;;  %v4543_v20 = vrot.slane %v4534_v19, %v8318_v4 }
 0x453   :  { %5882 = vmatprep.subr.bf16.mxu1 %v7898_v1 }
 0x455   :  { %v5435_v26 = vpop.f32.mrb[20].mxu0 }
 0x456   :  { %v6742_v53 = vadd.f32 %v5435_v26, %v5033_v22  ;;  %v5437_v31 = vpop.f32.mrb[21].mxu0  ;;  %5883 = vmatpush1.bf16.msra.mxu1 %v7896_v23  ;;  %v4547_v26 = vrot.slane %v4534_v19, %v8344_v54 }
 0x457   :  { %v6743_v15 = vadd.f32 %v5437_v31, %v5037_v24  ;;  %v5439_v28 = vpop.f32.mrb[22].mxu0  ;;  %5884 = vmatprep.subr.bf16.mxu1 %v7901_v25 }
 0x458   :  { %v5442_v30 = vmax.f32 %v6742_v53, 0.0  ;;  %v5440_v33 = vpop.f32.mrb[23].mxu0  ;;  %v4551_v53 = vrot.slane %v4534_v19, %v8333_v8 }
 0x459   :  { %v5443_v34 = vmax.f32 %v6743_v15, 0.0  ;;  %v5512_v33 = vld [vmem:[#allocation13 + $0x8] sm:$0xf] }
 0x45a   :  { %5885 = vmatpush1.bf16.msra.mxu1 %v7899_v27  ;;  %v8402_v32 = vpack.c.bf16 %v5442_v30, %v5442_v30 }
 0x45b   :  { %v5445_v35 = vpack.c.bf16 %v5443_v34, %v5443_v34  ;;  %5895 = vmatprep.subr.bf16.mxu1 %v7904_v29  ;;  %v5517_v34 = vrot.slane %v5512_v33, %v8330_v6 }
 0x45d   :  { %5886 = vmatprep.mubr.bf16.mxu1 %v5445_v35 }
 0x45e   :  { %5887 = vmatmul.mubr.bf16.vlgmr.msra.gmra.mrb[28].mxu1 %v8402_v32 }
 0x45f   :  { %5896 = vmatpush1.bf16.msra.mxu1 %v7902_v37  ;;  %5927 = vmatprep.mubr.bf16.mxu1 %v5445_v35  ;;  %v5521_v35 = vrot.slane %v5512_v33, %v8318_v4 }
 0x460   :  { %5897 = vmatprep.subr.bf16.mxu1 %v7907_v38 }
 0x463   :  { %5898 = vmatpush1.bf16.msra.mxu1 %v7905_v39 }
 0x464   :  { %5899 = vmatprep.subr.bf16.mxu1 %v7910_v40 }
 0x467   :  { %5900 = vmatpush1.bf16.msra.mxu1 %v7908_v41 }
 0x468   :  { %5901 = vmatprep.subr.bf16.mxu1 %v7913_v43  ;;  %v5525_v43 = vrot.slane %v5512_v33, %v8344_v54 }
 0x46b   :  { %5902 = vmatpush1.bf16.msra.mxu1 %v7911_v44  ;;  %v5529_v44 = vrot.slane %v5512_v33, %v8333_v8 }
 0x46c   :  { %5903 = vmatprep.subr.bf16.mxu1 %v7916_v45 }
 0x46f   :  { %5904 = vmatpush1.bf16.msra.mxu1 %v7914_v46 }
 0x470   :  { %v3973_v51 = vpop.f32.mrb[16].mxu1  ;;  %5905 = vmatprep.subr.bf16.mxu1 %v7919_v47 }
 0x471   :  { %v3974_v55 = vadd.f32 %v3973_v51, %v3569_v48  ;;  %v3975_v57 = vpop.f32.mrb[17].mxu1 }
 0x472   :  { %v3976_v58 = vadd.f32 %v3975_v57, %v3573_v49  ;;  %v3977_v60 = vpop.f32.mrb[18].mxu1 }
 0x473   :  { %3982 = vst [vmem:[#allocation14 + $0x10] sm:$0xff] %v3974_v55  ;;  %5906 = vmatpush1.bf16.msra.mxu1 %v7917_v50  ;;  %v3978_v61 = vpop.f32.mrb[19].mxu1 }
 0x474   :  { %3983 = vst [vmem:[#allocation14 + $0x18] sm:$0xff] %v3976_v58  ;;  %5907 = vmatprep.subr.bf16.mxu1 %v7922_v52 }
 0x477   :  { %5908 = vmatpush1.bf16.msra.mxu1 %v7920_v62 }
 0x478   :  { %5909 = vmatprep.subr.bf16.mxu1 %v7925_v0 }
 0x47b   :  { %5910 = vmatpush1.bf16.msra.mxu1 %v7923_v56 }
 0x47c   :  { %5911 = vmatprep.subr.bf16.mxu1 %v7928_v14 }
 0x47f   :  { %5912 = vmatpush1.bf16.msra.mxu1 %v7926_v3 }
 0x480   :  { %5913 = vmatprep.subr.bf16.mxu1 %v7931_v5 }
 0x483   :  { %5914 = vmatpush1.bf16.msra.mxu1 %v7929_v59 }
 0x484   :  { %5915 = vmatprep.subr.bf16.mxu1 %v7934_v9 }
 0x487   :  { %5916 = vmatpush1.bf16.msra.mxu1 %v7932_v10 }
 0x488   :  { %5917 = vmatprep.subr.bf16.mxu1 %v7937_v42 }
 0x48b   :  { %5918 = vmatpush1.bf16.msra.mxu1 %v7935_v11 }
 0x48c   :  { %5919 = vmatprep.subr.bf16.mxu1 %v7940_v13 }
 0x48f   :  { %5920 = vmatpush1.bf16.msra.mxu1 %v7938_v16 }
 0x490   :  { %5921 = vmatprep.subr.bf16.mxu1 %v7943_v2 }
 0x493   :  { %5922 = vmatpush1.bf16.msra.mxu1 %v7941_v7 }
 0x494   :  { %5923 = vmatprep.subr.bf16.mxu1 %v7946_v63 }
 0x497   :  { %5924 = vmatpush1.bf16.msra.mxu1 %v7944_v18 }
 0x498   :  { %5925 = vmatprep.subr.bf16.mxu1 %v7949_v12 }
 0x49b   :  { %5926 = vmatpush1.bf16.msra.mxu1 %v7947_v17 }
 0x49e   :  { %5928 = vmatmul.mubr.bf16.vlgmr.msra.gmra.mrb[32].mxu1 %v8402_v32 }
 0x4b0   :  { %v4910_v21 = vpop.f32.mrb[20].mxu1 }
 0x4b1   :  { %v4911_v1 = vadd.f32 %v4910_v21, %v4539_v36  ;;  %v4912_v22 = vpop.f32.mrb[21].mxu1 }
 0x4b2   :  { %v4913_v23 = vadd.f32 %v4912_v22, %v4543_v20  ;;  %v4914_v24 = vpop.f32.mrb[22].mxu1 }
 0x4b3   :  { %4958 = vst [vmem:[#allocation14 + $0x20] sm:$0xff] %v4911_v1  ;;  %v4915_v25 = vpop.f32.mrb[23].mxu1 }
 0x4b4   :  { %4959 = vst [vmem:[#allocation14 + $0x28] sm:$0xff] %v4913_v23 }
 0x4f0   :  { %v4951_v31 = vpop.f32.mrb[24].mxu1 }
 0x4f1   :  { %v4952_v27 = vadd.f32 %v4951_v31, %v4547_v26  ;;  %v4953_v15 = vpop.f32.mrb[25].mxu1 }
 0x4f2   :  { %v4954_v28 = vadd.f32 %v4953_v15, %v4551_v53  ;;  %v4955_v29 = vpop.f32.mrb[26].mxu1 }
 0x4f3   :  { %4960 = vst [vmem:[#allocation14 + $0x30] sm:$0xff] %v4952_v27  ;;  %v4956_v30 = vpop.f32.mrb[27].mxu1 }
 0x4f4   :  { %4961 = vst [vmem:[#allocation14 + $0x38] sm:$0xff] %v4954_v28 }
 0x531   :  { %v5888_v37 = vpop.f32.mrb[28].mxu1 }
 0x532   :  { %v5889_v32 = vadd.f32 %v5888_v37, %v5517_v34  ;;  %v5890_v38 = vpop.f32.mrb[29].mxu1 }
 0x533   :  { %v5891_v39 = vadd.f32 %v5890_v38, %v5521_v35  ;;  %v5892_v40 = vpop.f32.mrb[30].mxu1 }
 0x534   :  { %5936 = vst [vmem:[#allocation14 + $0x40] sm:$0xff] %v5889_v32  ;;  %v5893_v41 = vpop.f32.mrb[31].mxu1 }
 0x535   :  { %5937 = vst [vmem:[#allocation14 + $0x48] sm:$0xff] %v5891_v39 }
 0x571   :  { %v5929_v45 = vpop.f32.mrb[32].mxu1 }
 0x572   :  { %v5930_v46 = vadd.f32 %v5929_v45, %v5525_v43  ;;  %v5931_v47 = vpop.f32.mrb[33].mxu1 }
 0x573   :  { %v5932_v6 = vadd.f32 %v5931_v47, %v5529_v44  ;;  %v5933_v48 = vpop.f32.mrb[34].mxu1 }
 0x574   :  { %5938 = vst [vmem:[#allocation14 + $0x50] sm:$0xff] %v5930_v46  ;;  %v5934_v4 = vpop.f32.mrb[35].mxu1 }
 0x575   :  { %5939 = vst [vmem:[#allocation14 + $0x58] sm:$0xff] %v5932_v6 }
 0x576   :  { %8116 = shalt.err (!%p8113_p4)
}
 0x577   :  { %s8117_s18 = scalar_lea.hbm %s8437_s7, 1536 }
 0x578   :  { %p8118_p5 = scmp.ne.s32.totalorder %s8437_s7, %s8117_s18  ;;  %p8121_p6 = scmp.lt.u32.totalorder %s8117_s18, %s8437_s7 }
 0x57a   :  { %p8123_p7 = pnand %p8121_p6, %p8118_p5 }
 0x57c   :  { %8126 = shalt.err (!%p8123_p7)
}
 0x57d   :  { %5949 = dma.vmem_to_hbm [thread:$0]  %s5947_s3, 1536, %s8437_s7, [#allocation4]  }
 0x57e   :  { %8135 = dma.done.wait [#allocation4], 1536  }
 0x57f   :  { %8136 = vsyncadd [#allocation4], 4294965760 }
 0x580   :  { %5953 = vsyncpa [#allocation3], 1 }
 0x581   :  { %5954 = vsyncpa [#allocation6], 1 }
 0x582   :  { %5955 = vsyncpa [#allocation9], 1 }
 0x583   :  { %5956 = vsyncpa [#allocation12], 1 }
 0x584   :  { %5957 = vsyncpa [#allocation4], 1 }

</bundles_post_ra>
